<compile_context>
chip_gen: v5e
topology: v5e:2x2
jax: 0.10.0
libtpu: 0.0.40
codegen_flags: <defaults>
</compile_context>

<pallas_src>
import functools
import math

import jax
import jax.numpy as jnp
from jax.experimental import pallas as pl
from jax.experimental.pallas import tpu as pltpu

# --- small, module-consistent configuration ---------------------------------
IMAGE_SIZE = 16
PATCH_SIZE = 8
NUM_LAYERS = 2
NUM_HEADS = 2
HIDDEN_DIM = 32
MLP_DIM = 64
NUM_CLASSES = 10
BATCH = 2
SEQ_LEN = (IMAGE_SIZE // PATCH_SIZE) ** 2 + 1  # patches + class token = 5
EPS = 1e-6  # LayerNorm eps (partial(nn.LayerNorm, eps=1e-06))

_N_LAYER_REFS = 16  # refs per encoder layer passed to the kernel


# --- in-kernel helpers -------------------------------------------------------
def _layernorm(x, w, b):
  # PyTorch LayerNorm: biased variance, eps inside rsqrt.
  mu = jnp.mean(x, axis=-1, keepdims=True)
  xc = x - mu
  var = jnp.mean(xc * xc, axis=-1, keepdims=True)
  return xc * jax.lax.rsqrt(var + EPS) * w + b


def _gelu_exact(x):
  # Exact erf form (torch.nn.GELU default); erf lowers to the EUP slot.
  return 0.5 * x * (1.0 + jax.lax.erf(x * (1.0 / math.sqrt(2.0))))


# --- single fused Pallas kernel ----------------------------------------------
def vit_kernel(*refs, batch):
  B = batch
  S, D, H, L = SEQ_LEN, HIDDEN_DIM, NUM_HEADS, NUM_LAYERS
  P = S - 1                       # patches per image
  hd = D // H
  scale = 1.0 / math.sqrt(hd)

  patches_ref, pw_ref, pb_ref, cls_ref, pos_ref = refs[:5]
  layer_refs = refs[5:5 + L * _N_LAYER_REFS]
  enc_lnw_ref, enc_lnb_ref, hw_ref, hb_ref = refs[5 + L * _N_LAYER_REFS:
                                                  9 + L * _N_LAYER_REFS]
  o_ref = refs[9 + L * _N_LAYER_REFS]
  buf_ref = refs[10 + L * _N_LAYER_REFS]   # (B*S, D) VMEM scratch slab

  # --- 1) patch embedding: conv(k=p, stride=p) as a per-patch matmul ---------
  emb = (jnp.dot(patches_ref[...], pw_ref[...],
                 preferred_element_type=jnp.float32) + pb_ref[...])  # (B*P, D)

  # --- 2) assemble [CLS | patches] + positional embedding --------------------
  pos = pos_ref[...]      # (S, D)
  cls = cls_ref[...]      # (1, D)
  for b in range(B):      # static, B=2
    buf_ref[pl.ds(b * S, 1), :] = cls + pos[0:1, :]
    buf_ref[pl.ds(b * S + 1, P), :] = emb[b * P:(b + 1) * P, :] + pos[1:, :]
  x = buf_ref[...]        # (B*S, D) token slab

  # --- 3) encoder blocks (statically unrolled) --------------------------------
  for li in range(L):
    (ln1w, ln1b, wq, bq, wk, bk, wv, bv, wo, bo,
     ln2w, ln2b, w1, b1, w2, b2) = layer_refs[li * _N_LAYER_REFS:
                                              (li + 1) * _N_LAYER_REFS]

    # ----- multi-head self-attention -----
    y = _layernorm(x, ln1w[...], ln1b[...])
    # residual + out-proj bias; per-(head, batch) contributions accumulate below
    buf_ref[...] = x + bo[...]
    for h in range(H):    # static, H=2; weights pre-split per head (leading axis)
      qh = (jnp.dot(y, wq[h], preferred_element_type=jnp.float32) + bq[h]) * scale
      kh = jnp.dot(y, wk[h], preferred_element_type=jnp.float32) + bk[h]
      vh = jnp.dot(y, wv[h], preferred_element_type=jnp.float32) + bv[h]
      for b in range(B):  # attention is per batch element
        r0 = b * S
        qb = qh[r0:r0 + S, :]
        kb = kh[r0:r0 + S, :]
        vb = vh[r0:r0 + S, :]
        s = jax.lax.dot_general(qb, kb, (((1,), (1,)), ((), ())),
                                preferred_element_type=jnp.float32)   # (S, S)
        s = s - jnp.max(s, axis=-1, keepdims=True)
        e = jnp.exp(s)
        a = e * pl.reciprocal(jnp.sum(e, axis=-1, keepdims=True), approx=True)
        ctx = jnp.dot(a, vb, preferred_element_type=jnp.float32)      # (S, hd)
        # per-head slice of the out-projection, accumulated in place
        buf_ref[pl.ds(r0, S), :] += jnp.dot(
            ctx, wo[h], preferred_element_type=jnp.float32)           # (S, D)
    x = buf_ref[...]      # post-attention residual

    # ----- MLP -----
    y = _layernorm(x, ln2w[...], ln2b[...])
    h1 = _gelu_exact(
        jnp.dot(y, w1[...], preferred_element_type=jnp.float32) + b1[...])
    h2 = jnp.dot(h1, w2[...], preferred_element_type=jnp.float32) + b2[...]
    x = x + h2

  # --- 4) final LayerNorm on CLS rows + classification head ------------------
  # LN is per-token, so applying it only to the CLS rows == LN over all tokens
  # followed by x[:, 0].
  cls_tok = jnp.concatenate([x[b * S:b * S + 1, :] for b in range(B)], axis=0)
  yf = _layernorm(cls_tok, enc_lnw_ref[...], enc_lnb_ref[...])
  o_ref[...] = (jnp.dot(yf, hw_ref[...], preferred_element_type=jnp.float32)
                + hb_ref[...])


# --- wrapper ------------------------------------------------------------------
def _pack_layer(layer):
  """Repackage one layer's params: split QKV / out-proj per head (leading axis)."""
  (ln1w, ln1b, qkvw, qkvb, ow, ob, ln2w, ln2b, w1, b1, w2, b2) = layer
  D, H = HIDDEN_DIM, NUM_HEADS
  hd = D // H
  wq, wk, wv = qkvw[:, :D], qkvw[:, D:2 * D], qkvw[:, 2 * D:]
  bq, bk, bv = qkvb[:, :D], qkvb[:, D:2 * D], qkvb[:, 2 * D:]
  to_hw = lambda w: w.reshape(D, H, hd).transpose(1, 0, 2)   # (H, D, hd)
  to_hb = lambda b: b.reshape(1, H, hd).transpose(1, 0, 2)   # (H, 1, hd)
  wo = ow.reshape(H, hd, D)                                  # (H, hd, D)
  return (ln1w, ln1b, to_hw(wq), to_hb(bq), to_hw(wk), to_hb(bk),
          to_hw(wv), to_hb(bv), wo, ob, ln2w, ln2b, w1, b1, w2, b2)


def vit_forward(x, params):
  n, c, h, w = x.shape
  p = PATCH_SIZE
  nh, nw = h // p, w // p
  # conv(k=p, stride=p) == per-patch linear projection: patch extraction (glue)
  patches = (x.reshape(n, c, nh, p, nw, p)
               .transpose(0, 2, 4, 1, 3, 5)          # (N, nh, nw, C, p, p)
               .reshape(n * nh * nw, c * p * p))
  wmat = params["conv_w"].reshape(HIDDEN_DIM, c * p * p).T   # (C*p*p, D)
  pb = params["conv_b"].reshape(1, HIDDEN_DIM)
  cls2d = params["class_token"].reshape(1, HIDDEN_DIM)
  pos2d = params["pos_embedding"].reshape(SEQ_LEN, HIDDEN_DIM)

  inputs = [patches, wmat, pb, cls2d, pos2d]
  for layer in params["layers"]:
    inputs.extend(_pack_layer(layer))
  inputs.extend([params["enc_ln_w"], params["enc_ln_b"],
                 params["head_w"], params["head_b"]])

  kernel = functools.partial(vit_kernel, batch=n)
  # Single invocation (no grid): every operand is a whole-array VMEM block,
  # weights are copied in exactly once, only the (B, C) logits go back to HBM.
  return pl.pallas_call(
      kernel,
      out_shape=jax.ShapeDtypeStruct((n, NUM_CLASSES), jnp.float32),
      scratch_shapes=[pltpu.VMEM((n * SEQ_LEN, HIDDEN_DIM), jnp.float32)],
  )(*inputs)


# --- deterministic parameter construction ------------------------------------
def init_params(key):
  D, P, C = HIDDEN_DIM, PATCH_SIZE, NUM_CLASSES
  S = SEQ_LEN
  ks = iter(jax.random.split(key, 8 + 12 * NUM_LAYERS))

  def nrm(shape, std):
    return jax.random.normal(next(ks), shape, jnp.float32) * std

  fan_in = 3 * P * P
  params = {
      "conv_w": nrm((D, 3, P, P), math.sqrt(1.0 / fan_in)),
      "conv_b": jnp.zeros((D,), jnp.float32),
      "class_token": jnp.zeros((1, 1, D), jnp.float32),
      "pos_embedding": nrm((1, S, D), 0.02),
      "enc_ln_w": jnp.ones((1, D), jnp.float32),
      "enc_ln_b": jnp.zeros((1, D), jnp.float32),
      # head weights stored pre-transposed as (D, C)
      "head_w": nrm((D, C), math.sqrt(1.0 / D)),
      "head_b": jnp.zeros((1, C), jnp.float32),
      "layers": [],
  }
  for _ in range(NUM_LAYERS):
    layer = (
        jnp.ones((1, D), jnp.float32),                       # ln1 weight
        jnp.zeros((1, D), jnp.float32),                      # ln1 bias
        nrm((D, 3 * D), math.sqrt(1.0 / D)),                 # in_proj W^T (D, 3D)
        nrm((1, 3 * D), 1e-6),                               # in_proj bias
        nrm((D, D), math.sqrt(1.0 / D)),                     # out_proj W^T
        jnp.zeros((1, D), jnp.float32),                      # out_proj bias
        jnp.ones((1, D), jnp.float32),                       # ln2 weight
        jnp.zeros((1, D), jnp.float32),                      # ln2 bias
        nrm((D, MLP_DIM), math.sqrt(2.0 / (D + MLP_DIM))),   # mlp fc1 W^T
        nrm((1, MLP_DIM), 1e-6),                             # mlp fc1 bias
        nrm((MLP_DIM, D), math.sqrt(2.0 / (D + MLP_DIM))),   # mlp fc2 W^T
        nrm((1, D), 1e-6),                                   # mlp fc2 bias
    )
    params["layers"].append(layer)
  return params


if __name__ == "__main__":
  key = jax.random.PRNGKey(0)
  pkey, xkey = jax.random.split(key)
  params = init_params(pkey)
  x = jax.random.normal(
      xkey, (BATCH, 3, IMAGE_SIZE, IMAGE_SIZE), dtype=jnp.float32
  )

  logits = jax.jit(lambda inp: vit_forward(inp, params))(x)
  logits = jax.block_until_ready(logits)

  assert logits.shape == (BATCH, NUM_CLASSES), logits.shape
  assert jnp.all(jnp.isfinite(logits))
  print("KERNEL_OK")
</pallas_src>

<mosaic_0001>
module attributes {stable_mosaic.version = 11 : i64} {
  func.func @vit_kernel(%arg0: memref<8x192xf32, #tpu.memory_space<vmem>>, %arg1: memref<192x32xf32, #tpu.memory_space<vmem>>, %arg2: memref<1x32xf32, #tpu.memory_space<vmem>>, %arg3: memref<1x32xf32, #tpu.memory_space<vmem>>, %arg4: memref<5x32xf32, #tpu.memory_space<vmem>>, %arg5: memref<1x32xf32, #tpu.memory_space<vmem>>, %arg6: memref<1x32xf32, #tpu.memory_space<vmem>>, %arg7: memref<2x32x16xf32, #tpu.memory_space<vmem>>, %arg8: memref<2x1x16xf32, #tpu.memory_space<vmem>>, %arg9: memref<2x32x16xf32, #tpu.memory_space<vmem>>, %arg10: memref<2x1x16xf32, #tpu.memory_space<vmem>>, %arg11: memref<2x32x16xf32, #tpu.memory_space<vmem>>, %arg12: memref<2x1x16xf32, #tpu.memory_space<vmem>>, %arg13: memref<2x16x32xf32, #tpu.memory_space<vmem>>, %arg14: memref<1x32xf32, #tpu.memory_space<vmem>>, %arg15: memref<1x32xf32, #tpu.memory_space<vmem>>, %arg16: memref<1x32xf32, #tpu.memory_space<vmem>>, %arg17: memref<32x64xf32, #tpu.memory_space<vmem>>, %arg18: memref<1x64xf32, #tpu.memory_space<vmem>>, %arg19: memref<64x32xf32, #tpu.memory_space<vmem>>, %arg20: memref<1x32xf32, #tpu.memory_space<vmem>>, %arg21: memref<1x32xf32, #tpu.memory_space<vmem>>, %arg22: memref<1x32xf32, #tpu.memory_space<vmem>>, %arg23: memref<2x32x16xf32, #tpu.memory_space<vmem>>, %arg24: memref<2x1x16xf32, #tpu.memory_space<vmem>>, %arg25: memref<2x32x16xf32, #tpu.memory_space<vmem>>, %arg26: memref<2x1x16xf32, #tpu.memory_space<vmem>>, %arg27: memref<2x32x16xf32, #tpu.memory_space<vmem>>, %arg28: memref<2x1x16xf32, #tpu.memory_space<vmem>>, %arg29: memref<2x16x32xf32, #tpu.memory_space<vmem>>, %arg30: memref<1x32xf32, #tpu.memory_space<vmem>>, %arg31: memref<1x32xf32, #tpu.memory_space<vmem>>, %arg32: memref<1x32xf32, #tpu.memory_space<vmem>>, %arg33: memref<32x64xf32, #tpu.memory_space<vmem>>, %arg34: memref<1x64xf32, #tpu.memory_space<vmem>>, %arg35: memref<64x32xf32, #tpu.memory_space<vmem>>, %arg36: memref<1x32xf32, #tpu.memory_space<vmem>>, %arg37: memref<1x32xf32, #tpu.memory_space<vmem>>, %arg38: memref<1x32xf32, #tpu.memory_space<vmem>>, %arg39: memref<32x10xf32, #tpu.memory_space<vmem>>, %arg40: memref<1x10xf32, #tpu.memory_space<vmem>>, %arg41: memref<2x10xf32, #tpu.memory_space<vmem>>, %arg42: memref<10x32xf32, #tpu.memory_space<vmem>>) attributes {dimension_semantics = [], scalar_prefetch = 0 : i64, scratch_operands = 1 : i64, tpu.core_type = #tpu.core_type<tc>} {
    %c0 = arith.constant 0 : index
    %c0_0 = arith.constant 0 : index
    %0 = vector.load %arg0[%c0, %c0_0] : memref<8x192xf32, #tpu.memory_space<vmem>>, vector<8x192xf32>
    %c0_1 = arith.constant 0 : index
    %c0_2 = arith.constant 0 : index
    %1 = vector.load %arg1[%c0_1, %c0_2] : memref<192x32xf32, #tpu.memory_space<vmem>>, vector<192x32xf32>
    %cst = arith.constant dense<0.000000e+00> : vector<8x32xf32>
    %2 = tpu.matmul %0, %1, %cst {dimension_numbers = #tpu.dot_dimension_numbers<[1], [0], [0], [1], [0, 0, 1, 1], [], []>} : vector<8x192xf32>, vector<192x32xf32>, vector<8x32xf32> -> vector<8x32xf32>
    %c0_3 = arith.constant 0 : index
    %c0_4 = arith.constant 0 : index
    %3 = vector.load %arg2[%c0_3, %c0_4] : memref<1x32xf32, #tpu.memory_space<vmem>>, vector<1x32xf32>
    %4 = vector.broadcast %3 : vector<1x32xf32> to vector<8x32xf32>
    %5 = arith.addf %2, %4 : vector<8x32xf32>
    %c0_5 = arith.constant 0 : index
    %c0_6 = arith.constant 0 : index
    %6 = vector.load %arg4[%c0_5, %c0_6] : memref<5x32xf32, #tpu.memory_space<vmem>>, vector<5x32xf32>
    %c0_7 = arith.constant 0 : index
    %c0_8 = arith.constant 0 : index
    %7 = vector.load %arg3[%c0_7, %c0_8] : memref<1x32xf32, #tpu.memory_space<vmem>>, vector<1x32xf32>
    %8 = vector.extract_strided_slice %6 {offsets = [0, 0], sizes = [1, 32], strides = [1, 1]} : vector<5x32xf32> to vector<1x32xf32>
    %9 = arith.addf %7, %8 : vector<1x32xf32>
    %c0_9 = arith.constant 0 : index
    %c0_10 = arith.constant 0 : index
    %10 = vector.load %arg42[%c0_9, %c0_10] : memref<10x32xf32, #tpu.memory_space<vmem>>, vector<1x32xf32>
    tpu.vector_store %arg42[%c0_9, %c0_10], %9 {strides = array<i32>} : memref<10x32xf32, #tpu.memory_space<vmem>>, vector<1x32xf32>,
    %11 = vector.extract_strided_slice %5 {offsets = [0, 0], sizes = [4, 32], strides = [1, 1]} : vector<8x32xf32> to vector<4x32xf32>
    %12 = vector.extract_strided_slice %6 {offsets = [1, 0], sizes = [4, 32], strides = [1, 1]} : vector<5x32xf32> to vector<4x32xf32>
    %13 = arith.addf %11, %12 : vector<4x32xf32>
    %c1 = arith.constant 1 : index
    %c0_11 = arith.constant 0 : index
    %14 = vector.load %arg42[%c1, %c0_11] : memref<10x32xf32, #tpu.memory_space<vmem>>, vector<4x32xf32>
    tpu.vector_store %arg42[%c1, %c0_11], %13 {strides = array<i32>} : memref<10x32xf32, #tpu.memory_space<vmem>>, vector<4x32xf32>,
    %15 = vector.extract_strided_slice %6 {offsets = [0, 0], sizes = [1, 32], strides = [1, 1]} : vector<5x32xf32> to vector<1x32xf32>
    %16 = arith.addf %7, %15 : vector<1x32xf32>
    %c5 = arith.constant 5 : index
    %c0_12 = arith.constant 0 : index
    %17 = vector.load %arg42[%c5, %c0_12] : memref<10x32xf32, #tpu.memory_space<vmem>>, vector<1x32xf32>
    tpu.vector_store %arg42[%c5, %c0_12], %16 {strides = array<i32>} : memref<10x32xf32, #tpu.memory_space<vmem>>, vector<1x32xf32>,
    %18 = vector.extract_strided_slice %5 {offsets = [4, 0], sizes = [4, 32], strides = [1, 1]} : vector<8x32xf32> to vector<4x32xf32>
    %19 = vector.extract_strided_slice %6 {offsets = [1, 0], sizes = [4, 32], strides = [1, 1]} : vector<5x32xf32> to vector<4x32xf32>
    %20 = arith.addf %18, %19 : vector<4x32xf32>
    %c6 = arith.constant 6 : index
    %c0_13 = arith.constant 0 : index
    %21 = vector.load %arg42[%c6, %c0_13] : memref<10x32xf32, #tpu.memory_space<vmem>>, vector<4x32xf32>
    tpu.vector_store %arg42[%c6, %c0_13], %20 {strides = array<i32>} : memref<10x32xf32, #tpu.memory_space<vmem>>, vector<4x32xf32>,
    %c0_14 = arith.constant 0 : index
    %c0_15 = arith.constant 0 : index
    %22 = vector.load %arg42[%c0_14, %c0_15] : memref<10x32xf32, #tpu.memory_space<vmem>>, vector<10x32xf32>
    %c0_16 = arith.constant 0 : index
    %c0_17 = arith.constant 0 : index
    %23 = vector.load %arg5[%c0_16, %c0_17] : memref<1x32xf32, #tpu.memory_space<vmem>>, vector<1x32xf32>
    %c0_18 = arith.constant 0 : index
    %c0_19 = arith.constant 0 : index
    %24 = vector.load %arg6[%c0_18, %c0_19] : memref<1x32xf32, #tpu.memory_space<vmem>>, vector<1x32xf32>
    %cst_20 = arith.constant dense<0.000000e+00> : vector<10xf32>
    %25 = vector.multi_reduction <add>, %22, %cst_20 [1] : vector<10x32xf32> to vector<10xf32>
    %26 = vector.shape_cast %25 : vector<10xf32> to vector<10x1xf32>
    %cst_21 = arith.constant 3.200000e+01 : f32
    %27 = vector.broadcast %cst_21 : f32 to vector<10x1xf32>
    %28 = arith.divf %26, %27 : vector<10x1xf32>
    %29 = vector.broadcast %28 : vector<10x1xf32> to vector<10x32xf32>
    %30 = arith.subf %22, %29 : vector<10x32xf32>
    %31 = arith.mulf %30, %30 : vector<10x32xf32>
    %cst_22 = arith.constant dense<0.000000e+00> : vector<10xf32>
    %32 = vector.multi_reduction <add>, %31, %cst_22 [1] : vector<10x32xf32> to vector<10xf32>
    %33 = vector.shape_cast %32 : vector<10xf32> to vector<10x1xf32>
    %cst_23 = arith.constant 3.200000e+01 : f32
    %34 = vector.broadcast %cst_23 : f32 to vector<10x1xf32>
    %35 = arith.divf %33, %34 : vector<10x1xf32>
    %cst_24 = arith.constant 9.99999997E-7 : f32
    %36 = vector.broadcast %cst_24 : f32 to vector<10x1xf32>
    %37 = arith.addf %35, %36 : vector<10x1xf32>
    %38 = math.rsqrt %37 : vector<10x1xf32>
    %39 = vector.broadcast %38 : vector<10x1xf32> to vector<10x32xf32>
    %40 = arith.mulf %30, %39 : vector<10x32xf32>
    %41 = vector.broadcast %23 : vector<1x32xf32> to vector<10x32xf32>
    %42 = arith.mulf %40, %41 : vector<10x32xf32>
    %43 = vector.broadcast %24 : vector<1x32xf32> to vector<10x32xf32>
    %44 = arith.addf %42, %43 : vector<10x32xf32>
    %c0_25 = arith.constant 0 : index
    %c0_26 = arith.constant 0 : index
    %45 = vector.load %arg14[%c0_25, %c0_26] : memref<1x32xf32, #tpu.memory_space<vmem>>, vector<1x32xf32>
    %46 = vector.broadcast %45 : vector<1x32xf32> to vector<10x32xf32>
    %47 = arith.addf %22, %46 : vector<10x32xf32>
    %c0_27 = arith.constant 0 : index
    %c0_28 = arith.constant 0 : index
    %48 = vector.load %arg42[%c0_27, %c0_28] : memref<10x32xf32, #tpu.memory_space<vmem>>, vector<10x32xf32>
    tpu.vector_store %arg42[%c0_27, %c0_28], %47 {strides = array<i32>} : memref<10x32xf32, #tpu.memory_space<vmem>>, vector<10x32xf32>,
    %c0_29 = arith.constant 0 : index
    %c0_30 = arith.constant 0 : index
    %c0_31 = arith.constant 0 : index
    %49 = vector.load %arg7[%c0_29, %c0_30, %c0_31] : memref<2x32x16xf32, #tpu.memory_space<vmem>>, vector<1x32x16xf32>
    %50 = vector.shape_cast %49 : vector<1x32x16xf32> to vector<32x16xf32>
    %cst_32 = arith.constant dense<0.000000e+00> : vector<10x16xf32>
    %51 = tpu.matmul %44, %50, %cst_32 {dimension_numbers = #tpu.dot_dimension_numbers<[1], [0], [0], [1], [0, 0, 1, 1], [], []>} : vector<10x32xf32>, vector<32x16xf32>, vector<10x16xf32> -> vector<10x16xf32>
    %c0_33 = arith.constant 0 : index
    %c0_34 = arith.constant 0 : index
    %c0_35 = arith.constant 0 : index
    %52 = vector.load %arg8[%c0_33, %c0_34, %c0_35] : memref<2x1x16xf32, #tpu.memory_space<vmem>>, vector<1x1x16xf32>
    %53 = vector.shape_cast %52 : vector<1x1x16xf32> to vector<1x16xf32>
    %54 = vector.broadcast %53 : vector<1x16xf32> to vector<10x16xf32>
    %55 = arith.addf %51, %54 : vector<10x16xf32>
    %cst_36 = arith.constant 2.500000e-01 : f32
    %56 = vector.broadcast %cst_36 : f32 to vector<10x16xf32>
    %57 = arith.mulf %55, %56 : vector<10x16xf32>
    %c0_37 = arith.constant 0 : index
    %c0_38 = arith.constant 0 : index
    %c0_39 = arith.constant 0 : index
    %58 = vector.load %arg9[%c0_37, %c0_38, %c0_39] : memref<2x32x16xf32, #tpu.memory_space<vmem>>, vector<1x32x16xf32>
    %59 = vector.shape_cast %58 : vector<1x32x16xf32> to vector<32x16xf32>
    %cst_40 = arith.constant dense<0.000000e+00> : vector<10x16xf32>
    %60 = tpu.matmul %44, %59, %cst_40 {dimension_numbers = #tpu.dot_dimension_numbers<[1], [0], [0], [1], [0, 0, 1, 1], [], []>} : vector<10x32xf32>, vector<32x16xf32>, vector<10x16xf32> -> vector<10x16xf32>
    %c0_41 = arith.constant 0 : index
    %c0_42 = arith.constant 0 : index
    %c0_43 = arith.constant 0 : index
    %61 = vector.load %arg10[%c0_41, %c0_42, %c0_43] : memref<2x1x16xf32, #tpu.memory_space<vmem>>, vector<1x1x16xf32>
    %62 = vector.shape_cast %61 : vector<1x1x16xf32> to vector<1x16xf32>
    %63 = vector.broadcast %62 : vector<1x16xf32> to vector<10x16xf32>
    %64 = arith.addf %60, %63 : vector<10x16xf32>
    %c0_44 = arith.constant 0 : index
    %c0_45 = arith.constant 0 : index
    %c0_46 = arith.constant 0 : index
    %65 = vector.load %arg11[%c0_44, %c0_45, %c0_46] : memref<2x32x16xf32, #tpu.memory_space<vmem>>, vector<1x32x16xf32>
    %66 = vector.shape_cast %65 : vector<1x32x16xf32> to vector<32x16xf32>
    %cst_47 = arith.constant dense<0.000000e+00> : vector<10x16xf32>
    %67 = tpu.matmul %44, %66, %cst_47 {dimension_numbers = #tpu.dot_dimension_numbers<[1], [0], [0], [1], [0, 0, 1, 1], [], []>} : vector<10x32xf32>, vector<32x16xf32>, vector<10x16xf32> -> vector<10x16xf32>
    %c0_48 = arith.constant 0 : index
    %c0_49 = arith.constant 0 : index
    %c0_50 = arith.constant 0 : index
    %68 = vector.load %arg12[%c0_48, %c0_49, %c0_50] : memref<2x1x16xf32, #tpu.memory_space<vmem>>, vector<1x1x16xf32>
    %69 = vector.shape_cast %68 : vector<1x1x16xf32> to vector<1x16xf32>
    %70 = vector.broadcast %69 : vector<1x16xf32> to vector<10x16xf32>
    %71 = arith.addf %67, %70 : vector<10x16xf32>
    %72 = vector.extract_strided_slice %57 {offsets = [0, 0], sizes = [5, 16], strides = [1, 1]} : vector<10x16xf32> to vector<5x16xf32>
    %73 = vector.extract_strided_slice %64 {offsets = [0, 0], sizes = [5, 16], strides = [1, 1]} : vector<10x16xf32> to vector<5x16xf32>
    %74 = vector.extract_strided_slice %71 {offsets = [0, 0], sizes = [5, 16], strides = [1, 1]} : vector<10x16xf32> to vector<5x16xf32>
    %cst_51 = arith.constant dense<0.000000e+00> : vector<5x5xf32>
    %75 = tpu.matmul %72, %73, %cst_51 {dimension_numbers = #tpu.dot_dimension_numbers<[1], [1], [0], [0], [0, 0, 1, 0], [], []>} : vector<5x16xf32>, vector<5x16xf32>, vector<5x5xf32> -> vector<5x5xf32>
    %cst_52 = arith.constant dense<0xFF800000> : vector<5xf32>
    %76 = vector.multi_reduction <maximumf>, %75, %cst_52 [1] : vector<5x5xf32> to vector<5xf32>
    %77 = vector.shape_cast %76 : vector<5xf32> to vector<5x1xf32>
    %78 = vector.broadcast %77 : vector<5x1xf32> to vector<5x5xf32>
    %79 = arith.subf %75, %78 : vector<5x5xf32>
    %80 = math.exp %79 : vector<5x5xf32>
    %cst_53 = arith.constant dense<0.000000e+00> : vector<5xf32>
    %81 = vector.multi_reduction <add>, %80, %cst_53 [1] : vector<5x5xf32> to vector<5xf32>
    %82 = vector.shape_cast %81 : vector<5xf32> to vector<5x1xf32>
    %83 = tpu.reciprocal %82 {approx = true} : vector<5x1xf32> -> vector<5x1xf32>
    %84 = vector.broadcast %83 : vector<5x1xf32> to vector<5x5xf32>
    %85 = arith.mulf %80, %84 : vector<5x5xf32>
    %cst_54 = arith.constant dense<0.000000e+00> : vector<5x16xf32>
    %86 = tpu.matmul %85, %74, %cst_54 {dimension_numbers = #tpu.dot_dimension_numbers<[1], [0], [0], [1], [0, 0, 1, 1], [], []>} : vector<5x5xf32>, vector<5x16xf32>, vector<5x16xf32> -> vector<5x16xf32>
    %c0_55 = arith.constant 0 : index
    %c0_56 = arith.constant 0 : index
    %87 = vector.load %arg42[%c0_55, %c0_56] : memref<10x32xf32, #tpu.memory_space<vmem>>, vector<5x32xf32>
    %c0_57 = arith.constant 0 : index
    %c0_58 = arith.constant 0 : index
    %c0_59 = arith.constant 0 : index
    %88 = vector.load %arg13[%c0_57, %c0_58, %c0_59] : memref<2x16x32xf32, #tpu.memory_space<vmem>>, vector<1x16x32xf32>
    %89 = vector.shape_cast %88 : vector<1x16x32xf32> to vector<16x32xf32>
    %cst_60 = arith.constant dense<0.000000e+00> : vector<5x32xf32>
    %90 = tpu.matmul %86, %89, %cst_60 {dimension_numbers = #tpu.dot_dimension_numbers<[1], [0], [0], [1], [0, 0, 1, 1], [], []>} : vector<5x16xf32>, vector<16x32xf32>, vector<5x32xf32> -> vector<5x32xf32>
    %91 = arith.addf %87, %90 : vector<5x32xf32>
    %c0_61 = arith.constant 0 : index
    %c0_62 = arith.constant 0 : index
    %92 = vector.load %arg42[%c0_61, %c0_62] : memref<10x32xf32, #tpu.memory_space<vmem>>, vector<5x32xf32>
    tpu.vector_store %arg42[%c0_61, %c0_62], %91 {strides = array<i32>} : memref<10x32xf32, #tpu.memory_space<vmem>>, vector<5x32xf32>,
    %93 = vector.extract_strided_slice %57 {offsets = [5, 0], sizes = [5, 16], strides = [1, 1]} : vector<10x16xf32> to vector<5x16xf32>
    %94 = vector.extract_strided_slice %64 {offsets = [5, 0], sizes = [5, 16], strides = [1, 1]} : vector<10x16xf32> to vector<5x16xf32>
    %95 = vector.extract_strided_slice %71 {offsets = [5, 0], sizes = [5, 16], strides = [1, 1]} : vector<10x16xf32> to vector<5x16xf32>
    %cst_63 = arith.constant dense<0.000000e+00> : vector<5x5xf32>
    %96 = tpu.matmul %93, %94, %cst_63 {dimension_numbers = #tpu.dot_dimension_numbers<[1], [1], [0], [0], [0, 0, 1, 0], [], []>} : vector<5x16xf32>, vector<5x16xf32>, vector<5x5xf32> -> vector<5x5xf32>
    %cst_64 = arith.constant dense<0xFF800000> : vector<5xf32>
    %97 = vector.multi_reduction <maximumf>, %96, %cst_64 [1] : vector<5x5xf32> to vector<5xf32>
    %98 = vector.shape_cast %97 : vector<5xf32> to vector<5x1xf32>
    %99 = vector.broadcast %98 : vector<5x1xf32> to vector<5x5xf32>
    %100 = arith.subf %96, %99 : vector<5x5xf32>
    %101 = math.exp %100 : vector<5x5xf32>
    %cst_65 = arith.constant dense<0.000000e+00> : vector<5xf32>
    %102 = vector.multi_reduction <add>, %101, %cst_65 [1] : vector<5x5xf32> to vector<5xf32>
    %103 = vector.shape_cast %102 : vector<5xf32> to vector<5x1xf32>
    %104 = tpu.reciprocal %103 {approx = true} : vector<5x1xf32> -> vector<5x1xf32>
    %105 = vector.broadcast %104 : vector<5x1xf32> to vector<5x5xf32>
    %106 = arith.mulf %101, %105 : vector<5x5xf32>
    %cst_66 = arith.constant dense<0.000000e+00> : vector<5x16xf32>
    %107 = tpu.matmul %106, %95, %cst_66 {dimension_numbers = #tpu.dot_dimension_numbers<[1], [0], [0], [1], [0, 0, 1, 1], [], []>} : vector<5x5xf32>, vector<5x16xf32>, vector<5x16xf32> -> vector<5x16xf32>
    %c5_67 = arith.constant 5 : index
    %c0_68 = arith.constant 0 : index
    %108 = vector.load %arg42[%c5_67, %c0_68] : memref<10x32xf32, #tpu.memory_space<vmem>>, vector<5x32xf32>
    %c0_69 = arith.constant 0 : index
    %c0_70 = arith.constant 0 : index
    %c0_71 = arith.constant 0 : index
    %109 = vector.load %arg13[%c0_69, %c0_70, %c0_71] : memref<2x16x32xf32, #tpu.memory_space<vmem>>, vector<1x16x32xf32>
    %110 = vector.shape_cast %109 : vector<1x16x32xf32> to vector<16x32xf32>
    %cst_72 = arith.constant dense<0.000000e+00> : vector<5x32xf32>
    %111 = tpu.matmul %107, %110, %cst_72 {dimension_numbers = #tpu.dot_dimension_numbers<[1], [0], [0], [1], [0, 0, 1, 1], [], []>} : vector<5x16xf32>, vector<16x32xf32>, vector<5x32xf32> -> vector<5x32xf32>
    %112 = arith.addf %108, %111 : vector<5x32xf32>
    %c5_73 = arith.constant 5 : index
    %c0_74 = arith.constant 0 : index
    %113 = vector.load %arg42[%c5_73, %c0_74] : memref<10x32xf32, #tpu.memory_space<vmem>>, vector<5x32xf32>
    tpu.vector_store %arg42[%c5_73, %c0_74], %112 {strides = array<i32>} : memref<10x32xf32, #tpu.memory_space<vmem>>, vector<5x32xf32>,
    %c1_75 = arith.constant 1 : index
    %c0_76 = arith.constant 0 : index
    %c0_77 = arith.constant 0 : index
    %114 = vector.load %arg7[%c1_75, %c0_76, %c0_77] : memref<2x32x16xf32, #tpu.memory_space<vmem>>, vector<1x32x16xf32>
    %115 = vector.shape_cast %114 : vector<1x32x16xf32> to vector<32x16xf32>
    %cst_78 = arith.constant dense<0.000000e+00> : vector<10x16xf32>
    %116 = tpu.matmul %44, %115, %cst_78 {dimension_numbers = #tpu.dot_dimension_numbers<[1], [0], [0], [1], [0, 0, 1, 1], [], []>} : vector<10x32xf32>, vector<32x16xf32>, vector<10x16xf32> -> vector<10x16xf32>
    %c1_79 = arith.constant 1 : index
    %c0_80 = arith.constant 0 : index
    %c0_81 = arith.constant 0 : index
    %117 = vector.load %arg8[%c1_79, %c0_80, %c0_81] : memref<2x1x16xf32, #tpu.memory_space<vmem>>, vector<1x1x16xf32>
    %118 = vector.shape_cast %117 : vector<1x1x16xf32> to vector<1x16xf32>
    %119 = vector.broadcast %118 : vector<1x16xf32> to vector<10x16xf32>
    %120 = arith.addf %116, %119 : vector<10x16xf32>
    %cst_82 = arith.constant 2.500000e-01 : f32
    %121 = vector.broadcast %cst_82 : f32 to vector<10x16xf32>
    %122 = arith.mulf %120, %121 : vector<10x16xf32>
    %c1_83 = arith.constant 1 : index
    %c0_84 = arith.constant 0 : index
    %c0_85 = arith.constant 0 : index
    %123 = vector.load %arg9[%c1_83, %c0_84, %c0_85] : memref<2x32x16xf32, #tpu.memory_space<vmem>>, vector<1x32x16xf32>
    %124 = vector.shape_cast %123 : vector<1x32x16xf32> to vector<32x16xf32>
    %cst_86 = arith.constant dense<0.000000e+00> : vector<10x16xf32>
    %125 = tpu.matmul %44, %124, %cst_86 {dimension_numbers = #tpu.dot_dimension_numbers<[1], [0], [0], [1], [0, 0, 1, 1], [], []>} : vector<10x32xf32>, vector<32x16xf32>, vector<10x16xf32> -> vector<10x16xf32>
    %c1_87 = arith.constant 1 : index
    %c0_88 = arith.constant 0 : index
    %c0_89 = arith.constant 0 : index
    %126 = vector.load %arg10[%c1_87, %c0_88, %c0_89] : memref<2x1x16xf32, #tpu.memory_space<vmem>>, vector<1x1x16xf32>
    %127 = vector.shape_cast %126 : vector<1x1x16xf32> to vector<1x16xf32>
    %128 = vector.broadcast %127 : vector<1x16xf32> to vector<10x16xf32>
    %129 = arith.addf %125, %128 : vector<10x16xf32>
    %c1_90 = arith.constant 1 : index
    %c0_91 = arith.constant 0 : index
    %c0_92 = arith.constant 0 : index
    %130 = vector.load %arg11[%c1_90, %c0_91, %c0_92] : memref<2x32x16xf32, #tpu.memory_space<vmem>>, vector<1x32x16xf32>
    %131 = vector.shape_cast %130 : vector<1x32x16xf32> to vector<32x16xf32>
    %cst_93 = arith.constant dense<0.000000e+00> : vector<10x16xf32>
    %132 = tpu.matmul %44, %131, %cst_93 {dimension_numbers = #tpu.dot_dimension_numbers<[1], [0], [0], [1], [0, 0, 1, 1], [], []>} : vector<10x32xf32>, vector<32x16xf32>, vector<10x16xf32> -> vector<10x16xf32>
    %c1_94 = arith.constant 1 : index
    %c0_95 = arith.constant 0 : index
    %c0_96 = arith.constant 0 : index
    %133 = vector.load %arg12[%c1_94, %c0_95, %c0_96] : memref<2x1x16xf32, #tpu.memory_space<vmem>>, vector<1x1x16xf32>
    %134 = vector.shape_cast %133 : vector<1x1x16xf32> to vector<1x16xf32>
    %135 = vector.broadcast %134 : vector<1x16xf32> to vector<10x16xf32>
    %136 = arith.addf %132, %135 : vector<10x16xf32>
    %137 = vector.extract_strided_slice %122 {offsets = [0, 0], sizes = [5, 16], strides = [1, 1]} : vector<10x16xf32> to vector<5x16xf32>
    %138 = vector.extract_strided_slice %129 {offsets = [0, 0], sizes = [5, 16], strides = [1, 1]} : vector<10x16xf32> to vector<5x16xf32>
    %139 = vector.extract_strided_slice %136 {offsets = [0, 0], sizes = [5, 16], strides = [1, 1]} : vector<10x16xf32> to vector<5x16xf32>
    %cst_97 = arith.constant dense<0.000000e+00> : vector<5x5xf32>
    %140 = tpu.matmul %137, %138, %cst_97 {dimension_numbers = #tpu.dot_dimension_numbers<[1], [1], [0], [0], [0, 0, 1, 0], [], []>} : vector<5x16xf32>, vector<5x16xf32>, vector<5x5xf32> -> vector<5x5xf32>
    %cst_98 = arith.constant dense<0xFF800000> : vector<5xf32>
    %141 = vector.multi_reduction <maximumf>, %140, %cst_98 [1] : vector<5x5xf32> to vector<5xf32>
    %142 = vector.shape_cast %141 : vector<5xf32> to vector<5x1xf32>
    %143 = vector.broadcast %142 : vector<5x1xf32> to vector<5x5xf32>
    %144 = arith.subf %140, %143 : vector<5x5xf32>
    %145 = math.exp %144 : vector<5x5xf32>
    %cst_99 = arith.constant dense<0.000000e+00> : vector<5xf32>
    %146 = vector.multi_reduction <add>, %145, %cst_99 [1] : vector<5x5xf32> to vector<5xf32>
    %147 = vector.shape_cast %146 : vector<5xf32> to vector<5x1xf32>
    %148 = tpu.reciprocal %147 {approx = true} : vector<5x1xf32> -> vector<5x1xf32>
    %149 = vector.broadcast %148 : vector<5x1xf32> to vector<5x5xf32>
    %150 = arith.mulf %145, %149 : vector<5x5xf32>
    %cst_100 = arith.constant dense<0.000000e+00> : vector<5x16xf32>
    %151 = tpu.matmul %150, %139, %cst_100 {dimension_numbers = #tpu.dot_dimension_numbers<[1], [0], [0], [1], [0, 0, 1, 1], [], []>} : vector<5x5xf32>, vector<5x16xf32>, vector<5x16xf32> -> vector<5x16xf32>
    %c0_101 = arith.constant 0 : index
    %c0_102 = arith.constant 0 : index
    %152 = vector.load %arg42[%c0_101, %c0_102] : memref<10x32xf32, #tpu.memory_space<vmem>>, vector<5x32xf32>
    %c1_103 = arith.constant 1 : index
    %c0_104 = arith.constant 0 : index
    %c0_105 = arith.constant 0 : index
    %153 = vector.load %arg13[%c1_103, %c0_104, %c0_105] : memref<2x16x32xf32, #tpu.memory_space<vmem>>, vector<1x16x32xf32>
    %154 = vector.shape_cast %153 : vector<1x16x32xf32> to vector<16x32xf32>
    %cst_106 = arith.constant dense<0.000000e+00> : vector<5x32xf32>
    %155 = tpu.matmul %151, %154, %cst_106 {dimension_numbers = #tpu.dot_dimension_numbers<[1], [0], [0], [1], [0, 0, 1, 1], [], []>} : vector<5x16xf32>, vector<16x32xf32>, vector<5x32xf32> -> vector<5x32xf32>
    %156 = arith.addf %152, %155 : vector<5x32xf32>
    %c0_107 = arith.constant 0 : index
    %c0_108 = arith.constant 0 : index
    %157 = vector.load %arg42[%c0_107, %c0_108] : memref<10x32xf32, #tpu.memory_space<vmem>>, vector<5x32xf32>
    tpu.vector_store %arg42[%c0_107, %c0_108], %156 {strides = array<i32>} : memref<10x32xf32, #tpu.memory_space<vmem>>, vector<5x32xf32>,
    %158 = vector.extract_strided_slice %122 {offsets = [5, 0], sizes = [5, 16], strides = [1, 1]} : vector<10x16xf32> to vector<5x16xf32>
    %159 = vector.extract_strided_slice %129 {offsets = [5, 0], sizes = [5, 16], strides = [1, 1]} : vector<10x16xf32> to vector<5x16xf32>
    %160 = vector.extract_strided_slice %136 {offsets = [5, 0], sizes = [5, 16], strides = [1, 1]} : vector<10x16xf32> to vector<5x16xf32>
    %cst_109 = arith.constant dense<0.000000e+00> : vector<5x5xf32>
    %161 = tpu.matmul %158, %159, %cst_109 {dimension_numbers = #tpu.dot_dimension_numbers<[1], [1], [0], [0], [0, 0, 1, 0], [], []>} : vector<5x16xf32>, vector<5x16xf32>, vector<5x5xf32> -> vector<5x5xf32>
    %cst_110 = arith.constant dense<0xFF800000> : vector<5xf32>
    %162 = vector.multi_reduction <maximumf>, %161, %cst_110 [1] : vector<5x5xf32> to vector<5xf32>
    %163 = vector.shape_cast %162 : vector<5xf32> to vector<5x1xf32>
    %164 = vector.broadcast %163 : vector<5x1xf32> to vector<5x5xf32>
    %165 = arith.subf %161, %164 : vector<5x5xf32>
    %166 = math.exp %165 : vector<5x5xf32>
    %cst_111 = arith.constant dense<0.000000e+00> : vector<5xf32>
    %167 = vector.multi_reduction <add>, %166, %cst_111 [1] : vector<5x5xf32> to vector<5xf32>
    %168 = vector.shape_cast %167 : vector<5xf32> to vector<5x1xf32>
    %169 = tpu.reciprocal %168 {approx = true} : vector<5x1xf32> -> vector<5x1xf32>
    %170 = vector.broadcast %169 : vector<5x1xf32> to vector<5x5xf32>
    %171 = arith.mulf %166, %170 : vector<5x5xf32>
    %cst_112 = arith.constant dense<0.000000e+00> : vector<5x16xf32>
    %172 = tpu.matmul %171, %160, %cst_112 {dimension_numbers = #tpu.dot_dimension_numbers<[1], [0], [0], [1], [0, 0, 1, 1], [], []>} : vector<5x5xf32>, vector<5x16xf32>, vector<5x16xf32> -> vector<5x16xf32>
    %c5_113 = arith.constant 5 : index
    %c0_114 = arith.constant 0 : index
    %173 = vector.load %arg42[%c5_113, %c0_114] : memref<10x32xf32, #tpu.memory_space<vmem>>, vector<5x32xf32>
    %c1_115 = arith.constant 1 : index
    %c0_116 = arith.constant 0 : index
    %c0_117 = arith.constant 0 : index
    %174 = vector.load %arg13[%c1_115, %c0_116, %c0_117] : memref<2x16x32xf32, #tpu.memory_space<vmem>>, vector<1x16x32xf32>
    %175 = vector.shape_cast %174 : vector<1x16x32xf32> to vector<16x32xf32>
    %cst_118 = arith.constant dense<0.000000e+00> : vector<5x32xf32>
    %176 = tpu.matmul %172, %175, %cst_118 {dimension_numbers = #tpu.dot_dimension_numbers<[1], [0], [0], [1], [0, 0, 1, 1], [], []>} : vector<5x16xf32>, vector<16x32xf32>, vector<5x32xf32> -> vector<5x32xf32>
    %177 = arith.addf %173, %176 : vector<5x32xf32>
    %c5_119 = arith.constant 5 : index
    %c0_120 = arith.constant 0 : index
    %178 = vector.load %arg42[%c5_119, %c0_120] : memref<10x32xf32, #tpu.memory_space<vmem>>, vector<5x32xf32>
    tpu.vector_store %arg42[%c5_119, %c0_120], %177 {strides = array<i32>} : memref<10x32xf32, #tpu.memory_space<vmem>>, vector<5x32xf32>,
    %c0_121 = arith.constant 0 : index
    %c0_122 = arith.constant 0 : index
    %179 = vector.load %arg42[%c0_121, %c0_122] : memref<10x32xf32, #tpu.memory_space<vmem>>, vector<10x32xf32>
    %c0_123 = arith.constant 0 : index
    %c0_124 = arith.constant 0 : index
    %180 = vector.load %arg15[%c0_123, %c0_124] : memref<1x32xf32, #tpu.memory_space<vmem>>, vector<1x32xf32>
    %c0_125 = arith.constant 0 : index
    %c0_126 = arith.constant 0 : index
    %181 = vector.load %arg16[%c0_125, %c0_126] : memref<1x32xf32, #tpu.memory_space<vmem>>, vector<1x32xf32>
    %cst_127 = arith.constant dense<0.000000e+00> : vector<10xf32>
    %182 = vector.multi_reduction <add>, %179, %cst_127 [1] : vector<10x32xf32> to vector<10xf32>
    %183 = vector.shape_cast %182 : vector<10xf32> to vector<10x1xf32>
    %cst_128 = arith.constant 3.200000e+01 : f32
    %184 = vector.broadcast %cst_128 : f32 to vector<10x1xf32>
    %185 = arith.divf %183, %184 : vector<10x1xf32>
    %186 = vector.broadcast %185 : vector<10x1xf32> to vector<10x32xf32>
    %187 = arith.subf %179, %186 : vector<10x32xf32>
    %188 = arith.mulf %187, %187 : vector<10x32xf32>
    %cst_129 = arith.constant dense<0.000000e+00> : vector<10xf32>
    %189 = vector.multi_reduction <add>, %188, %cst_129 [1] : vector<10x32xf32> to vector<10xf32>
    %190 = vector.shape_cast %189 : vector<10xf32> to vector<10x1xf32>
    %cst_130 = arith.constant 3.200000e+01 : f32
    %191 = vector.broadcast %cst_130 : f32 to vector<10x1xf32>
    %192 = arith.divf %190, %191 : vector<10x1xf32>
    %cst_131 = arith.constant 9.99999997E-7 : f32
    %193 = vector.broadcast %cst_131 : f32 to vector<10x1xf32>
    %194 = arith.addf %192, %193 : vector<10x1xf32>
    %195 = math.rsqrt %194 : vector<10x1xf32>
    %196 = vector.broadcast %195 : vector<10x1xf32> to vector<10x32xf32>
    %197 = arith.mulf %187, %196 : vector<10x32xf32>
    %198 = vector.broadcast %180 : vector<1x32xf32> to vector<10x32xf32>
    %199 = arith.mulf %197, %198 : vector<10x32xf32>
    %200 = vector.broadcast %181 : vector<1x32xf32> to vector<10x32xf32>
    %201 = arith.addf %199, %200 : vector<10x32xf32>
    %c0_132 = arith.constant 0 : index
    %c0_133 = arith.constant 0 : index
    %202 = vector.load %arg17[%c0_132, %c0_133] : memref<32x64xf32, #tpu.memory_space<vmem>>, vector<32x64xf32>
    %cst_134 = arith.constant dense<0.000000e+00> : vector<10x64xf32>
    %203 = tpu.matmul %201, %202, %cst_134 {dimension_numbers = #tpu.dot_dimension_numbers<[1], [0], [0], [1], [0, 0, 1, 1], [], []>} : vector<10x32xf32>, vector<32x64xf32>, vector<10x64xf32> -> vector<10x64xf32>
    %c0_135 = arith.constant 0 : index
    %c0_136 = arith.constant 0 : index
    %204 = vector.load %arg18[%c0_135, %c0_136] : memref<1x64xf32, #tpu.memory_space<vmem>>, vector<1x64xf32>
    %205 = vector.broadcast %204 : vector<1x64xf32> to vector<10x64xf32>
    %206 = arith.addf %203, %205 : vector<10x64xf32>
    %cst_137 = arith.constant 5.000000e-01 : f32
    %207 = vector.broadcast %cst_137 : f32 to vector<10x64xf32>
    %208 = arith.mulf %207, %206 : vector<10x64xf32>
    %cst_138 = arith.constant 0.707106769 : f32
    %209 = vector.broadcast %cst_138 : f32 to vector<10x64xf32>
    %210 = arith.mulf %206, %209 : vector<10x64xf32>
    %211 = math.erf %210 : vector<10x64xf32>
    %cst_139 = arith.constant 1.000000e+00 : f32
    %212 = vector.broadcast %cst_139 : f32 to vector<10x64xf32>
    %213 = arith.addf %212, %211 : vector<10x64xf32>
    %214 = arith.mulf %208, %213 : vector<10x64xf32>
    %c0_140 = arith.constant 0 : index
    %c0_141 = arith.constant 0 : index
    %215 = vector.load %arg19[%c0_140, %c0_141] : memref<64x32xf32, #tpu.memory_space<vmem>>, vector<64x32xf32>
    %cst_142 = arith.constant dense<0.000000e+00> : vector<10x32xf32>
    %216 = tpu.matmul %214, %215, %cst_142 {dimension_numbers = #tpu.dot_dimension_numbers<[1], [0], [0], [1], [0, 0, 1, 1], [], []>} : vector<10x64xf32>, vector<64x32xf32>, vector<10x32xf32> -> vector<10x32xf32>
    %c0_143 = arith.constant 0 : index
    %c0_144 = arith.constant 0 : index
    %217 = vector.load %arg20[%c0_143, %c0_144] : memref<1x32xf32, #tpu.memory_space<vmem>>, vector<1x32xf32>
    %218 = vector.broadcast %217 : vector<1x32xf32> to vector<10x32xf32>
    %219 = arith.addf %216, %218 : vector<10x32xf32>
    %220 = arith.addf %179, %219 : vector<10x32xf32>
    %c0_145 = arith.constant 0 : index
    %c0_146 = arith.constant 0 : index
    %221 = vector.load %arg21[%c0_145, %c0_146] : memref<1x32xf32, #tpu.memory_space<vmem>>, vector<1x32xf32>
    %c0_147 = arith.constant 0 : index
    %c0_148 = arith.constant 0 : index
    %222 = vector.load %arg22[%c0_147, %c0_148] : memref<1x32xf32, #tpu.memory_space<vmem>>, vector<1x32xf32>
    %cst_149 = arith.constant dense<0.000000e+00> : vector<10xf32>
    %223 = vector.multi_reduction <add>, %220, %cst_149 [1] : vector<10x32xf32> to vector<10xf32>
    %224 = vector.shape_cast %223 : vector<10xf32> to vector<10x1xf32>
    %cst_150 = arith.constant 3.200000e+01 : f32
    %225 = vector.broadcast %cst_150 : f32 to vector<10x1xf32>
    %226 = arith.divf %224, %225 : vector<10x1xf32>
    %227 = vector.broadcast %226 : vector<10x1xf32> to vector<10x32xf32>
    %228 = arith.subf %220, %227 : vector<10x32xf32>
    %229 = arith.mulf %228, %228 : vector<10x32xf32>
    %cst_151 = arith.constant dense<0.000000e+00> : vector<10xf32>
    %230 = vector.multi_reduction <add>, %229, %cst_151 [1] : vector<10x32xf32> to vector<10xf32>
    %231 = vector.shape_cast %230 : vector<10xf32> to vector<10x1xf32>
    %cst_152 = arith.constant 3.200000e+01 : f32
    %232 = vector.broadcast %cst_152 : f32 to vector<10x1xf32>
    %233 = arith.divf %231, %232 : vector<10x1xf32>
    %cst_153 = arith.constant 9.99999997E-7 : f32
    %234 = vector.broadcast %cst_153 : f32 to vector<10x1xf32>
    %235 = arith.addf %233, %234 : vector<10x1xf32>
    %236 = math.rsqrt %235 : vector<10x1xf32>
    %237 = vector.broadcast %236 : vector<10x1xf32> to vector<10x32xf32>
    %238 = arith.mulf %228, %237 : vector<10x32xf32>
    %239 = vector.broadcast %221 : vector<1x32xf32> to vector<10x32xf32>
    %240 = arith.mulf %238, %239 : vector<10x32xf32>
    %241 = vector.broadcast %222 : vector<1x32xf32> to vector<10x32xf32>
    %242 = arith.addf %240, %241 : vector<10x32xf32>
    %c0_154 = arith.constant 0 : index
    %c0_155 = arith.constant 0 : index
    %243 = vector.load %arg30[%c0_154, %c0_155] : memref<1x32xf32, #tpu.memory_space<vmem>>, vector<1x32xf32>
    %244 = vector.broadcast %243 : vector<1x32xf32> to vector<10x32xf32>
    %245 = arith.addf %220, %244 : vector<10x32xf32>
    %c0_156 = arith.constant 0 : index
    %c0_157 = arith.constant 0 : index
    %246 = vector.load %arg42[%c0_156, %c0_157] : memref<10x32xf32, #tpu.memory_space<vmem>>, vector<10x32xf32>
    tpu.vector_store %arg42[%c0_156, %c0_157], %245 {strides = array<i32>} : memref<10x32xf32, #tpu.memory_space<vmem>>, vector<10x32xf32>,
    %c0_158 = arith.constant 0 : index
    %c0_159 = arith.constant 0 : index
    %c0_160 = arith.constant 0 : index
    %247 = vector.load %arg23[%c0_158, %c0_159, %c0_160] : memref<2x32x16xf32, #tpu.memory_space<vmem>>, vector<1x32x16xf32>
    %248 = vector.shape_cast %247 : vector<1x32x16xf32> to vector<32x16xf32>
    %cst_161 = arith.constant dense<0.000000e+00> : vector<10x16xf32>
    %249 = tpu.matmul %242, %248, %cst_161 {dimension_numbers = #tpu.dot_dimension_numbers<[1], [0], [0], [1], [0, 0, 1, 1], [], []>} : vector<10x32xf32>, vector<32x16xf32>, vector<10x16xf32> -> vector<10x16xf32>
    %c0_162 = arith.constant 0 : index
    %c0_163 = arith.constant 0 : index
    %c0_164 = arith.constant 0 : index
    %250 = vector.load %arg24[%c0_162, %c0_163, %c0_164] : memref<2x1x16xf32, #tpu.memory_space<vmem>>, vector<1x1x16xf32>
    %251 = vector.shape_cast %250 : vector<1x1x16xf32> to vector<1x16xf32>
    %252 = vector.broadcast %251 : vector<1x16xf32> to vector<10x16xf32>
    %253 = arith.addf %249, %252 : vector<10x16xf32>
    %cst_165 = arith.constant 2.500000e-01 : f32
    %254 = vector.broadcast %cst_165 : f32 to vector<10x16xf32>
    %255 = arith.mulf %253, %254 : vector<10x16xf32>
    %c0_166 = arith.constant 0 : index
    %c0_167 = arith.constant 0 : index
    %c0_168 = arith.constant 0 : index
    %256 = vector.load %arg25[%c0_166, %c0_167, %c0_168] : memref<2x32x16xf32, #tpu.memory_space<vmem>>, vector<1x32x16xf32>
    %257 = vector.shape_cast %256 : vector<1x32x16xf32> to vector<32x16xf32>
    %cst_169 = arith.constant dense<0.000000e+00> : vector<10x16xf32>
    %258 = tpu.matmul %242, %257, %cst_169 {dimension_numbers = #tpu.dot_dimension_numbers<[1], [0], [0], [1], [0, 0, 1, 1], [], []>} : vector<10x32xf32>, vector<32x16xf32>, vector<10x16xf32> -> vector<10x16xf32>
    %c0_170 = arith.constant 0 : index
    %c0_171 = arith.constant 0 : index
    %c0_172 = arith.constant 0 : index
    %259 = vector.load %arg26[%c0_170, %c0_171, %c0_172] : memref<2x1x16xf32, #tpu.memory_space<vmem>>, vector<1x1x16xf32>
    %260 = vector.shape_cast %259 : vector<1x1x16xf32> to vector<1x16xf32>
    %261 = vector.broadcast %260 : vector<1x16xf32> to vector<10x16xf32>
    %262 = arith.addf %258, %261 : vector<10x16xf32>
    %c0_173 = arith.constant 0 : index
    %c0_174 = arith.constant 0 : index
    %c0_175 = arith.constant 0 : index
    %263 = vector.load %arg27[%c0_173, %c0_174, %c0_175] : memref<2x32x16xf32, #tpu.memory_space<vmem>>, vector<1x32x16xf32>
    %264 = vector.shape_cast %263 : vector<1x32x16xf32> to vector<32x16xf32>
    %cst_176 = arith.constant dense<0.000000e+00> : vector<10x16xf32>
    %265 = tpu.matmul %242, %264, %cst_176 {dimension_numbers = #tpu.dot_dimension_numbers<[1], [0], [0], [1], [0, 0, 1, 1], [], []>} : vector<10x32xf32>, vector<32x16xf32>, vector<10x16xf32> -> vector<10x16xf32>
    %c0_177 = arith.constant 0 : index
    %c0_178 = arith.constant 0 : index
    %c0_179 = arith.constant 0 : index
    %266 = vector.load %arg28[%c0_177, %c0_178, %c0_179] : memref<2x1x16xf32, #tpu.memory_space<vmem>>, vector<1x1x16xf32>
    %267 = vector.shape_cast %266 : vector<1x1x16xf32> to vector<1x16xf32>
    %268 = vector.broadcast %267 : vector<1x16xf32> to vector<10x16xf32>
    %269 = arith.addf %265, %268 : vector<10x16xf32>
    %270 = vector.extract_strided_slice %255 {offsets = [0, 0], sizes = [5, 16], strides = [1, 1]} : vector<10x16xf32> to vector<5x16xf32>
    %271 = vector.extract_strided_slice %262 {offsets = [0, 0], sizes = [5, 16], strides = [1, 1]} : vector<10x16xf32> to vector<5x16xf32>
    %272 = vector.extract_strided_slice %269 {offsets = [0, 0], sizes = [5, 16], strides = [1, 1]} : vector<10x16xf32> to vector<5x16xf32>
    %cst_180 = arith.constant dense<0.000000e+00> : vector<5x5xf32>
    %273 = tpu.matmul %270, %271, %cst_180 {dimension_numbers = #tpu.dot_dimension_numbers<[1], [1], [0], [0], [0, 0, 1, 0], [], []>} : vector<5x16xf32>, vector<5x16xf32>, vector<5x5xf32> -> vector<5x5xf32>
    %cst_181 = arith.constant dense<0xFF800000> : vector<5xf32>
    %274 = vector.multi_reduction <maximumf>, %273, %cst_181 [1] : vector<5x5xf32> to vector<5xf32>
    %275 = vector.shape_cast %274 : vector<5xf32> to vector<5x1xf32>
    %276 = vector.broadcast %275 : vector<5x1xf32> to vector<5x5xf32>
    %277 = arith.subf %273, %276 : vector<5x5xf32>
    %278 = math.exp %277 : vector<5x5xf32>
    %cst_182 = arith.constant dense<0.000000e+00> : vector<5xf32>
    %279 = vector.multi_reduction <add>, %278, %cst_182 [1] : vector<5x5xf32> to vector<5xf32>
    %280 = vector.shape_cast %279 : vector<5xf32> to vector<5x1xf32>
    %281 = tpu.reciprocal %280 {approx = true} : vector<5x1xf32> -> vector<5x1xf32>
    %282 = vector.broadcast %281 : vector<5x1xf32> to vector<5x5xf32>
    %283 = arith.mulf %278, %282 : vector<5x5xf32>
    %cst_183 = arith.constant dense<0.000000e+00> : vector<5x16xf32>
    %284 = tpu.matmul %283, %272, %cst_183 {dimension_numbers = #tpu.dot_dimension_numbers<[1], [0], [0], [1], [0, 0, 1, 1], [], []>} : vector<5x5xf32>, vector<5x16xf32>, vector<5x16xf32> -> vector<5x16xf32>
    %c0_184 = arith.constant 0 : index
    %c0_185 = arith.constant 0 : index
    %285 = vector.load %arg42[%c0_184, %c0_185] : memref<10x32xf32, #tpu.memory_space<vmem>>, vector<5x32xf32>
    %c0_186 = arith.constant 0 : index
    %c0_187 = arith.constant 0 : index
    %c0_188 = arith.constant 0 : index
    %286 = vector.load %arg29[%c0_186, %c0_187, %c0_188] : memref<2x16x32xf32, #tpu.memory_space<vmem>>, vector<1x16x32xf32>
    %287 = vector.shape_cast %286 : vector<1x16x32xf32> to vector<16x32xf32>
    %cst_189 = arith.constant dense<0.000000e+00> : vector<5x32xf32>
    %288 = tpu.matmul %284, %287, %cst_189 {dimension_numbers = #tpu.dot_dimension_numbers<[1], [0], [0], [1], [0, 0, 1, 1], [], []>} : vector<5x16xf32>, vector<16x32xf32>, vector<5x32xf32> -> vector<5x32xf32>
    %289 = arith.addf %285, %288 : vector<5x32xf32>
    %c0_190 = arith.constant 0 : index
    %c0_191 = arith.constant 0 : index
    %290 = vector.load %arg42[%c0_190, %c0_191] : memref<10x32xf32, #tpu.memory_space<vmem>>, vector<5x32xf32>
    tpu.vector_store %arg42[%c0_190, %c0_191], %289 {strides = array<i32>} : memref<10x32xf32, #tpu.memory_space<vmem>>, vector<5x32xf32>,
    %291 = vector.extract_strided_slice %255 {offsets = [5, 0], sizes = [5, 16], strides = [1, 1]} : vector<10x16xf32> to vector<5x16xf32>
    %292 = vector.extract_strided_slice %262 {offsets = [5, 0], sizes = [5, 16], strides = [1, 1]} : vector<10x16xf32> to vector<5x16xf32>
    %293 = vector.extract_strided_slice %269 {offsets = [5, 0], sizes = [5, 16], strides = [1, 1]} : vector<10x16xf32> to vector<5x16xf32>
    %cst_192 = arith.constant dense<0.000000e+00> : vector<5x5xf32>
    %294 = tpu.matmul %291, %292, %cst_192 {dimension_numbers = #tpu.dot_dimension_numbers<[1], [1], [0], [0], [0, 0, 1, 0], [], []>} : vector<5x16xf32>, vector<5x16xf32>, vector<5x5xf32> -> vector<5x5xf32>
    %cst_193 = arith.constant dense<0xFF800000> : vector<5xf32>
    %295 = vector.multi_reduction <maximumf>, %294, %cst_193 [1] : vector<5x5xf32> to vector<5xf32>
    %296 = vector.shape_cast %295 : vector<5xf32> to vector<5x1xf32>
    %297 = vector.broadcast %296 : vector<5x1xf32> to vector<5x5xf32>
    %298 = arith.subf %294, %297 : vector<5x5xf32>
    %299 = math.exp %298 : vector<5x5xf32>
    %cst_194 = arith.constant dense<0.000000e+00> : vector<5xf32>
    %300 = vector.multi_reduction <add>, %299, %cst_194 [1] : vector<5x5xf32> to vector<5xf32>
    %301 = vector.shape_cast %300 : vector<5xf32> to vector<5x1xf32>
    %302 = tpu.reciprocal %301 {approx = true} : vector<5x1xf32> -> vector<5x1xf32>
    %303 = vector.broadcast %302 : vector<5x1xf32> to vector<5x5xf32>
    %304 = arith.mulf %299, %303 : vector<5x5xf32>
    %cst_195 = arith.constant dense<0.000000e+00> : vector<5x16xf32>
    %305 = tpu.matmul %304, %293, %cst_195 {dimension_numbers = #tpu.dot_dimension_numbers<[1], [0], [0], [1], [0, 0, 1, 1], [], []>} : vector<5x5xf32>, vector<5x16xf32>, vector<5x16xf32> -> vector<5x16xf32>
    %c5_196 = arith.constant 5 : index
    %c0_197 = arith.constant 0 : index
    %306 = vector.load %arg42[%c5_196, %c0_197] : memref<10x32xf32, #tpu.memory_space<vmem>>, vector<5x32xf32>
    %c0_198 = arith.constant 0 : index
    %c0_199 = arith.constant 0 : index
    %c0_200 = arith.constant 0 : index
    %307 = vector.load %arg29[%c0_198, %c0_199, %c0_200] : memref<2x16x32xf32, #tpu.memory_space<vmem>>, vector<1x16x32xf32>
    %308 = vector.shape_cast %307 : vector<1x16x32xf32> to vector<16x32xf32>
    %cst_201 = arith.constant dense<0.000000e+00> : vector<5x32xf32>
    %309 = tpu.matmul %305, %308, %cst_201 {dimension_numbers = #tpu.dot_dimension_numbers<[1], [0], [0], [1], [0, 0, 1, 1], [], []>} : vector<5x16xf32>, vector<16x32xf32>, vector<5x32xf32> -> vector<5x32xf32>
    %310 = arith.addf %306, %309 : vector<5x32xf32>
    %c5_202 = arith.constant 5 : index
    %c0_203 = arith.constant 0 : index
    %311 = vector.load %arg42[%c5_202, %c0_203] : memref<10x32xf32, #tpu.memory_space<vmem>>, vector<5x32xf32>
    tpu.vector_store %arg42[%c5_202, %c0_203], %310 {strides = array<i32>} : memref<10x32xf32, #tpu.memory_space<vmem>>, vector<5x32xf32>,
    %c1_204 = arith.constant 1 : index
    %c0_205 = arith.constant 0 : index
    %c0_206 = arith.constant 0 : index
    %312 = vector.load %arg23[%c1_204, %c0_205, %c0_206] : memref<2x32x16xf32, #tpu.memory_space<vmem>>, vector<1x32x16xf32>
    %313 = vector.shape_cast %312 : vector<1x32x16xf32> to vector<32x16xf32>
    %cst_207 = arith.constant dense<0.000000e+00> : vector<10x16xf32>
    %314 = tpu.matmul %242, %313, %cst_207 {dimension_numbers = #tpu.dot_dimension_numbers<[1], [0], [0], [1], [0, 0, 1, 1], [], []>} : vector<10x32xf32>, vector<32x16xf32>, vector<10x16xf32> -> vector<10x16xf32>
    %c1_208 = arith.constant 1 : index
    %c0_209 = arith.constant 0 : index
    %c0_210 = arith.constant 0 : index
    %315 = vector.load %arg24[%c1_208, %c0_209, %c0_210] : memref<2x1x16xf32, #tpu.memory_space<vmem>>, vector<1x1x16xf32>
    %316 = vector.shape_cast %315 : vector<1x1x16xf32> to vector<1x16xf32>
    %317 = vector.broadcast %316 : vector<1x16xf32> to vector<10x16xf32>
    %318 = arith.addf %314, %317 : vector<10x16xf32>
    %cst_211 = arith.constant 2.500000e-01 : f32
    %319 = vector.broadcast %cst_211 : f32 to vector<10x16xf32>
    %320 = arith.mulf %318, %319 : vector<10x16xf32>
    %c1_212 = arith.constant 1 : index
    %c0_213 = arith.constant 0 : index
    %c0_214 = arith.constant 0 : index
    %321 = vector.load %arg25[%c1_212, %c0_213, %c0_214] : memref<2x32x16xf32, #tpu.memory_space<vmem>>, vector<1x32x16xf32>
    %322 = vector.shape_cast %321 : vector<1x32x16xf32> to vector<32x16xf32>
    %cst_215 = arith.constant dense<0.000000e+00> : vector<10x16xf32>
    %323 = tpu.matmul %242, %322, %cst_215 {dimension_numbers = #tpu.dot_dimension_numbers<[1], [0], [0], [1], [0, 0, 1, 1], [], []>} : vector<10x32xf32>, vector<32x16xf32>, vector<10x16xf32> -> vector<10x16xf32>
    %c1_216 = arith.constant 1 : index
    %c0_217 = arith.constant 0 : index
    %c0_218 = arith.constant 0 : index
    %324 = vector.load %arg26[%c1_216, %c0_217, %c0_218] : memref<2x1x16xf32, #tpu.memory_space<vmem>>, vector<1x1x16xf32>
    %325 = vector.shape_cast %324 : vector<1x1x16xf32> to vector<1x16xf32>
    %326 = vector.broadcast %325 : vector<1x16xf32> to vector<10x16xf32>
    %327 = arith.addf %323, %326 : vector<10x16xf32>
    %c1_219 = arith.constant 1 : index
    %c0_220 = arith.constant 0 : index
    %c0_221 = arith.constant 0 : index
    %328 = vector.load %arg27[%c1_219, %c0_220, %c0_221] : memref<2x32x16xf32, #tpu.memory_space<vmem>>, vector<1x32x16xf32>
    %329 = vector.shape_cast %328 : vector<1x32x16xf32> to vector<32x16xf32>
    %cst_222 = arith.constant dense<0.000000e+00> : vector<10x16xf32>
    %330 = tpu.matmul %242, %329, %cst_222 {dimension_numbers = #tpu.dot_dimension_numbers<[1], [0], [0], [1], [0, 0, 1, 1], [], []>} : vector<10x32xf32>, vector<32x16xf32>, vector<10x16xf32> -> vector<10x16xf32>
    %c1_223 = arith.constant 1 : index
    %c0_224 = arith.constant 0 : index
    %c0_225 = arith.constant 0 : index
    %331 = vector.load %arg28[%c1_223, %c0_224, %c0_225] : memref<2x1x16xf32, #tpu.memory_space<vmem>>, vector<1x1x16xf32>
    %332 = vector.shape_cast %331 : vector<1x1x16xf32> to vector<1x16xf32>
    %333 = vector.broadcast %332 : vector<1x16xf32> to vector<10x16xf32>
    %334 = arith.addf %330, %333 : vector<10x16xf32>
    %335 = vector.extract_strided_slice %320 {offsets = [0, 0], sizes = [5, 16], strides = [1, 1]} : vector<10x16xf32> to vector<5x16xf32>
    %336 = vector.extract_strided_slice %327 {offsets = [0, 0], sizes = [5, 16], strides = [1, 1]} : vector<10x16xf32> to vector<5x16xf32>
    %337 = vector.extract_strided_slice %334 {offsets = [0, 0], sizes = [5, 16], strides = [1, 1]} : vector<10x16xf32> to vector<5x16xf32>
    %cst_226 = arith.constant dense<0.000000e+00> : vector<5x5xf32>
    %338 = tpu.matmul %335, %336, %cst_226 {dimension_numbers = #tpu.dot_dimension_numbers<[1], [1], [0], [0], [0, 0, 1, 0], [], []>} : vector<5x16xf32>, vector<5x16xf32>, vector<5x5xf32> -> vector<5x5xf32>
    %cst_227 = arith.constant dense<0xFF800000> : vector<5xf32>
    %339 = vector.multi_reduction <maximumf>, %338, %cst_227 [1] : vector<5x5xf32> to vector<5xf32>
    %340 = vector.shape_cast %339 : vector<5xf32> to vector<5x1xf32>
    %341 = vector.broadcast %340 : vector<5x1xf32> to vector<5x5xf32>
    %342 = arith.subf %338, %341 : vector<5x5xf32>
    %343 = math.exp %342 : vector<5x5xf32>
    %cst_228 = arith.constant dense<0.000000e+00> : vector<5xf32>
    %344 = vector.multi_reduction <add>, %343, %cst_228 [1] : vector<5x5xf32> to vector<5xf32>
    %345 = vector.shape_cast %344 : vector<5xf32> to vector<5x1xf32>
    %346 = tpu.reciprocal %345 {approx = true} : vector<5x1xf32> -> vector<5x1xf32>
    %347 = vector.broadcast %346 : vector<5x1xf32> to vector<5x5xf32>
    %348 = arith.mulf %343, %347 : vector<5x5xf32>
    %cst_229 = arith.constant dense<0.000000e+00> : vector<5x16xf32>
    %349 = tpu.matmul %348, %337, %cst_229 {dimension_numbers = #tpu.dot_dimension_numbers<[1], [0], [0], [1], [0, 0, 1, 1], [], []>} : vector<5x5xf32>, vector<5x16xf32>, vector<5x16xf32> -> vector<5x16xf32>
    %c0_230 = arith.constant 0 : index
    %c0_231 = arith.constant 0 : index
    %350 = vector.load %arg42[%c0_230, %c0_231] : memref<10x32xf32, #tpu.memory_space<vmem>>, vector<5x32xf32>
    %c1_232 = arith.constant 1 : index
    %c0_233 = arith.constant 0 : index
    %c0_234 = arith.constant 0 : index
    %351 = vector.load %arg29[%c1_232, %c0_233, %c0_234] : memref<2x16x32xf32, #tpu.memory_space<vmem>>, vector<1x16x32xf32>
    %352 = vector.shape_cast %351 : vector<1x16x32xf32> to vector<16x32xf32>
    %cst_235 = arith.constant dense<0.000000e+00> : vector<5x32xf32>
    %353 = tpu.matmul %349, %352, %cst_235 {dimension_numbers = #tpu.dot_dimension_numbers<[1], [0], [0], [1], [0, 0, 1, 1], [], []>} : vector<5x16xf32>, vector<16x32xf32>, vector<5x32xf32> -> vector<5x32xf32>
    %354 = arith.addf %350, %353 : vector<5x32xf32>
    %c0_236 = arith.constant 0 : index
    %c0_237 = arith.constant 0 : index
    %355 = vector.load %arg42[%c0_236, %c0_237] : memref<10x32xf32, #tpu.memory_space<vmem>>, vector<5x32xf32>
    tpu.vector_store %arg42[%c0_236, %c0_237], %354 {strides = array<i32>} : memref<10x32xf32, #tpu.memory_space<vmem>>, vector<5x32xf32>,
    %356 = vector.extract_strided_slice %320 {offsets = [5, 0], sizes = [5, 16], strides = [1, 1]} : vector<10x16xf32> to vector<5x16xf32>
    %357 = vector.extract_strided_slice %327 {offsets = [5, 0], sizes = [5, 16], strides = [1, 1]} : vector<10x16xf32> to vector<5x16xf32>
    %358 = vector.extract_strided_slice %334 {offsets = [5, 0], sizes = [5, 16], strides = [1, 1]} : vector<10x16xf32> to vector<5x16xf32>
    %cst_238 = arith.constant dense<0.000000e+00> : vector<5x5xf32>
    %359 = tpu.matmul %356, %357, %cst_238 {dimension_numbers = #tpu.dot_dimension_numbers<[1], [1], [0], [0], [0, 0, 1, 0], [], []>} : vector<5x16xf32>, vector<5x16xf32>, vector<5x5xf32> -> vector<5x5xf32>
    %cst_239 = arith.constant dense<0xFF800000> : vector<5xf32>
    %360 = vector.multi_reduction <maximumf>, %359, %cst_239 [1] : vector<5x5xf32> to vector<5xf32>
    %361 = vector.shape_cast %360 : vector<5xf32> to vector<5x1xf32>
    %362 = vector.broadcast %361 : vector<5x1xf32> to vector<5x5xf32>
    %363 = arith.subf %359, %362 : vector<5x5xf32>
    %364 = math.exp %363 : vector<5x5xf32>
    %cst_240 = arith.constant dense<0.000000e+00> : vector<5xf32>
    %365 = vector.multi_reduction <add>, %364, %cst_240 [1] : vector<5x5xf32> to vector<5xf32>
    %366 = vector.shape_cast %365 : vector<5xf32> to vector<5x1xf32>
    %367 = tpu.reciprocal %366 {approx = true} : vector<5x1xf32> -> vector<5x1xf32>
    %368 = vector.broadcast %367 : vector<5x1xf32> to vector<5x5xf32>
    %369 = arith.mulf %364, %368 : vector<5x5xf32>
    %cst_241 = arith.constant dense<0.000000e+00> : vector<5x16xf32>
    %370 = tpu.matmul %369, %358, %cst_241 {dimension_numbers = #tpu.dot_dimension_numbers<[1], [0], [0], [1], [0, 0, 1, 1], [], []>} : vector<5x5xf32>, vector<5x16xf32>, vector<5x16xf32> -> vector<5x16xf32>
    %c5_242 = arith.constant 5 : index
    %c0_243 = arith.constant 0 : index
    %371 = vector.load %arg42[%c5_242, %c0_243] : memref<10x32xf32, #tpu.memory_space<vmem>>, vector<5x32xf32>
    %c1_244 = arith.constant 1 : index
    %c0_245 = arith.constant 0 : index
    %c0_246 = arith.constant 0 : index
    %372 = vector.load %arg29[%c1_244, %c0_245, %c0_246] : memref<2x16x32xf32, #tpu.memory_space<vmem>>, vector<1x16x32xf32>
    %373 = vector.shape_cast %372 : vector<1x16x32xf32> to vector<16x32xf32>
    %cst_247 = arith.constant dense<0.000000e+00> : vector<5x32xf32>
    %374 = tpu.matmul %370, %373, %cst_247 {dimension_numbers = #tpu.dot_dimension_numbers<[1], [0], [0], [1], [0, 0, 1, 1], [], []>} : vector<5x16xf32>, vector<16x32xf32>, vector<5x32xf32> -> vector<5x32xf32>
    %375 = arith.addf %371, %374 : vector<5x32xf32>
    %c5_248 = arith.constant 5 : index
    %c0_249 = arith.constant 0 : index
    %376 = vector.load %arg42[%c5_248, %c0_249] : memref<10x32xf32, #tpu.memory_space<vmem>>, vector<5x32xf32>
    tpu.vector_store %arg42[%c5_248, %c0_249], %375 {strides = array<i32>} : memref<10x32xf32, #tpu.memory_space<vmem>>, vector<5x32xf32>,
    %c0_250 = arith.constant 0 : index
    %c0_251 = arith.constant 0 : index
    %377 = vector.load %arg42[%c0_250, %c0_251] : memref<10x32xf32, #tpu.memory_space<vmem>>, vector<10x32xf32>
    %c0_252 = arith.constant 0 : index
    %c0_253 = arith.constant 0 : index
    %378 = vector.load %arg31[%c0_252, %c0_253] : memref<1x32xf32, #tpu.memory_space<vmem>>, vector<1x32xf32>
    %c0_254 = arith.constant 0 : index
    %c0_255 = arith.constant 0 : index
    %379 = vector.load %arg32[%c0_254, %c0_255] : memref<1x32xf32, #tpu.memory_space<vmem>>, vector<1x32xf32>
    %cst_256 = arith.constant dense<0.000000e+00> : vector<10xf32>
    %380 = vector.multi_reduction <add>, %377, %cst_256 [1] : vector<10x32xf32> to vector<10xf32>
    %381 = vector.shape_cast %380 : vector<10xf32> to vector<10x1xf32>
    %cst_257 = arith.constant 3.200000e+01 : f32
    %382 = vector.broadcast %cst_257 : f32 to vector<10x1xf32>
    %383 = arith.divf %381, %382 : vector<10x1xf32>
    %384 = vector.broadcast %383 : vector<10x1xf32> to vector<10x32xf32>
    %385 = arith.subf %377, %384 : vector<10x32xf32>
    %386 = arith.mulf %385, %385 : vector<10x32xf32>
    %cst_258 = arith.constant dense<0.000000e+00> : vector<10xf32>
    %387 = vector.multi_reduction <add>, %386, %cst_258 [1] : vector<10x32xf32> to vector<10xf32>
    %388 = vector.shape_cast %387 : vector<10xf32> to vector<10x1xf32>
    %cst_259 = arith.constant 3.200000e+01 : f32
    %389 = vector.broadcast %cst_259 : f32 to vector<10x1xf32>
    %390 = arith.divf %388, %389 : vector<10x1xf32>
    %cst_260 = arith.constant 9.99999997E-7 : f32
    %391 = vector.broadcast %cst_260 : f32 to vector<10x1xf32>
    %392 = arith.addf %390, %391 : vector<10x1xf32>
    %393 = math.rsqrt %392 : vector<10x1xf32>
    %394 = vector.broadcast %393 : vector<10x1xf32> to vector<10x32xf32>
    %395 = arith.mulf %385, %394 : vector<10x32xf32>
    %396 = vector.broadcast %378 : vector<1x32xf32> to vector<10x32xf32>
    %397 = arith.mulf %395, %396 : vector<10x32xf32>
    %398 = vector.broadcast %379 : vector<1x32xf32> to vector<10x32xf32>
    %399 = arith.addf %397, %398 : vector<10x32xf32>
    %c0_261 = arith.constant 0 : index
    %c0_262 = arith.constant 0 : index
    %400 = vector.load %arg33[%c0_261, %c0_262] : memref<32x64xf32, #tpu.memory_space<vmem>>, vector<32x64xf32>
    %cst_263 = arith.constant dense<0.000000e+00> : vector<10x64xf32>
    %401 = tpu.matmul %399, %400, %cst_263 {dimension_numbers = #tpu.dot_dimension_numbers<[1], [0], [0], [1], [0, 0, 1, 1], [], []>} : vector<10x32xf32>, vector<32x64xf32>, vector<10x64xf32> -> vector<10x64xf32>
    %c0_264 = arith.constant 0 : index
    %c0_265 = arith.constant 0 : index
    %402 = vector.load %arg34[%c0_264, %c0_265] : memref<1x64xf32, #tpu.memory_space<vmem>>, vector<1x64xf32>
    %403 = vector.broadcast %402 : vector<1x64xf32> to vector<10x64xf32>
    %404 = arith.addf %401, %403 : vector<10x64xf32>
    %cst_266 = arith.constant 5.000000e-01 : f32
    %405 = vector.broadcast %cst_266 : f32 to vector<10x64xf32>
    %406 = arith.mulf %405, %404 : vector<10x64xf32>
    %cst_267 = arith.constant 0.707106769 : f32
    %407 = vector.broadcast %cst_267 : f32 to vector<10x64xf32>
    %408 = arith.mulf %404, %407 : vector<10x64xf32>
    %409 = math.erf %408 : vector<10x64xf32>
    %cst_268 = arith.constant 1.000000e+00 : f32
    %410 = vector.broadcast %cst_268 : f32 to vector<10x64xf32>
    %411 = arith.addf %410, %409 : vector<10x64xf32>
    %412 = arith.mulf %406, %411 : vector<10x64xf32>
    %c0_269 = arith.constant 0 : index
    %c0_270 = arith.constant 0 : index
    %413 = vector.load %arg35[%c0_269, %c0_270] : memref<64x32xf32, #tpu.memory_space<vmem>>, vector<64x32xf32>
    %cst_271 = arith.constant dense<0.000000e+00> : vector<10x32xf32>
    %414 = tpu.matmul %412, %413, %cst_271 {dimension_numbers = #tpu.dot_dimension_numbers<[1], [0], [0], [1], [0, 0, 1, 1], [], []>} : vector<10x64xf32>, vector<64x32xf32>, vector<10x32xf32> -> vector<10x32xf32>
    %c0_272 = arith.constant 0 : index
    %c0_273 = arith.constant 0 : index
    %415 = vector.load %arg36[%c0_272, %c0_273] : memref<1x32xf32, #tpu.memory_space<vmem>>, vector<1x32xf32>
    %416 = vector.broadcast %415 : vector<1x32xf32> to vector<10x32xf32>
    %417 = arith.addf %414, %416 : vector<10x32xf32>
    %418 = arith.addf %377, %417 : vector<10x32xf32>
    %419 = vector.extract_strided_slice %418 {offsets = [0, 0], sizes = [1, 32], strides = [1, 1]} : vector<10x32xf32> to vector<1x32xf32>
    %420 = vector.extract_strided_slice %418 {offsets = [5, 0], sizes = [1, 32], strides = [1, 1]} : vector<10x32xf32> to vector<1x32xf32>
    %421 = tpu.concatenate %419, %420 in 0 : vector<1x32xf32>, vector<1x32xf32> -> vector<2x32xf32>
    %c0_274 = arith.constant 0 : index
    %c0_275 = arith.constant 0 : index
    %422 = vector.load %arg37[%c0_274, %c0_275] : memref<1x32xf32, #tpu.memory_space<vmem>>, vector<1x32xf32>
    %c0_276 = arith.constant 0 : index
    %c0_277 = arith.constant 0 : index
    %423 = vector.load %arg38[%c0_276, %c0_277] : memref<1x32xf32, #tpu.memory_space<vmem>>, vector<1x32xf32>
    %cst_278 = arith.constant dense<0.000000e+00> : vector<2xf32>
    %424 = vector.multi_reduction <add>, %421, %cst_278 [1] : vector<2x32xf32> to vector<2xf32>
    %425 = vector.shape_cast %424 : vector<2xf32> to vector<2x1xf32>
    %cst_279 = arith.constant 3.200000e+01 : f32
    %426 = vector.broadcast %cst_279 : f32 to vector<2x1xf32>
    %427 = arith.divf %425, %426 : vector<2x1xf32>
    %428 = vector.broadcast %427 : vector<2x1xf32> to vector<2x32xf32>
    %429 = arith.subf %421, %428 : vector<2x32xf32>
    %430 = arith.mulf %429, %429 : vector<2x32xf32>
    %cst_280 = arith.constant dense<0.000000e+00> : vector<2xf32>
    %431 = vector.multi_reduction <add>, %430, %cst_280 [1] : vector<2x32xf32> to vector<2xf32>
    %432 = vector.shape_cast %431 : vector<2xf32> to vector<2x1xf32>
    %cst_281 = arith.constant 3.200000e+01 : f32
    %433 = vector.broadcast %cst_281 : f32 to vector<2x1xf32>
    %434 = arith.divf %432, %433 : vector<2x1xf32>
    %cst_282 = arith.constant 9.99999997E-7 : f32
    %435 = vector.broadcast %cst_282 : f32 to vector<2x1xf32>
    %436 = arith.addf %434, %435 : vector<2x1xf32>
    %437 = math.rsqrt %436 : vector<2x1xf32>
    %438 = vector.broadcast %437 : vector<2x1xf32> to vector<2x32xf32>
    %439 = arith.mulf %429, %438 : vector<2x32xf32>
    %440 = vector.broadcast %422 : vector<1x32xf32> to vector<2x32xf32>
    %441 = arith.mulf %439, %440 : vector<2x32xf32>
    %442 = vector.broadcast %423 : vector<1x32xf32> to vector<2x32xf32>
    %443 = arith.addf %441, %442 : vector<2x32xf32>
    %c0_283 = arith.constant 0 : index
    %c0_284 = arith.constant 0 : index
    %444 = vector.load %arg39[%c0_283, %c0_284] : memref<32x10xf32, #tpu.memory_space<vmem>>, vector<32x10xf32>
    %cst_285 = arith.constant dense<0.000000e+00> : vector<2x10xf32>
    %445 = tpu.matmul %443, %444, %cst_285 {dimension_numbers = #tpu.dot_dimension_numbers<[1], [0], [0], [1], [0, 0, 1, 1], [], []>} : vector<2x32xf32>, vector<32x10xf32>, vector<2x10xf32> -> vector<2x10xf32>
    %c0_286 = arith.constant 0 : index
    %c0_287 = arith.constant 0 : index
    %446 = vector.load %arg40[%c0_286, %c0_287] : memref<1x10xf32, #tpu.memory_space<vmem>>, vector<1x10xf32>
    %447 = vector.broadcast %446 : vector<1x10xf32> to vector<2x10xf32>
    %448 = arith.addf %445, %447 : vector<2x10xf32>
    %c0_288 = arith.constant 0 : index
    %c0_289 = arith.constant 0 : index
    %449 = vector.load %arg41[%c0_288, %c0_289] : memref<2x10xf32, #tpu.memory_space<vmem>>, vector<2x10xf32>
    tpu.vector_store %arg41[%c0_288, %c0_289], %448 {strides = array<i32>} : memref<2x10xf32, #tpu.memory_space<vmem>>, vector<2x10xf32>,
    return
  }
}

</mosaic_0001>

<bundles_post_ra>
// kernel: _lambda_.1
= control target key start
LH: loop header
LB: loop body
LE: loop exit
PB: predicated region body
PF: predicated region fallthrough
CT: control target
= control target key end

     0   :  { %s2513_s6 = smov 1   ;;  %s2514_s10 = smov 2   ;;  %s3170_s0 = inlined_call_operand.smem [shape: u32[42], index: -1, kind: input, shape index: {}] }
   0x1   :  { %s2566_s5 = sld [smem:[%s3170_s0]]   ;;  %s2515_s14 = smov 3  }
   0x2   :  { %s2571_s9 = sld [smem:[%s3170_s0 + %s2513_s6]]   ;;  %s2516_s18 = smov 4  }
   0x3   :  { %s2576_s13 = sld [smem:[%s3170_s0 + %s2514_s10]]   ;;  %s2517_s22 = smov 5  }
   0x4   :  { %s2581_s17 = sld [smem:[%s3170_s0 + %s2515_s14]]   ;;  %s2518_s26 = smov 6  }
   0x5   :  { %s2586_s21 = sld [smem:[%s3170_s0 + %s2516_s18]]   ;;  %s2519_s30 = smov 7  }
   0x6   :  { %s2591_s25 = sld [smem:[%s3170_s0 + %s2517_s22]]   ;;  %s2520_s4 = smov 8  }
   0x7   :  { %s2596_s29 = sld [smem:[%s3170_s0 + %s2518_s26]]   ;;  %s2521_s10 = smov 9  }
   0x8   :  { %s2601_s3 = sld [smem:[%s3170_s0 + %s2519_s30]]   ;;  %s2522_s15 = smov 10  }
   0x9   :  { %s2606_s8 = sld [smem:[%s3170_s0 + %s2520_s4]]   ;;  %s2523_s20 = smov 11  }
   0xa   :  { %s2611_s14 = sld [smem:[%s3170_s0 + %s2521_s10]]   ;;  %s2524_s26 = smov 12  }
   0xb   :  { %s2616_s19 = sld [smem:[%s3170_s0 + %s2522_s15]]   ;;  %s2525_s1 = smov 13  }
   0xc   :  { %s2621_s24 = sld [smem:[%s3170_s0 + %s2523_s20]]   ;;  %s2526_s7 = smov 14  }
   0xd   :  { %s2626_s30 = sld [smem:[%s3170_s0 + %s2524_s26]]   ;;  %s2527_s15 = smov 15  }
   0xe   :  { %s2631_s6 = sld [smem:[%s3170_s0 + %s2525_s1]]   ;;  %s2528_s22 = smov 16  }
   0xf   :  { %3185 = sst [smem:[#allocation12_spill]] %s2606_s8  ;;  %s2529_s28 = smov 17  }
  0x10   :  { %s2636_s12 = sld [smem:[%s3170_s0 + %s2526_s7]]   ;;  %s2530_s7 = smov 18  }
  0x11   :  { %3186 = sst [smem:[#allocation13_spill]] %s2616_s19 }
  0x12   :  { %s2641_s20 = sld [smem:[%s3170_s0 + %s2527_s15]]   ;;  %s2531_s15 = smov 19  }
  0x13   :  { %s2646_s27 = sld [smem:[%s3170_s0 + %s2528_s22]]   ;;  %s2532_s22 = smov 20  }
  0x14   :  { %3187 = sst [smem:[#allocation14_spill]] %s2631_s6 }
  0x15   :  { %s2651_s4 = sld [smem:[%s3170_s0 + %s2529_s28]]   ;;  %s2533_s28 = smov 21  }
  0x16   :  { %s2656_s6 = sld [smem:[%s3170_s0 + %s2530_s7]]   ;;  %s2534_s7 = smov 22  }
  0x18   :  { %3188 = sst [smem:[#allocation15_spill]] %s2641_s20 }
  0x19   :  { %3189 = sst [smem:[#allocation16_spill]] %s2646_s27 }
  0x1a   :  { %s2661_s20 = sld [smem:[%s3170_s0 + %s2531_s15]]   ;;  %s2535_s15 = smov 23  }
  0x1b   :  { %3190 = sst [smem:[#allocation17_spill]] %s2651_s4 }
  0x1c   :  { %3191 = sst [smem:[#allocation18_spill]] %s2656_s6 }
  0x1d   :  { %s2666_s27 = sld [smem:[%s3170_s0 + %s2532_s22]]   ;;  %s2536_s22 = smov 24  }
  0x1e   :  { %s2671_s4 = sld [smem:[%s3170_s0 + %s2533_s28]]   ;;  %s2537_s28 = smov 25  }
  0x1f   :  { %s2676_s6 = sld [smem:[%s3170_s0 + %s2534_s7]]   ;;  %s2538_s7 = smov 26  }
  0x20   :  { %3192 = sst [smem:[#allocation19_spill]] %s2661_s20 }
  0x21   :  { %s2681_s20 = sld [smem:[%s3170_s0 + %s2535_s15]]   ;;  %s2539_s15 = smov 27  }
  0x23   :  { %3193 = sst [smem:[#allocation20_spill]] %s2666_s27 }
  0x24   :  { %3194 = sst [smem:[#allocation21_spill]] %s2671_s4 }
  0x25   :  { %3195 = sst [smem:[#allocation22_spill]] %s2676_s6 }
  0x26   :  { %s2686_s27 = sld [smem:[%s3170_s0 + %s2536_s22]]   ;;  %s2540_s22 = smov 28  }
  0x27   :  { %3196 = sst [smem:[#allocation23_spill]] %s2681_s20 }
  0x28   :  { %s2691_s4 = sld [smem:[%s3170_s0 + %s2537_s28]]   ;;  %s2541_s28 = smov 29  }
  0x29   :  { %s2696_s6 = sld [smem:[%s3170_s0 + %s2538_s7]]   ;;  %s2542_s7 = smov 30  }
  0x2a   :  { %s2701_s20 = sld [smem:[%s3170_s0 + %s2539_s15]]   ;;  %s2543_s15 = smov 31  }
  0x2c   :  { %3197 = sst [smem:[#allocation24_spill]] %s2686_s27 }
  0x2d   :  { %s2706_s27 = sld [smem:[%s3170_s0 + %s2540_s22]]   ;;  %s2544_s22 = smov 32  }
  0x2e   :  { %3198 = sst [smem:[#allocation25_spill]] %s2691_s4 }
  0x2f   :  { %3199 = sst [smem:[#allocation26_spill]] %s2696_s6 }
  0x30   :  { %3200 = sst [smem:[#allocation27_spill]] %s2701_s20 }
  0x31   :  { %s2711_s4 = sld [smem:[%s3170_s0 + %s2541_s28]]   ;;  %s2545_s28 = smov 33  }
  0x32   :  { %s2716_s6 = sld [smem:[%s3170_s0 + %s2542_s7]]   ;;  %s2546_s7 = smov 34  }
  0x33   :  { %3201 = sst [smem:[#allocation28_spill]] %s2706_s27 }
  0x34   :  { %s2721_s20 = sld [smem:[%s3170_s0 + %s2543_s15]]   ;;  %s2547_s15 = smov 35  }
  0x35   :  { %s2726_s27 = sld [smem:[%s3170_s0 + %s2544_s22]]   ;;  %s2548_s22 = smov 36  }
  0x37   :  { %3202 = sst [smem:[#allocation29_spill]] %s2711_s4 }
  0x38   :  { %3203 = sst [smem:[#allocation30_spill]] %s2716_s6 }
  0x39   :  { %s2731_s4 = sld [smem:[%s3170_s0 + %s2545_s28]]   ;;  %s2549_s28 = smov 37  }
  0x3a   :  { %3204 = sst [smem:[#allocation31_spill]] %s2721_s20 }
  0x3b   :  { %3205 = sst [smem:[#allocation32_spill]] %s2726_s27 }
  0x3c   :  { %s2736_s6 = sld [smem:[%s3170_s0 + %s2546_s7]]   ;;  %s2550_s7 = smov 38  }
  0x3d   :  { %s2741_s20 = sld [smem:[%s3170_s0 + %s2547_s15]]   ;;  %s2551_s15 = smov 39  }
  0x3e   :  { %s2746_s27 = sld [smem:[%s3170_s0 + %s2548_s22]]   ;;  %s2552_s22 = smov 40  }
  0x3f   :  { %3206 = sst [smem:[#allocation33_spill]] %s2731_s4 }
  0x40   :  { %s2751_s4 = sld [smem:[%s3170_s0 + %s2549_s28]]   ;;  %s2553_s28 = smov 41  }
  0x41   :  { %s2756_s19 = sld [smem:[%s3170_s0 + %s2550_s7]]  }
  0x42   :  { %s2766_s8 = sld [smem:[%s3170_s0 + %s2552_s22]]  }
  0x43   :  { %3207 = sst [smem:[#allocation34_spill]] %s2741_s20 }
  0x44   :  { %s2761_s20 = sld [smem:[%s3170_s0 + %s2551_s15]]  }
  0x46   :  { %3208 = sst [smem:[#allocation35_spill]] %s2751_s4 }
  0x47   :  { %s2771_s4 = sld [smem:[%s3170_s0 + %s2553_s28]]  }
  0x48   :  { %88 = vsyncpa [#allocation4], 0 }
  0x49   :  { %89 = vsyncpa [#allocation7], 0 }
  0x4a   :  { %90 = vsyncpa [#allocation5], 0  ;;  %s164_s7 = sshll.u32 %s2736_s6, 4  ;;  %s2554_s10 = smov [#allocation3]   ;;  %s165_s7 = int_to_ptr.hbm [resolvable:$true] %s164_s7 }
  0x4b   :  { %s166_s11 = sshll.u32 %s2554_s10, 4  ;;  %s177_s15 = sshll.u32 %s2746_s27, 4  ;;  %s167_s11 = int_to_ptr.vmem [resolvable:$true] %s166_s11  ;;  %s178_s15 = int_to_ptr.hbm [resolvable:$true] %s177_s15 }
  0x4c   :  { %s2435_s16 = sshra.s32 %s165_s7, 4  ;;  %s2439_s22 = scalar_lea.hbm %s2736_s6, 1  ;;  %s2436_s16 = int_to_ptr.hbm [resolvable:$true] %s2435_s16 }
  0x4d   :  { %s2437_s18 = scalar_lea.hbm %s2436_s16, 1  ;;  %p2440_p1 = scmp.lt.s32.totalorder %s2436_s16, %s2736_s6 }
  0x4e   :  { %p2438_p0 = scmp.ne.s32.totalorder %s2436_s16, %s2437_s18  ;;  %p2441_p2 = scmp.lt.s32.totalorder %s2439_s22, %s2437_s18 }
  0x50   :  { %p2442_p3 = por %p2441_p2, %p2440_p1 }
  0x52   :  { %p2443_p4 = pnand %p2442_p3, %p2438_p0 }
  0x54   :  { %2446 = shalt.err (!%p2443_p4)
}
  0x55   :  { %169 = dma.hbm_to_vmem [thread:$0]  %s165_s7, 16, %s167_s11, [#allocation4]  }
  0x56   :  { %s2555_s0 = smov [#allocation6]   ;;  %s2459_s26 = sshra.s32 %s178_s15, 4  ;;  %s2460_s26 = int_to_ptr.hbm [resolvable:$true] %s2459_s26 }
  0x57   :  { %s179_s23 = sshll.u32 %s2555_s0, 4  ;;  %s2461_s28 = scalar_lea.hbm %s2460_s26, 1  ;;  %s180_s23 = int_to_ptr.vmem [resolvable:$true] %s179_s23 }
  0x58   :  { %p2462_p5 = scmp.ne.s32.totalorder %s2460_s26, %s2461_s28  ;;  %s2463_s1 = scalar_lea.hbm %s2746_s27, 1 }
  0x59   :  { %p2464_p6 = scmp.lt.s32.totalorder %s2460_s26, %s2746_s27  ;;  %p2465_p7 = scmp.lt.s32.totalorder %s2463_s1, %s2461_s28 }
  0x5b   :  { %p2466_p8 = por %p2465_p7, %p2464_p6 }
  0x5d   :  { %p2467_p9 = pnand %p2466_p8, %p2462_p5 }
  0x5f   :  { %2470 = shalt.err (!%p2467_p9)
}
  0x60   :  { %182 = dma.hbm_to_vmem [thread:$0]  %s178_s15, 16, %s180_s23, [#allocation7]  }
  0x61   :  { %2507 = dma.done.wait [#allocation4], 16  }
  0x62   :  { %2508 = vsyncadd [#allocation4], 4294967280 }
  0x63   :  { %2509 = dma.done.wait [#allocation7], 16  }
  0x64   :  { %2510 = vsyncadd [#allocation7], 4294967280  ;;  %v216_v0 = vld [vmem:[%s2571_s9 + $0x78] sm:$0xff]  ;;  %v215_v1 = vld [vmem:[%s2571_s9 + $0x70] sm:$0xff]  ;;  %vm229_vm0 = vcmask 523264   ;;  %vm276_vm1 = vcmask 253952  }
  0x65   :  { %233 = vmatpush.msra.mxu0 %v216_v0  ;;  %v214_v2 = vld [vmem:[%s2571_s9 + $0x68] sm:$0xff]  ;;  %v224_v3 = vld [vmem:[%s2571_s9 + $0xb8] sm:$0xff]  ;;  %v213_v4 = vld [vmem:[%s2571_s9 + $0x60] sm:$0xff]  ;;  %vm282_vm2 = vcmask 257024   ;;  %vm288_vm3 = vcmask 261124   ;;  %vm298_vm4 = vcmask 254976  }
  0x66   :  { %261 = vmatpush.msra.mxu1 %v224_v3  ;;  %v223_v5 = vld [vmem:[%s2571_s9 + $0xb0] sm:$0xff]  ;;  %v222_v6 = vld [vmem:[%s2571_s9 + $0xa8] sm:$0xff]  ;;  %v212_v7 = vld [vmem:[%s2571_s9 + $0x58] sm:$0xff]  ;;  %vm294_vm5 = vcmask 261120   ;;  %v2556_v45 = vmov 32.0   ;;  %vm509_vm13 = vcmask 1044480  }
  0x67   :  { %234 = vmatpush.msra.mxu0 %v215_v1  ;;  %v211_v8 = vld [vmem:[%s2571_s9 + $0x50] sm:$0xff]  ;;  %v221_v9 = vld [vmem:[%s2571_s9 + $0xa0] sm:$0xff]  ;;  %v210_v10 = vld [vmem:[%s2571_s9 + $0x48] sm:$0xff]  ;;  %2375 = vrcp.f32 %v2556_v45  ;;  %vm466_vm14 = vcmask 130048   ;;  %vm563_vm15 = vcmask 1042432   ;;  %s3220_s6 = sld [smem:[#allocation25_spill]] }
  0x68   :  { %262 = vmatpush.msra.mxu1 %v223_v5  ;;  %v220_v11 = vld [vmem:[%s2571_s9 + $0x98] sm:$0xff]  ;;  %v219_v12 = vld [vmem:[%s2571_s9 + $0x90] sm:$0xff]  ;;  %v209_v13 = vld [vmem:[%s2571_s9 + $0x40] sm:$0xff]  ;;  %s3222_s27 = sld [smem:[#allocation21_spill]]  ;;  %s2132_s28 = sshll.u32 %s2771_s4, 4  ;;  %s2133_s28 = int_to_ptr.hbm [resolvable:$true] %s2132_s28 }
  0x69   :  { %235 = vmatpush.msra.mxu0 %v214_v2  ;;  %v218_v14 = vld [vmem:[%s2571_s9 + $0x88] sm:$0xff]  ;;  %v208_v15 = vld [vmem:[%s2571_s9 + $0x38] sm:$0xff]  ;;  %v217_v16 = vld [vmem:[%s2571_s9 + $0x80] sm:$0xff]  ;;  %s3223_s2 = sld [smem:[#allocation22_spill]]  ;;  %s2495_s1 = sshra.s32 %s2133_s28, 4  ;;  %s2496_s1 = int_to_ptr.hbm [resolvable:$true] %s2495_s1 }
  0x6a   :  { %263 = vmatpush.msra.mxu1 %v222_v6  ;;  %v207_v17 = vld [vmem:[%s2571_s9 + $0x30] sm:$0xff]  ;;  %v200_v18 = vld [vmem:[%s2566_s5 + $0x8] sm:$0xff]  ;;  %v205_v20 = vld [vmem:[%s2571_s9 + $0x20] sm:$0xff]  ;;  %s3224_s7 = sld [smem:[#allocation24_spill]]  ;;  %p2500_p11 = scmp.lt.s32.totalorder %s2496_s1, %s2771_s4 }
  0x6b   :  { %236 = vmatpush.msra.mxu0 %v213_v4  ;;  %v206_v19 = vld [vmem:[%s2571_s9 + $0x28] sm:$0xff]  ;;  %v204_v21 = vld [vmem:[%s2571_s9 + $0x18] sm:$0xff]  ;;  %v203_v22 = vld [vmem:[%s2571_s9 + $0x10] sm:$0xff]  ;;  %s3225_s10 = sld [smem:[#allocation26_spill]] }
  0x6c   :  { %264 = vmatpush.msra.mxu1 %v221_v9  ;;  %v202_v23 = vld [vmem:[%s2571_s9 + $0x8] sm:$0xff]  ;;  %v201_v24 = vld [vmem:[%s2571_s9] sm:$0xff]  ;;  %v368_v62 = vld [vmem:[%s2601_s3 + $0x18] sm:$0xff]  ;;  %s3210_s9 = sld [smem:[#allocation13_spill]] }
  0x6d   :  { %237 = vmatpush.msra.mxu0 %v212_v7  ;;  %v199_v25 = vld [vmem:[%s2566_s5] sm:$0xff]  ;;  %v2376_v46 = vpop.eup %2375  ;;  %v407_v63 = vld [vmem:[%s2611_s14 + $0x18] sm:$0xff]  ;;  %391 = vmatpush.msra.mxu2 %v368_v62  ;;  %v367_v1 = vld [vmem:[%s2601_s3 + $0x10] sm:$0xff]  ;;  %s3209_s5 = sld [smem:[#allocation12_spill]] }
  0x6e   :  { %265 = vmatpush.msra.mxu1 %v220_v11  ;;  %v273_v26 = vld [vmem:[%s2586_s21] sm:$0x1f]  ;;  %v303_v47 = vmul.f32 32.0, %v2376_v46  ;;  %vm307_vm6 = vweird.f32 %v2376_v46  ;;  %v438_v0 = vld [vmem:[%s2621_s24 + $0x18] sm:$0xff]  ;;  %424 = vmatpush.msra.mxu3 %v407_v63  ;;  %v406_v2 = vld [vmem:[%s2611_s14 + $0x10] sm:$0xff]  ;;  %s3213_s21 = sld [smem:[#allocation15_spill]] }
  0x6f   :  { %238 = vmatpush.msra.mxu0 %v211_v8  ;;  %v274_v27 = vld [vmem:[%s2581_s17] sm:$0x1]  ;;  %v279_v33 = vrot.slane %v273_v26, 1  ;;  %v285_v34 = vrot.slane %v273_v26, 5  ;;  %v437_v3 = vld [vmem:[%s2621_s24 + $0x10] sm:$0xff]  ;;  %392 = vmatpush.msra.mxu2 %v367_v1  ;;  %v366_v4 = vld [vmem:[%s2601_s3 + $0x8] sm:$0xff] }
  0x70   :  { %266 = vmatpush.msra.mxu1 %v219_v12  ;;  %v275_v28 = vadd.f32 %v274_v27, %v273_v26  ;;  %v2345_v29 = vld [vmem:[%s2576_s13] ss:$0 sm:$0xff]  ;;  %v304_v48 = vsub.f32 1.0, %v303_v47  ;;  %425 = vmatpush.msra.mxu3 %v406_v2  ;;  %v405_v5 = vld [vmem:[%s2611_s14 + $0x8] sm:$0xff]  ;;  %s3211_s13 = sld [smem:[#allocation14_spill]] }
  0x71   :  { %239 = vmatpush.msra.mxu0 %v210_v10  ;;  %v2346_v38 = vld [vmem:[%s2636_s12] ss:$0 sm:$0xff]  ;;  %v436_v6 = vld [vmem:[%s2621_s24 + $0x8] sm:$0xff]  ;;  %393 = vmatpush.msra.mxu2 %v366_v4  ;;  %s3212_s17 = sld [smem:[#allocation17_spill]] }
  0x72   :  { %267 = vmatpush.msra.mxu1 %v218_v14  ;;  %277 = vst.msk [vmem:[#allocation2] sm:$0x1] %vm276_vm1, %v275_v28  ;;  %v305_v49 = vmul.f32 %v2376_v46, %v304_v48  ;;  %426 = vmatpush.msra.mxu3 %v405_v5  ;;  %v365_v7 = vld [vmem:[%s2601_s3] sm:$0xff]  ;;  %s3221_s12 = sld [smem:[#allocation27_spill]] }
  0x73   :  { %240 = vmatpush.msra.mxu0 %v209_v13  ;;  %284 = vst.msk [vmem:[#allocation2 + $0x5] sm:$0x1] %vm276_vm1, %v275_v28  ;;  %v404_v8 = vld [vmem:[%s2611_s14] sm:$0xff]  ;;  %394 = vmatpush.msra.mxu2 %v365_v7  ;;  %vm493_vm1 = vcmask 36864   ;;  %s3226_s11 = sld [smem:[#allocation28_spill]] }
  0x74   :  { %268 = vmatpush.msra.mxu1 %v217_v16  ;;  %v306_v50 = vadd.f32 %v2376_v46, %v305_v49  ;;  %v435_v9 = vld [vmem:[%s2621_s24] sm:$0xff]  ;;  %427 = vmatpush.msra.mxu3 %v404_v8  ;;  %s3227_s15 = sld [smem:[#allocation29_spill]] }
  0x75   :  { %241 = vmatpush.msra.mxu0 %v208_v15  ;;  %2184 = vmatmul.msk.f32.vlgmr.msra.gmra.mxu1 %vm229_vm0, %v200_v18  ;;  %v2347_v28 = vld [vmem:[%s2591_s25] ss:$0 sm:$0xff]  ;;  %s3214_s25 = sld [smem:[#allocation16_spill]] }
  0x76   :  { %v2814_v51 = vsel %vm307_vm6, %v2376_v46, %v306_v50  ;;  %455 = vmatpush.msrb.mxu1 %v438_v0  ;;  %s3228_s16 = sld [smem:[#allocation33_spill]] }
  0x77   :  { %242 = vmatpush.msra.mxu0 %v207_v17  ;;  %s3229_s18 = sld [smem:[#allocation31_spill]] }
  0x78   :  { %456 = vmatpush.msrb.mxu1 %v437_v3  ;;  %s3230_s22 = sld [smem:[#allocation32_spill]] }
  0x79   :  { %243 = vmatpush.msra.mxu0 %v206_v19  ;;  %s3231_s0 = sld [smem:[#allocation34_spill]] }
  0x7a   :  { %457 = vmatpush.msrb.mxu1 %v436_v6  ;;  %s3232_s23 = sld [smem:[#allocation35_spill]] }
  0x7b   :  { %244 = vmatpush.msra.mxu0 %v205_v20 }
  0x7c   :  { %458 = vmatpush.msrb.mxu1 %v435_v9  ;;  %v535_v9 = vld [vmem:[%s3211_s13 + $0x8] sm:$0xff] }
  0x7d   :  { %245 = vmatpush.msra.mxu0 %v204_v21 }
  0x7e   :  { %655 = vmatpush.msra.mxu1 %v535_v9 }
  0x7f   :  { %246 = vmatpush.msra.mxu0 %v203_v22 }
  0x81   :  { %247 = vmatpush.msra.mxu0 %v202_v23 }
  0x83   :  { %248 = vmatpush.msra.mxu0 %v201_v24 }
  0x84   :  { %249 = vmatmul.f32.vlgmr.msra.gmra.mxu0 %v199_v25 }
  0xf2   :  { %v270_v31 = vpop.f32.mrf.mxu1 }
 0x101   :  { %v250_v30 = vpop.f32.mrf.mxu0 }
 0x102   :  { %v251_v32 = vadd.f32 %v2345_v29, %v250_v30  ;;  %v2348_v30 = vld [vmem:[%s2596_s29] ss:$0 sm:$0xff]  ;;  %s3215_s29 = sld [smem:[#allocation18_spill]] }
 0x104   :  { %v271_v35 = vadd.f32 %v270_v31, %v251_v32 }
 0x106   :  { %v281_v36 = vadd.f32 %v279_v33, %v271_v35  ;;  %v287_v37 = vadd.f32 %v285_v34, %v271_v35 }
 0x108   :  { %283 = vst.msk [vmem:[#allocation2 + $0x1] sm:$0xf] %vm282_vm2, %v281_v36  ;;  %vm505_vm2 = vcmask 39936  }
 0x109   :  { %289 = vst.msk [vmem:[#allocation2 + $0x2] sm:$0xf0] %vm288_vm3, %v287_v37  ;;  %vm560_vm3 = vcmask 258048  }
 0x110   :  { %v291_v39 = vld [vmem:[#allocation2 + $0x8] sm:$0x3]  ;;  %v290_v40 = vld [vmem:[#allocation2] sm:$0xff] }
 0x111   :  { %v299_v41 = vsel %vm298_vm4, %v291_v39, 0.0  ;;  %v295_v42 = vsel %vm294_vm5, %v290_v40, 0.0  ;;  %v361_v43 = vadd.f32 %v2346_v38, %v290_v40  ;;  %v362_v44 = vadd.f32 %v2346_v38, %v291_v39  ;;  %v2349_v38 = vld [vmem:[%s2626_s30] ss:$0 sm:$0xff] }
 0x112   :  { %300 = vadd.xlane.f32.xlu1 %v299_v41  ;;  %296 = vadd.xlane.f32.xlu0 %v295_v42  ;;  %v2350_v41 = vld [vmem:[%s3209_s5] ss:$0 sm:$0xff] }
 0x113   :  { %364 = vst.msk [vmem:[#allocation2 + $0x8] sm:$0x3] %vm298_vm4, %v362_v44  ;;  %v2351_v42 = vld [vmem:[%s3210_s9] ss:$0 sm:$0xff] }
 0x114   :  { %363 = vst.msk [vmem:[#allocation2] sm:$0xff] %vm294_vm5, %v361_v43 }
 0x185   :  { %v301_v52 = vpop.xlane.xlu1 %300  ;;  %v297_v53 = vpop.xlane.xlu0 %296 }
 0x186   :  { %v310_v54 = vmul.f32 %v2814_v51, %v301_v52  ;;  %v309_v55 = vmul.f32 %v2814_v51, %v297_v53 }
 0x188   :  { %v2818_v56 = vsub.f32 %v291_v39, %v310_v54  ;;  %v311_v57 = vsub.f32 %v290_v40, %v309_v55 }
 0x18a   :  { %v314_v58 = vmul.f32 %v2818_v56, %v2818_v56  ;;  %v313_v59 = vmul.f32 %v311_v57, %v311_v57 }
 0x18c   :  { %v318_v60 = vsel %vm298_vm4, %v314_v58, 0.0  ;;  %v315_v61 = vsel %vm294_vm5, %v313_v59, 0.0 }
 0x18d   :  { %319 = vadd.xlane.f32.xlu1 %v318_v60  ;;  %316 = vadd.xlane.f32.xlu0 %v315_v61 }
 0x200   :  { %v320_v10 = vpop.xlane.xlu1 %319  ;;  %v317_v11 = vpop.xlane.xlu0 %316 }
 0x201   :  { %v322_v12 = vmul.f32 %v320_v10, %v2814_v51  ;;  %v321_v13 = vmul.f32 %v317_v11, %v2814_v51 }
 0x203   :  { %v324_v14 = vadd.f32 1e-06, %v322_v12  ;;  %v323_v15 = vadd.f32 1e-06, %v321_v13  ;;  %v2211_v12 = vld [vmem:[%s2611_s14 + $0x38] sm:$0xff]  ;;  %v2210_v13 = vld [vmem:[%s2611_s14 + $0x30] sm:$0xff] }
 0x205   :  { %2377 = vrsqrt.f32 %v324_v14  ;;  %vm331_vm9 = vweird.f32 %v323_v15  ;;  %vm341_vm11 = vweird.f32 %v324_v14 }
 0x206   :  { %2379 = vrsqrt.f32 %v323_v15 }
 0x20b   :  { %v2378_v16 = vpop.eup %2377 }
 0x20c   :  { %v2380_v17 = vpop.eup %2379  ;;  %v336_v18 = vmul.f32 %v2378_v16, %v324_v14  ;;  %vm342_vm8 = vweird.f32 %v2378_v16  ;;  %v2209_v14 = vld [vmem:[%s2611_s14 + $0x28] sm:$0xff] }
 0x20d   :  { %v326_v19 = vmul.f32 %v2380_v17, %v323_v15  ;;  %vm332_vm7 = vweird.f32 %v2380_v17  ;;  %vm343_vm12 = vmor %vm341_vm11, %vm342_vm8  ;;  %v2208_v15 = vld [vmem:[%s2611_s14 + $0x20] sm:$0xff]  ;;  %s3217_s14 = sld [smem:[#allocation20_spill]] }
 0x20e   :  { %v337_v20 = vmul.f32 %v2378_v16, %v336_v18  ;;  %vm333_vm10 = vmor %vm331_vm9, %vm332_vm7  ;;  %v2203_v18 = vld [vmem:[%s2601_s3 + $0x30] sm:$0xff] }
 0x20f   :  { %v327_v21 = vmul.f32 %v2380_v17, %v326_v19  ;;  %v2202_v19 = vld [vmem:[%s2601_s3 + $0x28] sm:$0xff] }
 0x210   :  { %v338_v22 = vmul.f32 0.5, %v337_v20  ;;  %v2201_v20 = vld [vmem:[%s2601_s3 + $0x20] sm:$0xff] }
 0x211   :  { %v328_v23 = vmul.f32 0.5, %v327_v21 }
 0x212   :  { %v339_v24 = vsub.f32 1.5, %v338_v22 }
 0x213   :  { %v329_v25 = vsub.f32 1.5, %v328_v23 }
 0x214   :  { %v340_v26 = vmul.f32 %v2378_v16, %v339_v24  ;;  %v2352_v24 = vld [vmem:[%s3210_s9 + $0x1] ss:$0 sm:$0xff] }
 0x215   :  { %v330_v27 = vmul.f32 %v2380_v17, %v329_v25 }
 0x216   :  { %v344_v32 = vsel %vm343_vm12, %v2378_v16, %v340_v26  ;;  %v534_v16 = vld [vmem:[%s3211_s13] sm:$0xff] }
 0x217   :  { %v334_v29 = vsel %vm333_vm10, %v2380_v17, %v330_v27  ;;  %v346_v34 = vmul.f32 %v344_v32, %v2818_v56  ;;  %v2204_v17 = vld [vmem:[%s2601_s3 + $0x38] sm:$0xff]  ;;  %656 = vmatpush.msra.mxu1 %v534_v16  ;;  %s3216_s3 = sld [smem:[#allocation19_spill]] }
 0x218   :  { %v345_v31 = vmul.f32 %v334_v29, %v311_v57 }
 0x219   :  { %v351_v36 = vmul.f32 %v2347_v28, %v346_v34 }
 0x21a   :  { %v350_v33 = vmul.f32 %v2347_v28, %v345_v31 }
 0x21b   :  { %v2849_v37 = vadd.f32 %v2348_v30, %v351_v36  ;;  %v533_v36 = vld [vmem:[#allocation2] sm:$0x1f] }
 0x21c   :  { %v2841_v35 = vadd.f32 %v2348_v30, %v350_v33 }
 0x21e   :  { %2185 = vmatmul.msk.f32.vlgmr.msra.gmra.mxu2 %vm294_vm5, %v2841_v35  ;;  %2187 = vmatmul.msk.f32.vlgmr.msra.gmra.mxu3 %vm294_vm5, %v2841_v35 }
 0x21f   :  { %2189 = vmatmul.msk.f32.vlgmr.msrb.gmra.mxu1 %vm294_vm5, %v2841_v35 }
 0x226   :  { %2186 = vmatmul.msk.f32.gmra.mxu2 %vm294_vm5, %v2849_v37  ;;  %2188 = vmatmul.msk.f32.gmra.mxu3 %vm294_vm5, %v2849_v37 }
 0x227   :  { %2190 = vmatmul.msk.f32.gmra.mxu1 %vm294_vm5, %v2849_v37 }
 0x29c   :  { %v460_v39 = vpop.f32.mrf.mxu1 }
 0x29d   :  { %v461_v40 = vadd.f32 %v2349_v38, %v460_v39 }
 0x29f   :  { %2193 = vmatpush.msk.msrb.mxu3 %vm509_vm13, %v461_v40  ;;  %v607_v50 = vrot.slane %v461_v40, 5 }
 0x2a1   :  { %v396_v43 = vpop.f32.mrf.mxu2  ;;  %v429_v44 = vpop.f32.mrf.mxu3 }
 0x2a2   :  { %v397_v45 = vadd.f32 %v2350_v41, %v396_v43  ;;  %v430_v46 = vadd.f32 %v2351_v42, %v429_v44  ;;  %v2353_v43 = vld [vmem:[%s3209_s5 + $0x1] ss:$0 sm:$0xff]  ;;  %s2497_s5 = scalar_lea.hbm %s2496_s1, 2 }
 0x2a3   :  { %p2498_p10 = scmp.ne.s32.totalorder %s2496_s1, %s2497_s5 }
 0x2a4   :  { %v402_v47 = vmul.f32 0.25, %v397_v45  ;;  %v463_v48 = vpop.f32.mrf.mxu1  ;;  %2191 = vmatpush.xpose.msk.msrb.mxu2 %vm466_vm14, %v430_v46  ;;  %v568_v58 = vrot.slane %v430_v46, 5 }
 0x2a5   :  { %v464_v49 = vadd.f32 %v2349_v38, %v463_v48 }
 0x2a6   :  { %v564_v61 = vrot.slane %v402_v47, 5 }
 0x2a7   :  { %v608_v52 = vrot.slane %v464_v49, 5  ;;  %2192 = vmatmul.msk.f32.vlgmr.msrb.gmra.mxu2 %vm466_vm14, %v402_v47 }
 0x2a8   :  { %553 = vmatpush.msra.mxu2 %v535_v9 }
 0x2a9   :  { %v399_v53 = vpop.f32.mrf.mxu2  ;;  %v432_v54 = vpop.f32.mrf.mxu3  ;;  %v609_v55 = vsel %vm563_vm15, %v607_v50, %v608_v52 }
 0x2aa   :  { %v400_v56 = vadd.f32 %v2350_v41, %v399_v53  ;;  %v433_v57 = vadd.f32 %v2351_v42, %v432_v54  ;;  %2198 = vmatpush.msk.msrb.mxu0 %vm509_vm13, %v609_v55  ;;  %554 = vmatpush.msra.mxu2 %v534_v16  ;;  %v2218_v53 = vld [vmem:[%s2621_s24 + $0x38] sm:$0xff]  ;;  %v2217_v54 = vld [vmem:[%s2621_s24 + $0x30] sm:$0xff]  ;;  %v2216_v55 = vld [vmem:[%s2621_s24 + $0x28] sm:$0xff] }
 0x2ac   :  { %v403_v59 = vmul.f32 0.25, %v400_v56  ;;  %v569_v60 = vrot.slane %v433_v57, 5  ;;  %685 = vmatpush.msrb.mxu2 %v2204_v17  ;;  %753 = vmatpush.msra.mxu0 %v2218_v53  ;;  %v2215_v56 = vld [vmem:[%s2621_s24 + $0x20] sm:$0xff]  ;;  %s3218_s24 = sld [smem:[#allocation30_spill]] }
 0x2ae   :  { %v565_v62 = vrot.slane %v403_v59, 5  ;;  %v570_v63 = vsel %vm563_vm15, %v568_v58, %v569_v60  ;;  %686 = vmatpush.msrb.mxu2 %v2203_v18  ;;  %754 = vmatpush.msra.mxu0 %v2217_v54 }
 0x2af   :  { %2196 = vmatpush.xpose.msk.msra.mxu3 %vm466_vm14, %v570_v63  ;;  %v2354_v63 = vld [vmem:[%s2626_s30 + $0x1] ss:$0 sm:$0xff]  ;;  %s3219_s30 = sld [smem:[#allocation23_spill]] }
 0x2b0   :  { %v566_v0 = vsel %vm563_vm15, %v564_v61, %v565_v62  ;;  %687 = vmatpush.msrb.mxu2 %v2202_v19  ;;  %755 = vmatpush.msra.mxu0 %v2216_v55  ;;  %v1017_v55 = vld [vmem:[%s3212_s17 + $0x18] sm:$0xff] }
 0x2b2   :  { %688 = vmatpush.msrb.mxu2 %v2201_v20  ;;  %756 = vmatpush.msra.mxu0 %v2215_v56 }
 0x32a   :  { %v490_v1 = vpop.f32.mrf.mxu2 }
 0x32b   :  { %v494_v2 = vsel %vm493_vm1, %v490_v1, -inf }
 0x32c   :  { %495 = vmax.xlane.f32.xlu2 %v494_v2 }
 0x39f   :  { %v496_v3 = vpop.xlane.xlu2 %495 }
 0x3a0   :  { %v497_v4 = vsub.f32 %v490_v1, %v496_v3 }
 0x3a2   :  { %v498_v5 = vmul.f32 1.442695, %v497_v4 }
 0x3a4   :  { %2381 = vpow2.f32 %v498_v5 }
 0x3aa   :  { %v2382_v6 = vpop.eup %2381 }
 0x3ab   :  { %v500_v7 = vsel %vm493_vm1, %v2382_v6, 0.0 }
 0x3ac   :  { %501 = vadd.xlane.f32.xlu2 %v500_v7  ;;  %v635_v7 = vld [vmem:[#allocation2 + $0x5] sm:$0x1f] }
 0x41f   :  { %v502_v8 = vpop.xlane.xlu2 %501 }
 0x420   :  { %2383 = vrcp.f32 %v502_v8 }
 0x426   :  { %v2384_v10 = vpop.eup %2383 }
 0x427   :  { %v504_v11 = vmul.f32 %v2384_v10, %v2382_v6 }
 0x429   :  { %2194 = vmatmul.msk.f32.vlgmr.msrb.gmra.mxu3 %vm505_vm2, %v504_v11 }
 0x42a   :  { %720 = vmatpush.msrb.mxu3 %v2211_v12 }
 0x42c   :  { %721 = vmatpush.msrb.mxu3 %v2210_v13 }
 0x42e   :  { %722 = vmatpush.msrb.mxu3 %v2209_v14 }
 0x430   :  { %723 = vmatpush.msrb.mxu3 %v2208_v15 }
 0x431   :  { %2197 = vmatmul.msk.f32.vlgmr.msra.gmra.mxu3 %vm466_vm14, %v566_v0 }
 0x439   :  { %2213 = vmatmul.msk.f32.vlgmr.msrb.gmra.mxu3 %vm294_vm5, %v2841_v35 }
 0x441   :  { %2214 = vmatmul.msk.f32.gmra.mxu3 %vm294_vm5, %v2849_v37 }
 0x4ac   :  { %v530_v21 = vpop.f32.mrf.mxu3 }
 0x4ad   :  { %2195 = vmatmul.msk.f32.vlgmr.msra.gmra.mxu2 %vm466_vm14, %v530_v21 }
 0x4b4   :  { %v592_v22 = vpop.f32.mrf.mxu3 }
 0x4b5   :  { %2206 = vmatmul.msk.f32.vlgmr.msrb.gmra.mxu2 %vm294_vm5, %v2841_v35  ;;  %v595_v23 = vsel %vm493_vm1, %v592_v22, -inf }
 0x4b6   :  { %596 = vmax.xlane.f32.xlu0 %v595_v23  ;;  %v2234_v23 = vld [vmem:[%s3211_s13 + $0x18] sm:$0xff] }
 0x4b7   :  { %848 = vmatpush.msra.mxu2 %v2234_v23 }
 0x4bc   :  { %v725_v25 = vpop.f32.mrf.mxu3 }
 0x4bd   :  { %v726_v26 = vadd.f32 %v2352_v24, %v725_v25  ;;  %2207 = vmatmul.msk.f32.gmra.mxu2 %vm294_vm5, %v2849_v37 }
 0x4bf   :  { %2222 = vmatpush.xpose.msk.msrb.mxu1 %vm466_vm14, %v726_v26  ;;  %v861_v29 = vrot.slane %v726_v26, 5 }
 0x4c4   :  { %v728_v27 = vpop.f32.mrf.mxu3 }
 0x4c5   :  { %v729_v28 = vadd.f32 %v2352_v24, %v728_v27  ;;  %v2233_v24 = vld [vmem:[%s3211_s13 + $0x10] sm:$0xff] }
 0x4c6   :  { %849 = vmatpush.msra.mxu2 %v2233_v24 }
 0x4c7   :  { %v862_v30 = vrot.slane %v729_v28, 5 }
 0x4c8   :  { %1040 = vmatpush.msrb.mxu2 %v1017_v55 }
 0x4c9   :  { %v863_v31 = vsel %vm563_vm15, %v861_v29, %v862_v30 }
 0x4ca   :  { %2229 = vmatpush.xpose.msk.msra.mxu3 %vm466_vm14, %v863_v31 }
 0x529   :  { %v597_v32 = vpop.xlane.xlu0 %596 }
 0x52a   :  { %v598_v33 = vsub.f32 %v592_v22, %v597_v32 }
 0x52c   :  { %v599_v34 = vmul.f32 1.442695, %v598_v33 }
 0x52e   :  { %2385 = vpow2.f32 %v599_v34 }
 0x530   :  { %v556_v38 = vpop.f32.mrf.mxu2 }
 0x531   :  { %v559_v39 = vadd.f32 %v556_v38, %v533_v36 }
 0x533   :  { %561 = vst.msk [vmem:[#allocation2] sm:$0x1f] %vm560_vm3, %v559_v39 }
 0x534   :  { %v2386_v40 = vpop.eup %2385 }
 0x535   :  { %v601_v41 = vsel %vm493_vm1, %v2386_v40, 0.0 }
 0x536   :  { %602 = vadd.xlane.f32.xlu1 %v601_v41 }
 0x538   :  { %v690_v42 = vpop.f32.mrf.mxu2 }
 0x539   :  { %v691_v44 = vadd.f32 %v2353_v43, %v690_v42 }
 0x53a   :  { %v827_v36 = vld [vmem:[#allocation2] sm:$0x1f] }
 0x53b   :  { %v696_v46 = vmul.f32 0.25, %v691_v44 }
 0x53d   :  { %v857_v49 = vrot.slane %v696_v46, 5 }
 0x540   :  { %v693_v45 = vpop.f32.mrf.mxu2 }
 0x541   :  { %v694_v47 = vadd.f32 %v2353_v43, %v693_v45 }
 0x543   :  { %v697_v48 = vmul.f32 0.25, %v694_v47 }
 0x545   :  { %v858_v50 = vrot.slane %v697_v48, 5 }
 0x547   :  { %v859_v52 = vsel %vm563_vm15, %v857_v49, %v858_v50 }
 0x548   :  { %2230 = vmatmul.msk.f32.vlgmr.msra.gmra.mxu3 %vm466_vm14, %v859_v52 }
 0x5a9   :  { %v603_v57 = vpop.xlane.xlu1 %602 }
 0x5aa   :  { %2387 = vrcp.f32 %v603_v57  ;;  %v1016_v57 = vld [vmem:[%s3212_s17 + $0x10] sm:$0xff] }
 0x5ab   :  { %1041 = vmatpush.msrb.mxu2 %v1016_v57 }
 0x5b0   :  { %v2388_v58 = vpop.eup %2387 }
 0x5b1   :  { %v605_v59 = vmul.f32 %v2388_v58, %v2386_v40  ;;  %v1015_v58 = vld [vmem:[%s3212_s17 + $0x8] sm:$0xff] }
 0x5b2   :  { %1042 = vmatpush.msrb.mxu2 %v1015_v58 }
 0x5b3   :  { %2199 = vmatmul.msk.f32.vlgmr.msrb.gmra.mxu0 %vm505_vm2, %v605_v59  ;;  %v1014_v59 = vld [vmem:[%s3212_s17] sm:$0xff] }
 0x5b4   :  { %1043 = vmatpush.msrb.mxu2 %v1014_v59 }
 0x5bb   :  { %2220 = vmatmul.msk.f32.vlgmr.msra.gmra.mxu0 %vm294_vm5, %v2841_v35 }
 0x5c3   :  { %2221 = vmatmul.msk.f32.gmra.mxu0 %vm294_vm5, %v2849_v37 }
 0x5cb   :  { %v885_v60 = vpop.f32.mrf.mxu3 }
 0x5cc   :  { %v888_v61 = vsel %vm493_vm1, %v885_v60, -inf }
 0x5cd   :  { %889 = vmax.xlane.f32.xlu0 %v888_v61 }
 0x630   :  { %v632_v62 = vpop.f32.mrf.mxu0 }
 0x631   :  { %2200 = vmatmul.msk.f32.vlgmr.msra.gmra.mxu1 %vm466_vm14, %v632_v62 }
 0x638   :  { %v758_v0 = vpop.f32.mrf.mxu0 }
 0x639   :  { %v759_v1 = vadd.f32 %v2354_v63, %v758_v0  ;;  %2223 = vmatmul.msk.f32.vlgmr.msrb.gmra.mxu1 %vm466_vm14, %v696_v46 }
 0x63b   :  { %2224 = vmatpush.msk.msra.mxu1 %vm509_vm13, %v759_v1  ;;  %v900_v35 = vrot.slane %v759_v1, 5 }
 0x63d   :  { %948 = vmatpush.msrb.mxu1 %v2234_v23 }
 0x63f   :  { %949 = vmatpush.msrb.mxu1 %v2233_v24 }
 0x640   :  { %v761_v2 = vpop.f32.mrf.mxu0  ;;  %v890_v5 = vpop.xlane.xlu0 %889 }
 0x641   :  { %v762_v3 = vadd.f32 %v2354_v63, %v761_v2  ;;  %v891_v6 = vsub.f32 %v885_v60, %v890_v5 }
 0x643   :  { %v901_v4 = vrot.slane %v762_v3, 5  ;;  %v892_v10 = vmul.f32 1.442695, %v891_v6 }
 0x645   :  { %v902_v37 = vsel %vm563_vm15, %v900_v35, %v901_v4  ;;  %2389 = vpow2.f32 %v892_v10  ;;  %v2355_v10 = vld [vmem:[%s3213_s21] ss:$0 sm:$0xff] }
 0x646   :  { %2231 = vmatpush.msk.msrb.mxu0 %vm509_vm13, %v902_v37 }
 0x64b   :  { %v2390_v13 = vpop.eup %2389 }
 0x64c   :  { %v894_v14 = vsel %vm493_vm1, %v2390_v13, 0.0 }
 0x6ae   :  { %v658_v8 = vpop.f32.mrf.mxu1 }
 0x6af   :  { %v661_v9 = vadd.f32 %v658_v8, %v635_v7 }
 0x6b1   :  { %662 = vst.msk [vmem:[#allocation2 + $0x5] sm:$0x1f] %vm560_vm3, %v661_v9 }
 0x6b6   :  { %v787_v11 = vpop.f32.mrf.mxu1 }
 0x6b7   :  { %v790_v12 = vsel %vm493_vm1, %v787_v11, -inf }
 0x6b8   :  { %791 = vmax.xlane.f32.xlu2 %v790_v12  ;;  %v928_v30 = vld [vmem:[#allocation2 + $0x5] sm:$0x1f] }
 0x6c0   :  { %895 = vadd.xlane.f32.xlu2 %v894_v14  ;;  %v2356_v14 = vld [vmem:[%s3214_s25] ss:$0 sm:$0xff] }
 0x72b   :  { %v792_v15 = vpop.xlane.xlu2 %791 }
 0x72c   :  { %v793_v16 = vsub.f32 %v787_v11, %v792_v15 }
 0x72e   :  { %v794_v17 = vmul.f32 1.442695, %v793_v16 }
 0x730   :  { %2391 = vpow2.f32 %v794_v17 }
 0x733   :  { %v896_v18 = vpop.xlane.xlu2 %895 }
 0x734   :  { %2393 = vrcp.f32 %v896_v18 }
 0x736   :  { %v2392_v19 = vpop.eup %2391 }
 0x737   :  { %v796_v20 = vsel %vm493_vm1, %v2392_v19, 0.0 }
 0x738   :  { %797 = vadd.xlane.f32.xlu1 %v796_v20 }
 0x73a   :  { %v2394_v21 = vpop.eup %2393 }
 0x73b   :  { %v898_v22 = vmul.f32 %v2394_v21, %v2390_v13 }
 0x73d   :  { %2232 = vmatmul.msk.f32.vlgmr.msrb.gmra.mxu0 %vm505_vm2, %v898_v22 }
 0x7ab   :  { %v798_v25 = vpop.xlane.xlu1 %797 }
 0x7ac   :  { %2395 = vrcp.f32 %v798_v25 }
 0x7b2   :  { %v2396_v26 = vpop.eup %2395 }
 0x7b3   :  { %v800_v27 = vmul.f32 %v2396_v26, %v2392_v19  ;;  %v2357_v19 = vld [vmem:[%s3215_s29] ss:$0 sm:$0xff]  ;;  %v1146_v26 = vld [vmem:[%s3216_s3 + $0x38] sm:$0xff] }
 0x7b4   :  { %1165 = vmatpush.msrb.mxu3 %v1146_v26 }
 0x7b5   :  { %2225 = vmatmul.msk.f32.vlgmr.msra.gmra.mxu1 %vm505_vm2, %v800_v27 }
 0x7ba   :  { %v925_v28 = vpop.f32.mrf.mxu0 }
 0x7bd   :  { %2235 = vmatmul.msk.f32.vlgmr.msrb.gmra.mxu1 %vm466_vm14, %v925_v28 }
 0x832   :  { %v824_v29 = vpop.f32.mrf.mxu1 }
 0x833   :  { %2228 = vmatmul.msk.f32.vlgmr.msra.gmra.mxu2 %vm466_vm14, %v824_v29 }
 0x83a   :  { %v951_v31 = vpop.f32.mrf.mxu1 }
 0x83b   :  { %v954_v32 = vadd.f32 %v951_v31, %v928_v30  ;;  %v1145_v30 = vld [vmem:[%s3216_s3 + $0x30] sm:$0xff] }
 0x83c   :  { %1166 = vmatpush.msrb.mxu3 %v1145_v30 }
 0x83d   :  { %955 = vst.msk [vmem:[#allocation2 + $0x5] sm:$0x1f] %vm560_vm3, %v954_v32 }
 0x844   :  { %v2928_v33 = vld [vmem:[#allocation2 + $0x8] sm:$0x3] }
 0x845   :  { %v963_v34 = vsel %vm298_vm4, %v2928_v33, 0.0 }
 0x846   :  { %964 = vadd.xlane.f32.xlu2 %v963_v34 }
 0x8b6   :  { %v851_v38 = vpop.f32.mrf.mxu2 }
 0x8b7   :  { %v854_v39 = vadd.f32 %v851_v38, %v827_v36  ;;  %v1144_v36 = vld [vmem:[%s3216_s3 + $0x28] sm:$0xff] }
 0x8b8   :  { %1167 = vmatpush.msrb.mxu3 %v1144_v36 }
 0x8b9   :  { %855 = vst.msk [vmem:[#allocation2] sm:$0x1f] %vm560_vm3, %v854_v39  ;;  %v965_v40 = vpop.xlane.xlu2 %964 }
 0x8ba   :  { %v967_v41 = vmul.f32 %v965_v40, %v2814_v51 }
 0x8bc   :  { %v969_v43 = vsub.f32 %v2928_v33, %v967_v41  ;;  %v1143_v41 = vld [vmem:[%s3216_s3 + $0x20] sm:$0xff] }
 0x8bd   :  { %1168 = vmatpush.msrb.mxu3 %v1143_v41 }
 0x8be   :  { %v971_v45 = vmul.f32 %v969_v43, %v969_v43 }
 0x8c0   :  { %v2934_v42 = vld [vmem:[#allocation2] sm:$0xff]  ;;  %v975_v46 = vsel %vm298_vm4, %v971_v45, 0.0 }
 0x8c1   :  { %v960_v44 = vsel %vm294_vm5, %v2934_v42, 0.0 }
 0x8c2   :  { %961 = vadd.xlane.f32.xlu0 %v960_v44 }
 0x8ca   :  { %976 = vadd.xlane.f32.xlu0 %v975_v46  ;;  %v1142_v46 = vld [vmem:[%s3216_s3 + $0x18] sm:$0xff] }
 0x8cb   :  { %1169 = vmatpush.msrb.mxu3 %v1142_v46 }
 0x935   :  { %v962_v47 = vpop.xlane.xlu0 %961 }
 0x936   :  { %v966_v48 = vmul.f32 %v962_v47, %v2814_v51 }
 0x938   :  { %v968_v49 = vsub.f32 %v2934_v42, %v966_v48 }
 0x93a   :  { %v970_v50 = vmul.f32 %v968_v49, %v968_v49 }
 0x93c   :  { %v972_v52 = vsel %vm294_vm5, %v970_v50, 0.0  ;;  %v1141_v50 = vld [vmem:[%s3216_s3 + $0x10] sm:$0xff] }
 0x93d   :  { %973 = vadd.xlane.f32.xlu1 %v972_v52  ;;  %v977_v53 = vpop.xlane.xlu0 %976  ;;  %1170 = vmatpush.msrb.mxu3 %v1141_v50 }
 0x93e   :  { %v979_v54 = vmul.f32 %v977_v53, %v2814_v51 }
 0x940   :  { %v981_v56 = vadd.f32 1e-06, %v979_v54 }
 0x942   :  { %2397 = vrsqrt.f32 %v981_v56  ;;  %vm998_vm10 = vweird.f32 %v981_v56 }
 0x948   :  { %v2398_v61 = vpop.eup %2397 }
 0x949   :  { %v993_v0 = vmul.f32 %v2398_v61, %v981_v56  ;;  %vm999_vm7 = vweird.f32 %v2398_v61  ;;  %v1140_v56 = vld [vmem:[%s3216_s3 + $0x8] sm:$0xff] }
 0x94a   :  { %vm1000_vm11 = vmor %vm998_vm10, %vm999_vm7  ;;  %1171 = vmatpush.msrb.mxu3 %v1140_v56  ;;  %v2358_v56 = vld [vmem:[%s3217_s14] ss:$0 sm:$0xff] }
 0x94b   :  { %v994_v1 = vmul.f32 %v2398_v61, %v993_v0 }
 0x94d   :  { %v995_v3 = vmul.f32 0.5, %v994_v1 }
 0x94f   :  { %v996_v37 = vsub.f32 1.5, %v995_v3 }
 0x951   :  { %v997_v7 = vmul.f32 %v2398_v61, %v996_v37 }
 0x953   :  { %v1001_v12 = vsel %vm1000_vm11, %v2398_v61, %v997_v7 }
 0x954   :  { %v1003_v16 = vmul.f32 %v1001_v12, %v969_v43 }
 0x956   :  { %v1008_v17 = vmul.f32 %v2355_v10, %v1003_v16 }
 0x958   :  { %v1013_v18 = vadd.f32 %v2356_v14, %v1008_v17 }
 0x9b0   :  { %v974_v60 = vpop.xlane.xlu1 %973 }
 0x9b1   :  { %v978_v62 = vmul.f32 %v974_v60, %v2814_v51  ;;  %v1139_v60 = vld [vmem:[%s3216_s3] sm:$0xff] }
 0x9b2   :  { %1172 = vmatpush.msrb.mxu3 %v1139_v60 }
 0x9b3   :  { %v980_v63 = vadd.f32 1e-06, %v978_v62 }
 0x9b5   :  { %2399 = vrsqrt.f32 %v980_v63  ;;  %vm988_vm8 = vweird.f32 %v980_v63 }
 0x9bb   :  { %v2400_v2 = vpop.eup %2399 }
 0x9bc   :  { %v983_v35 = vmul.f32 %v2400_v2, %v980_v63  ;;  %vm989_vm6 = vweird.f32 %v2400_v2 }
 0x9bd   :  { %vm990_vm9 = vmor %vm988_vm8, %vm989_vm6 }
 0x9be   :  { %v984_v4 = vmul.f32 %v2400_v2, %v983_v35 }
 0x9c0   :  { %v985_v5 = vmul.f32 0.5, %v984_v4 }
 0x9c2   :  { %v986_v6 = vsub.f32 1.5, %v985_v5 }
 0x9c4   :  { %v987_v8 = vmul.f32 %v2400_v2, %v986_v6 }
 0x9c6   :  { %v991_v9 = vsel %vm990_vm9, %v2400_v2, %v987_v8 }
 0x9c7   :  { %v1002_v11 = vmul.f32 %v991_v9, %v968_v49 }
 0x9c9   :  { %v1007_v13 = vmul.f32 %v2355_v10, %v1002_v11 }
 0x9cb   :  { %v1012_v15 = vadd.f32 %v2356_v14, %v1007_v13 }
 0x9cd   :  { %2236 = vmatmul.msk.f32.vlgmr.msrb.gmra.mxu2 %vm294_vm5, %v1012_v15 }
 0x9d5   :  { %2237 = vmatmul.msk.f32.gmra.mxu2 %vm294_vm5, %v1013_v18 }
 0xa50   :  { %v1045_v20 = vpop.f32.mrf.mxu2 }
 0xa51   :  { %v2954_v21 = vadd.f32 %v2357_v19, %v1045_v20 }
 0xa53   :  { %v2957_v22 = vmul.f32 0.70710677, %v2954_v21 }
 0xa55   :  { %v1055_v23 = vmul.f32 %v2957_v22, %v2957_v22 }
 0xa57   :  { %v1056_v24 = vmin.f32 %v1055_v23, 16.0 }
 0xa58   :  { %v1048_v25 = vpop.f32.mrf.mxu2 }
 0xa59   :  { %v1057_v27 = vmul.f32 2.1237322e-06, %v1056_v24  ;;  %v1068_v28 = vmul.f32 3.8918573e-05, %v1056_v24  ;;  %v2962_v29 = vadd.f32 %v2357_v19, %v1048_v25 }
 0xa5b   :  { %v1058_v31 = vadd.f32 0.00028619796, %v1057_v27  ;;  %v1069_v32 = vadd.f32 0.001143296, %v1068_v28  ;;  %v2966_v34 = vmul.f32 0.70710677, %v2962_v29 }
 0xa5d   :  { %v1059_v38 = vmul.f32 %v1058_v31, %v1056_v24  ;;  %v1070_v39 = vmul.f32 %v1069_v32, %v1056_v24  ;;  %v1095_v40 = vmul.f32 %v2966_v34, %v2966_v34 }
 0xa5f   :  { %v1071_v43 = vadd.f32 0.014752088, %v1070_v39  ;;  %v1060_v44 = vadd.f32 0.0036580483, %v1059_v38  ;;  %v1096_v45 = vmin.f32 %v1095_v40, 16.0 }
 0xa61   :  { %v1072_v47 = vmul.f32 %v1071_v43, %v1056_v24  ;;  %v1097_v48 = vmul.f32 2.1237322e-06, %v1096_v45  ;;  %v1108_v49 = vmul.f32 3.8918573e-05, %v1096_v45  ;;  %v1061_v53 = vmul.f32 %v1060_v44, %v1056_v24 }
 0xa62   :  { %v1051_v44 = vmul.f32 0.5, %v2954_v21 }
 0xa63   :  { %v1073_v52 = vadd.f32 0.112945676, %v1072_v47  ;;  %v1098_v54 = vadd.f32 0.00028619796, %v1097_v48  ;;  %v1109_v55 = vadd.f32 0.001143296, %v1108_v49 }
 0xa64   :  { %v1062_v62 = vadd.f32 0.05243302, %v1061_v53 }
 0xa65   :  { %v1074_v57 = vmul.f32 %v1073_v52, %v1056_v24  ;;  %v1099_v58 = vmul.f32 %v1098_v54, %v1096_v45  ;;  %v1110_v59 = vmul.f32 %v1109_v55, %v1096_v45  ;;  %v1052_v54 = vmul.f32 0.5, %v2962_v29 }
 0xa66   :  { %v1063_v35 = vmul.f32 %v1062_v62, %v1056_v24 }
 0xa67   :  { %v1075_v61 = vadd.f32 0.4994258, %v1074_v57  ;;  %v1111_v63 = vadd.f32 0.014752088, %v1110_v59  ;;  %v1100_v1 = vadd.f32 0.0036580483, %v1099_v58 }
 0xa68   :  { %v1064_v6 = vadd.f32 0.18741608, %v1063_v35  ;;  %v2359_v59 = vld [vmem:[%s3218_s24] ss:$0 sm:$0xff] }
 0xa69   :  { %v1076_v0 = vmul.f32 %v1075_v61, %v1056_v24  ;;  %v1112_v2 = vmul.f32 %v1111_v63, %v1096_v45  ;;  %v1101_v37 = vmul.f32 %v1100_v1, %v1096_v45 }
 0xa6a   :  { %v1065_v11 = vmul.f32 %v1064_v6, %v1056_v24 }
 0xa6b   :  { %v1077_v3 = vadd.f32 1.0, %v1076_v0  ;;  %v1113_v4 = vadd.f32 0.112945676, %v1112_v2  ;;  %v1102_v8 = vadd.f32 0.05243302, %v1101_v37 }
 0xa6c   :  { %v1066_v17 = vadd.f32 1.1283791, %v1065_v11  ;;  %v1248_v11 = vld [vmem:[%s3219_s30 + $0x10] sm:$0xff] }
 0xa6d   :  { %2401 = vrcp.f32 %v1077_v3  ;;  %v1114_v5 = vmul.f32 %v1113_v4, %v1096_v45  ;;  %v1103_v14 = vmul.f32 %v1102_v8, %v1096_v45  ;;  %v1089_v16 = vand.u32 2147483648, %v1077_v3  ;;  %v1249_v8 = vld [vmem:[%s3219_s30 + $0x18] sm:$0xff] }
 0xa6e   :  { %v1087_v19 = vand.u32 2147483647, %v1077_v3  ;;  %vm1083_vm6 = vweird.f32 %v1077_v3  ;;  %v1067_v27 = vmul.f32 %v1066_v17, %v2957_v22  ;;  %1272 = vmatpush.msra.mxu0 %v1249_v8  ;;  %v1246_v17 = vld [vmem:[%s3219_s30] sm:$0xff]  ;;  %v2267_v8 = vld [vmem:[%s3220_s6 + $0x30] sm:$0xff] }
 0xa6f   :  { %v1115_v7 = vadd.f32 0.4994258, %v1114_v5  ;;  %v1104_v20 = vadd.f32 0.18741608, %v1103_v14  ;;  %v1090_v25 = vor.u32 1.1754944e-38, %v1089_v16  ;;  %v1247_v14 = vld [vmem:[%s3219_s30 + $0x8] sm:$0xff] }
 0xa70   :  { %vm1088_vm8 = vcmp.eq.f32.partialorder %v1087_v19, 8.507059e+37  ;;  %1273 = vmatpush.msra.mxu0 %v1248_v11  ;;  %v1317_v16 = vld [vmem:[%s3221_s12 + $0x8] sm:$0xff]  ;;  %v1316_v19 = vld [vmem:[%s3221_s12] sm:$0xff] }
 0xa71   :  { %v1116_v9 = vmul.f32 %v1115_v7, %v1096_v45  ;;  %v1105_v30 = vmul.f32 %v1104_v20, %v1096_v45 }
 0xa72   :  { %1274 = vmatpush.msra.mxu0 %v1247_v14 }
 0xa73   :  { %v2402_v10 = vpop.eup %2401  ;;  %v1117_v13 = vadd.f32 1.0, %v1116_v9  ;;  %v1106_v40 = vadd.f32 1.1283791, %v1105_v30  ;;  %v1288_v9 = vld [vmem:[%s3220_s6 + $0x18] sm:$0xff] }
 0xa74   :  { %v1079_v12 = vmul.f32 %v2402_v10, %v1077_v3  ;;  %vm1084_vm12 = vweird.f32 %v2402_v10  ;;  %1305 = vmatpush.msra.mxu1 %v1288_v9  ;;  %1275 = vmatpush.msra.mxu0 %v1246_v17 }
 0xa75   :  { %2403 = vrcp.f32 %v1117_v13  ;;  %vm1085_vm7 = vmor %vm1083_vm6, %vm1084_vm12  ;;  %v1129_v39 = vand.u32 2147483648, %v1117_v13  ;;  %v1127_v43 = vand.u32 2147483647, %v1117_v13  ;;  %vm1123_vm10 = vweird.f32 %v1117_v13 }
 0xa76   :  { %v1080_v15 = vsub.f32 1.0, %v1079_v12  ;;  %v1107_v45 = vmul.f32 %v1106_v40, %v2966_v34  ;;  %v1287_v12 = vld [vmem:[%s3220_s6 + $0x10] sm:$0xff]  ;;  %v2360_v40 = vld [vmem:[%s3222_s27] ss:$0 sm:$0xff] }
 0xa77   :  { %v1130_v48 = vor.u32 1.1754944e-38, %v1129_v39  ;;  %vm1128_vm12 = vcmp.eq.f32.partialorder %v1127_v43, 8.507059e+37  ;;  %1306 = vmatpush.msra.mxu1 %v1287_v12 }
 0xa78   :  { %v1081_v18 = vmul.f32 %v2402_v10, %v1080_v15  ;;  %v1286_v15 = vld [vmem:[%s3220_s6 + $0x8] sm:$0xff] }
 0xa79   :  { %1307 = vmatpush.msra.mxu1 %v1286_v15  ;;  %v1512_v15 = vld [vmem:[%s3227_s15 + $0x8] sm:$0xff] }
 0xa7a   :  { %v1082_v23 = vadd.f32 %v2402_v10, %v1081_v18  ;;  %v1285_v18 = vld [vmem:[%s3220_s6] sm:$0xff]  ;;  %1430 = vmatpush.msra.mxu3 %v1512_v15 }
 0xa7b   :  { %v2404_v26 = vpop.eup %2403  ;;  %1308 = vmatpush.msra.mxu1 %v1285_v18 }
 0xa7c   :  { %v1086_v28 = vsel %vm1085_vm7, %v2402_v10, %v1082_v23  ;;  %v1119_v31 = vmul.f32 %v2404_v26, %v1117_v13  ;;  %vm1124_vm9 = vweird.f32 %v2404_v26  ;;  %v1319_v10 = vld [vmem:[%s3221_s12 + $0x18] sm:$0xff]  ;;  %v1318_v13 = vld [vmem:[%s3221_s12 + $0x10] sm:$0xff] }
 0xa7d   :  { %v1091_v24 = vsel %vm1088_vm8, %v1090_v25, %v1086_v28  ;;  %vm1125_vm11 = vmor %vm1123_vm10, %vm1124_vm9  ;;  %1336 = vmatpush.msra.mxu2 %v1319_v10  ;;  %v2266_v10 = vld [vmem:[%s3220_s6 + $0x28] sm:$0xff] }
 0xa7e   :  { %v1092_v32 = vmul.f32 %v1091_v24, %v1067_v27  ;;  %v1120_v36 = vsub.f32 1.0, %v1119_v31 }
 0xa7f   :  { %1337 = vmatpush.msra.mxu2 %v1318_v13  ;;  %v2265_v13 = vld [vmem:[%s3220_s6 + $0x20] sm:$0xff] }
 0xa80   :  { %v2238_v38 = vclamps-f32 %v1092_v32, 1.0  ;;  %v1121_v41 = vmul.f32 %v2404_v26, %v1120_v36 }
 0xa81   :  { %1338 = vmatpush.msra.mxu2 %v1317_v16  ;;  %v1511_v16 = vld [vmem:[%s3227_s15] sm:$0xff] }
 0xa82   :  { %v1135_v46 = vadd.f32 1.0, %v2238_v38  ;;  %v1122_v47 = vadd.f32 %v2404_v26, %v1121_v41  ;;  %1431 = vmatpush.msra.mxu3 %v1511_v16 }
 0xa83   :  { %1339 = vmatpush.msra.mxu2 %v1316_v19 }
 0xa84   :  { %v1137_v22 = vmul.f32 %v1135_v46, %v1051_v44  ;;  %v1126_v49 = vsel %vm1125_vm11, %v2404_v26, %v1122_v47  ;;  %v2361_v44 = vld [vmem:[%s3223_s2] ss:$0 sm:$0xff] }
 0xa85   :  { %v1131_v50 = vsel %vm1128_vm12, %v1130_v48, %v1126_v49  ;;  %1530 = vmatpush.msrb.mxu2 %v1512_v15 }
 0xa86   :  { %2240 = vmatmul.msk.f32.vlgmr.msrb.gmra.mxu3 %vm229_vm0, %v1137_v22  ;;  %v1132_v52 = vmul.f32 %v1131_v50, %v1107_v45 }
 0xa87   :  { %1531 = vmatpush.msrb.mxu2 %v1511_v16 }
 0xa88   :  { %v2239_v53 = vclamps-f32 %v1132_v52, 1.0 }
 0xa8a   :  { %v1136_v21 = vadd.f32 1.0, %v2239_v53 }
 0xa8c   :  { %v1138_v55 = vmul.f32 %v1136_v21, %v1052_v54 }
 0xa8e   :  { %2241 = vmatmul.msk.f32.gmra.mxu3 %vm229_vm0, %v1138_v55  ;;  %v2362_v55 = vld [vmem:[%s3224_s7] ss:$0 sm:$0xff] }
 0xb09   :  { %v1174_v57 = vpop.f32.mrf.mxu3 }
 0xb0a   :  { %v1175_v58 = vadd.f32 %v2358_v56, %v1174_v57 }
 0xb0c   :  { %v1180_v60 = vadd.f32 %v1175_v58, %v2934_v42 }
 0xb0e   :  { %v1242_v34 = vadd.f32 %v2359_v59, %v1180_v60  ;;  %v1184_v61 = vsel %vm294_vm5, %v1180_v60, 0.0 }
 0xb0f   :  { %1185 = vadd.xlane.f32.xlu1 %v1184_v61  ;;  %v2364_v61 = vld [vmem:[%s3226_s11] ss:$0 sm:$0xff] }
 0xb10   :  { %1244 = vst.msk [vmem:[#allocation2] sm:$0xff] %vm294_vm5, %v1242_v34 }
 0xb11   :  { %v1177_v62 = vpop.f32.mrf.mxu3 }
 0xb12   :  { %v1178_v63 = vadd.f32 %v2358_v56, %v1177_v62  ;;  %v2363_v56 = vld [vmem:[%s3225_s10] ss:$0 sm:$0xff] }
 0xb14   :  { %v1181_v29 = vadd.f32 %v1178_v63, %v2928_v33 }
 0xb16   :  { %v1243_v0 = vadd.f32 %v2359_v59, %v1181_v29  ;;  %v1187_v1 = vsel %vm298_vm4, %v1181_v29, 0.0 }
 0xb17   :  { %1188 = vadd.xlane.f32.xlu0 %v1187_v1 }
 0xb18   :  { %1245 = vst.msk [vmem:[#allocation2 + $0x8] sm:$0x3] %vm298_vm4, %v1243_v0 }
 0xb82   :  { %v1186_v42 = vpop.xlane.xlu1 %1185 }
 0xb83   :  { %v1190_v2 = vmul.f32 %v1186_v42, %v2814_v51 }
 0xb85   :  { %v1192_v3 = vsub.f32 %v1180_v60, %v1190_v2 }
 0xb87   :  { %v1194_v35 = vmul.f32 %v1192_v3, %v1192_v3 }
 0xb89   :  { %v1196_v4 = vsel %vm294_vm5, %v1194_v35, 0.0 }
 0xb8a   :  { %1197 = vadd.xlane.f32.xlu2 %v1196_v4  ;;  %v1189_v33 = vpop.xlane.xlu0 %1188  ;;  %v2268_v4 = vld [vmem:[%s3220_s6 + $0x38] sm:$0xff] }
 0xb8b   :  { %v1191_v37 = vmul.f32 %v1189_v33, %v2814_v51 }
 0xb8d   :  { %v2993_v5 = vsub.f32 %v1181_v29, %v1191_v37 }
 0xb8f   :  { %v1195_v6 = vmul.f32 %v2993_v5, %v2993_v5 }
 0xb91   :  { %v1199_v7 = vsel %vm298_vm4, %v1195_v6, 0.0 }
 0xb92   :  { %1200 = vadd.xlane.f32.xlu1 %v1199_v7 }
 0xbfd   :  { %v1198_v20 = vpop.xlane.xlu2 %1197 }
 0xbfe   :  { %v1202_v23 = vmul.f32 %v1198_v20, %v2814_v51 }
 0xc00   :  { %v1204_v25 = vadd.f32 1e-06, %v1202_v23  ;;  %v2365_v23 = vld [vmem:[%s3225_s10 + $0x1] ss:$0 sm:$0xff] }
 0xc02   :  { %2405 = vrsqrt.f32 %v1204_v25  ;;  %vm1212_vm7 = vweird.f32 %v1204_v25 }
 0xc05   :  { %v1201_v26 = vpop.xlane.xlu1 %1200 }
 0xc06   :  { %v1203_v27 = vmul.f32 %v1201_v26, %v2814_v51 }
 0xc08   :  { %v2406_v28 = vpop.eup %2405  ;;  %v1205_v30 = vadd.f32 1e-06, %v1203_v27 }
 0xc09   :  { %v1207_v24 = vmul.f32 %v2406_v28, %v1204_v25  ;;  %vm1213_vm6 = vweird.f32 %v2406_v28 }
 0xc0a   :  { %2407 = vrsqrt.f32 %v1205_v30  ;;  %vm1214_vm8 = vmor %vm1212_vm7, %vm1213_vm6  ;;  %vm1222_vm10 = vweird.f32 %v1205_v30 }
 0xc0b   :  { %v1208_v31 = vmul.f32 %v2406_v28, %v1207_v24 }
 0xc0d   :  { %v1209_v32 = vmul.f32 0.5, %v1208_v31 }
 0xc0f   :  { %v1210_v36 = vsub.f32 1.5, %v1209_v32 }
 0xc10   :  { %v2408_v38 = vpop.eup %2407 }
 0xc11   :  { %v1211_v39 = vmul.f32 %v2406_v28, %v1210_v36  ;;  %v1217_v41 = vmul.f32 %v2408_v38, %v1205_v30  ;;  %vm1223_vm9 = vweird.f32 %v2408_v38 }
 0xc12   :  { %vm1224_vm11 = vmor %vm1222_vm10, %vm1223_vm9 }
 0xc13   :  { %v1215_v43 = vsel %vm1214_vm8, %v2406_v28, %v1211_v39  ;;  %v1218_v47 = vmul.f32 %v2408_v38, %v1217_v41 }
 0xc14   :  { %v1226_v46 = vmul.f32 %v1215_v43, %v1192_v3 }
 0xc15   :  { %v1219_v48 = vmul.f32 0.5, %v1218_v47 }
 0xc16   :  { %v1231_v22 = vmul.f32 %v2360_v40, %v1226_v46 }
 0xc17   :  { %v1220_v49 = vsub.f32 1.5, %v1219_v48 }
 0xc18   :  { %v3014_v45 = vadd.f32 %v2361_v44, %v1231_v22 }
 0xc19   :  { %v1221_v50 = vmul.f32 %v2408_v38, %v1220_v49 }
 0xc1a   :  { %2242 = vmatmul.msk.f32.vlgmr.msra.gmra.mxu0 %vm294_vm5, %v3014_v45  ;;  %2244 = vmatmul.msk.f32.vlgmr.msra.gmra.mxu1 %vm294_vm5, %v3014_v45 }
 0xc1b   :  { %2246 = vmatmul.msk.f32.vlgmr.msra.gmra.mxu2 %vm294_vm5, %v3014_v45  ;;  %v1225_v52 = vsel %vm1224_vm11, %v2408_v38, %v1221_v50  ;;  %v2275_v50 = vld [vmem:[%s3221_s12 + $0x38] sm:$0xff] }
 0xc1c   :  { %v1227_v53 = vmul.f32 %v1225_v52, %v2993_v5  ;;  %v2274_v52 = vld [vmem:[%s3221_s12 + $0x30] sm:$0xff] }
 0xc1e   :  { %v1232_v54 = vmul.f32 %v2360_v40, %v1227_v53 }
 0xc20   :  { %v3023_v21 = vadd.f32 %v2361_v44, %v1232_v54  ;;  %v2273_v54 = vld [vmem:[%s3221_s12 + $0x28] sm:$0xff] }
 0xc22   :  { %2243 = vmatmul.msk.f32.gmra.mxu0 %vm294_vm5, %v3023_v21  ;;  %2245 = vmatmul.msk.f32.gmra.mxu1 %vm294_vm5, %v3023_v21 }
 0xc23   :  { %2247 = vmatmul.msk.f32.gmra.mxu2 %vm294_vm5, %v3023_v21 }
 0xc97   :  { %v1277_v57 = vpop.f32.mrf.mxu0  ;;  %v1310_v58 = vpop.f32.mrf.mxu1 }
 0xc98   :  { %v1278_v59 = vadd.f32 %v2362_v55, %v1277_v57  ;;  %v1311_v60 = vadd.f32 %v2363_v56, %v1310_v58  ;;  %v2261_v58 = vld [vmem:[%s3219_s30 + $0x38] sm:$0xff] }
 0xc99   :  { %1560 = vmatpush.msrb.mxu3 %v2261_v58 }
 0xc9a   :  { %v1283_v34 = vmul.f32 0.25, %v1278_v59  ;;  %2248 = vmatpush.xpose.msk.msrb.mxu0 %vm466_vm14, %v1311_v60  ;;  %v1443_v2 = vrot.slane %v1311_v60, 5  ;;  %v2260_v59 = vld [vmem:[%s3219_s30 + $0x30] sm:$0xff]  ;;  %v2259_v60 = vld [vmem:[%s3219_s30 + $0x28] sm:$0xff] }
 0xc9b   :  { %1561 = vmatpush.msrb.mxu3 %v2260_v59 }
 0xc9c   :  { %v1439_v33 = vrot.slane %v1283_v34, 5 }
 0xc9d   :  { %2249 = vmatmul.msk.f32.vlgmr.msrb.gmra.mxu0 %vm466_vm14, %v1283_v34  ;;  %v2258_v34 = vld [vmem:[%s3219_s30 + $0x20] sm:$0xff]  ;;  %1562 = vmatpush.msrb.mxu3 %v2259_v60 }
 0xc9e   :  { %v1341_v62 = vpop.f32.mrf.mxu2 }
 0xc9f   :  { %v1342_v63 = vadd.f32 %v2364_v61, %v1341_v62  ;;  %v1280_v29 = vpop.f32.mrf.mxu0  ;;  %v1313_v0 = vpop.f32.mrf.mxu1  ;;  %1563 = vmatpush.msrb.mxu3 %v2258_v34 }
 0xca0   :  { %v1281_v1 = vadd.f32 %v2362_v55, %v1280_v29  ;;  %v1314_v42 = vadd.f32 %v2363_v56, %v1313_v0  ;;  %v2272_v55 = vld [vmem:[%s3221_s12 + $0x20] sm:$0xff] }
 0xca1   :  { %2250 = vmatpush.msk.msrb.mxu1 %vm509_vm13, %v1342_v63  ;;  %v1482_v11 = vrot.slane %v1342_v63, 5  ;;  %v2366_v63 = vld [vmem:[%s3226_s11 + $0x1] ss:$0 sm:$0xff] }
 0xca2   :  { %v1284_v3 = vmul.f32 0.25, %v1281_v1  ;;  %v1444_v35 = vrot.slane %v1314_v42, 5 }
 0xca4   :  { %v1440_v37 = vrot.slane %v1284_v3, 5  ;;  %v1445_v5 = vsel %vm563_vm15, %v1443_v2, %v1444_v35 }
 0xca5   :  { %2253 = vmatpush.xpose.msk.msra.mxu0 %vm466_vm14, %v1445_v5 }
 0xca6   :  { %v1344_v6 = vpop.f32.mrf.mxu2  ;;  %v1441_v7 = vsel %vm563_vm15, %v1439_v33, %v1440_v37  ;;  %v2367_v37 = vld [vmem:[%s3224_s7 + $0x1] ss:$0 sm:$0xff] }
 0xca7   :  { %v1345_v9 = vadd.f32 %v2364_v61, %v1344_v6 }
 0xca8   :  { %2254 = vmatmul.msk.f32.vlgmr.msra.gmra.mxu0 %vm466_vm14, %v1441_v7  ;;  %v1510_v7 = vld [vmem:[#allocation2 + $0x5] sm:$0x1f] }
 0xca9   :  { %1595 = vmatpush.msrb.mxu0 %v2268_v4  ;;  %v1483_v12 = vrot.slane %v1345_v9, 5 }
 0xcab   :  { %1596 = vmatpush.msrb.mxu0 %v2267_v8  ;;  %v1484_v14 = vsel %vm563_vm15, %v1482_v11, %v1483_v12 }
 0xcac   :  { %2255 = vmatpush.msk.msra.mxu1 %vm509_vm13, %v1484_v14 }
 0xcad   :  { %1597 = vmatpush.msrb.mxu0 %v2266_v10 }
 0xcaf   :  { %1598 = vmatpush.msrb.mxu0 %v2265_v13 }
 0xcb0   :  { %2270 = vmatmul.msk.f32.vlgmr.msrb.gmra.mxu0 %vm294_vm5, %v3014_v45 }
 0xcb8   :  { %2271 = vmatmul.msk.f32.gmra.mxu0 %vm294_vm5, %v3023_v21 }
 0xd1a   :  { %v1370_v17 = vpop.f32.mrf.mxu0 }
 0xd1b   :  { %v1373_v18 = vsel %vm493_vm1, %v1370_v17, -inf }
 0xd1c   :  { %1374 = vmax.xlane.f32.xlu2 %v1373_v18 }
 0xd25   :  { %v1467_v19 = vpop.f32.mrf.mxu0 }
 0xd26   :  { %v1470_v20 = vsel %vm493_vm1, %v1467_v19, -inf }
 0xd27   :  { %1471 = vmax.xlane.f32.xlu1 %v1470_v20 }
 0xd2d   :  { %v1600_v25 = vpop.f32.mrf.mxu0 }
 0xd2e   :  { %v1601_v26 = vadd.f32 %v2365_v23, %v1600_v25 }
 0xd30   :  { %2279 = vmatpush.xpose.msk.msra.mxu2 %vm466_vm14, %v1601_v26  ;;  %v1736_v24 = vrot.slane %v1601_v26, 5  ;;  %v2284_v26 = vld [vmem:[%s3227_s15 + $0x18] sm:$0xff] }
 0xd35   :  { %v1603_v27 = vpop.f32.mrf.mxu0 }
 0xd36   :  { %v1604_v28 = vadd.f32 %v2365_v23, %v1603_v27 }
 0xd38   :  { %v1737_v30 = vrot.slane %v1604_v28, 5 }
 0xd3a   :  { %v3058_v31 = vsel %vm563_vm15, %v1736_v24, %v1737_v30  ;;  %v2283_v30 = vld [vmem:[%s3227_s15 + $0x10] sm:$0xff] }
 0xd8f   :  { %v1375_v32 = vpop.xlane.xlu2 %1374 }
 0xd90   :  { %v1376_v36 = vsub.f32 %v1370_v17, %v1375_v32 }
 0xd92   :  { %v1377_v38 = vmul.f32 1.442695, %v1376_v36 }
 0xd94   :  { %2409 = vpow2.f32 %v1377_v38 }
 0xd9a   :  { %v2410_v39 = vpop.eup %2409  ;;  %v1472_v40 = vpop.xlane.xlu1 %1471 }
 0xd9b   :  { %v1379_v41 = vsel %vm493_vm1, %v2410_v39, 0.0  ;;  %v1473_v43 = vsub.f32 %v1467_v19, %v1472_v40 }
 0xd9c   :  { %1380 = vadd.xlane.f32.xlu0 %v1379_v41 }
 0xd9d   :  { %v1474_v44 = vmul.f32 1.442695, %v1473_v43 }
 0xd9f   :  { %2411 = vpow2.f32 %v1474_v44 }
 0xda5   :  { %v2412_v46 = vpop.eup %2411 }
 0xda6   :  { %v1476_v47 = vsel %vm493_vm1, %v2412_v46, 0.0 }
 0xda7   :  { %1477 = vadd.xlane.f32.xlu2 %v1476_v47 }
 0xe0f   :  { %v1381_v22 = vpop.xlane.xlu0 %1380 }
 0xe10   :  { %2413 = vrcp.f32 %v1381_v22 }
 0xe16   :  { %v2414_v48 = vpop.eup %2413 }
 0xe17   :  { %v1383_v49 = vmul.f32 %v2414_v48, %v2410_v39 }
 0xe19   :  { %2251 = vmatmul.msk.f32.vlgmr.msrb.gmra.mxu1 %vm505_vm2, %v1383_v49 }
 0xe1a   :  { %1628 = vmatpush.msrb.mxu1 %v2275_v50  ;;  %v1478_v53 = vpop.xlane.xlu2 %1477 }
 0xe1b   :  { %2415 = vrcp.f32 %v1478_v53 }
 0xe1c   :  { %1629 = vmatpush.msrb.mxu1 %v2274_v52 }
 0xe1e   :  { %1630 = vmatpush.msrb.mxu1 %v2273_v54 }
 0xe20   :  { %1631 = vmatpush.msrb.mxu1 %v2272_v55 }
 0xe21   :  { %v2416_v56 = vpop.eup %2415 }
 0xe22   :  { %v1480_v57 = vmul.f32 %v2416_v56, %v2412_v46 }
 0xe24   :  { %2256 = vmatmul.msk.f32.vlgmr.msra.gmra.mxu1 %vm505_vm2, %v1480_v57 }
 0xe2c   :  { %2277 = vmatmul.msk.f32.vlgmr.msrb.gmra.mxu1 %vm294_vm5, %v3014_v45 }
 0xe34   :  { %2278 = vmatmul.msk.f32.gmra.mxu1 %vm294_vm5, %v3023_v21 }
 0xe96   :  { %v1407_v61 = vpop.f32.mrf.mxu1 }
 0xe97   :  { %2252 = vmatmul.msk.f32.vlgmr.msra.gmra.mxu3 %vm466_vm14, %v1407_v61 }
 0xe98   :  { %1723 = vmatpush.msra.mxu3 %v2284_v26 }
 0xe9a   :  { %1724 = vmatpush.msra.mxu3 %v2283_v30 }
 0xe9f   :  { %2263 = vmatmul.msk.f32.vlgmr.msrb.gmra.mxu3 %vm294_vm5, %v3014_v45  ;;  %v1410_v45 = vld [vmem:[#allocation2] sm:$0x1f] }
 0xea1   :  { %v1507_v62 = vpop.f32.mrf.mxu1 }
 0xea2   :  { %2257 = vmatmul.msk.f32.vlgmr.msrb.gmra.mxu2 %vm466_vm14, %v1507_v62 }
 0xea7   :  { %2264 = vmatmul.msk.f32.gmra.mxu3 %vm294_vm5, %v3023_v21 }
 0xea9   :  { %v1633_v29 = vpop.f32.mrf.mxu1 }
 0xeaa   :  { %v1634_v0 = vadd.f32 %v2366_v63, %v1633_v29 }
 0xeac   :  { %2281 = vmatpush.msk.msrb.mxu2 %vm509_vm13, %v1634_v0  ;;  %v1775_v2 = vrot.slane %v1634_v0, 5 }
 0xeb1   :  { %v1636_v1 = vpop.f32.mrf.mxu1 }
 0xeb2   :  { %v1637_v42 = vadd.f32 %v2366_v63, %v1636_v1 }
 0xeb4   :  { %v1776_v3 = vrot.slane %v1637_v42, 5 }
 0xeb6   :  { %v1777_v35 = vsel %vm563_vm15, %v1775_v2, %v1776_v3  ;;  %v1892_v2 = vld [vmem:[%s3228_s16 + $0x18] sm:$0xff]  ;;  %v1891_v3 = vld [vmem:[%s3228_s16 + $0x10] sm:$0xff] }
 0xeb7   :  { %2288 = vmatpush.msk.msra.mxu1 %vm509_vm13, %v1777_v35  ;;  %1915 = vmatpush.msrb.mxu3 %v1892_v2  ;;  %v1890_v35 = vld [vmem:[%s3228_s16 + $0x8] sm:$0xff] }
 0xeb9   :  { %1916 = vmatpush.msrb.mxu3 %v1891_v3 }
 0xebb   :  { %1917 = vmatpush.msrb.mxu3 %v1890_v35  ;;  %v2015_v35 = vld [vmem:[%s3231_s0 + $0x8] sm:$0xff] }
 0xf1a   :  { %v1433_v4 = vpop.f32.mrf.mxu3 }
 0xf1b   :  { %v1436_v33 = vadd.f32 %v1433_v4, %v1410_v45  ;;  %v1889_v45 = vld [vmem:[%s3228_s16] sm:$0xff] }
 0xf1c   :  { %1918 = vmatpush.msrb.mxu3 %v1889_v45 }
 0xf1d   :  { %1437 = vst.msk [vmem:[#allocation2] sm:$0x1f] %vm560_vm3, %v1436_v33 }
 0xf22   :  { %v1565_v21 = vpop.f32.mrf.mxu3 }
 0xf23   :  { %v1566_v5 = vadd.f32 %v2367_v37, %v1565_v21 }
 0xf24   :  { %v1702_v41 = vld [vmem:[#allocation2] sm:$0x1f] }
 0xf25   :  { %v1571_v6 = vmul.f32 0.25, %v1566_v5  ;;  %v1533_v8 = vpop.f32.mrf.mxu2 }
 0xf26   :  { %v1536_v9 = vadd.f32 %v1533_v8, %v1510_v7 }
 0xf27   :  { %2280 = vmatmul.msk.f32.vlgmr.msra.gmra.mxu2 %vm466_vm14, %v1571_v6  ;;  %v1732_v13 = vrot.slane %v1571_v6, 5 }
 0xf28   :  { %2286 = vmatpush.xpose.msk.msra.mxu2 %vm466_vm14, %v3058_v31  ;;  %1537 = vst.msk [vmem:[#allocation2 + $0x5] sm:$0x1f] %vm560_vm3, %v1536_v9 }
 0xf2a   :  { %v1568_v10 = vpop.f32.mrf.mxu3 }
 0xf2b   :  { %v1569_v11 = vadd.f32 %v2367_v37, %v1568_v10 }
 0xf2d   :  { %v1572_v12 = vmul.f32 0.25, %v1569_v11 }
 0xf2f   :  { %v1733_v14 = vrot.slane %v1572_v12, 5  ;;  %v1803_v52 = vld [vmem:[#allocation2 + $0x5] sm:$0x1f] }
 0xf31   :  { %v1734_v15 = vsel %vm563_vm15, %v1732_v13, %v1733_v14 }
 0xfaa   :  { %v1662_v16 = vpop.f32.mrf.mxu2 }
 0xfab   :  { %v1665_v17 = vsel %vm493_vm1, %v1662_v16, -inf }
 0xfac   :  { %1666 = vmax.xlane.f32.xlu0 %v1665_v17 }
0x101f   :  { %v1667_v18 = vpop.xlane.xlu0 %1666 }
0x1020   :  { %v1668_v19 = vsub.f32 %v1662_v16, %v1667_v18  ;;  %v2368_v18 = vld [vmem:[%s3229_s18] ss:$0 sm:$0xff] }
0x1022   :  { %v1669_v20 = vmul.f32 1.442695, %v1668_v19 }
0x1024   :  { %2417 = vpow2.f32 %v1669_v20 }
0x102a   :  { %v2418_v23 = vpop.eup %2417 }
0x102b   :  { %v1671_v25 = vsel %vm493_vm1, %v2418_v23, 0.0 }
0x102c   :  { %1672 = vadd.xlane.f32.xlu1 %v1671_v25  ;;  %v2369_v25 = vld [vmem:[%s3230_s22] ss:$0 sm:$0xff] }
0x109f   :  { %v1673_v27 = vpop.xlane.xlu1 %1672 }
0x10a0   :  { %2419 = vrcp.f32 %v1673_v27 }
0x10a6   :  { %v2420_v28 = vpop.eup %2419 }
0x10a7   :  { %v1675_v24 = vmul.f32 %v2420_v28, %v2418_v23 }
0x10a9   :  { %2282 = vmatmul.msk.f32.vlgmr.msrb.gmra.mxu2 %vm505_vm2, %v1675_v24 }
0x10aa   :  { %1823 = vmatpush.msrb.mxu2 %v2284_v26 }
0x10ac   :  { %1824 = vmatpush.msrb.mxu2 %v2283_v30 }
0x10b1   :  { %2287 = vmatmul.msk.f32.vlgmr.msra.gmra.mxu2 %vm466_vm14, %v1734_v15 }
0x112c   :  { %v1699_v31 = vpop.f32.mrf.mxu2 }
0x112d   :  { %2285 = vmatmul.msk.f32.vlgmr.msra.gmra.mxu3 %vm466_vm14, %v1699_v31 }
0x1134   :  { %v1760_v32 = vpop.f32.mrf.mxu2 }
0x1135   :  { %v1763_v36 = vsel %vm493_vm1, %v1760_v32, -inf }
0x1136   :  { %1764 = vmax.xlane.f32.xlu2 %v1763_v36 }
0x11a9   :  { %v1765_v38 = vpop.xlane.xlu2 %1764 }
0x11aa   :  { %v1766_v39 = vsub.f32 %v1760_v32, %v1765_v38  ;;  %v2370_v32 = vld [vmem:[#allocation3] ss:$0 sm:$0xff] }
0x11ac   :  { %v1767_v40 = vmul.f32 1.442695, %v1766_v39 }
0x11ae   :  { %2421 = vpow2.f32 %v1767_v40 }
0x11b0   :  { %v1726_v43 = vpop.f32.mrf.mxu3 }
0x11b1   :  { %v1729_v44 = vadd.f32 %v1726_v43, %v1702_v41 }
0x11b3   :  { %1730 = vst.msk [vmem:[#allocation2] sm:$0x1f] %vm560_vm3, %v1729_v44  ;;  %v2021_v44 = vld [vmem:[%s3231_s0 + $0x38] sm:$0xff] }
0x11b4   :  { %v2422_v46 = vpop.eup %2421  ;;  %2040 = vmatpush.msra.mxu0 %v2021_v44 }
0x11b5   :  { %v1769_v47 = vsel %vm493_vm1, %v2422_v46, 0.0 }
0x11b6   :  { %1770 = vadd.xlane.f32.xlu0 %v1769_v47 }
0x1229   :  { %v1771_v22 = vpop.xlane.xlu0 %1770 }
0x122a   :  { %2423 = vrcp.f32 %v1771_v22 }
0x1230   :  { %v2424_v48 = vpop.eup %2423 }
0x1231   :  { %v1773_v49 = vmul.f32 %v2424_v48, %v2422_v46  ;;  %v2020_v48 = vld [vmem:[%s3231_s0 + $0x30] sm:$0xff] }
0x1232   :  { %2041 = vmatpush.msra.mxu0 %v2020_v48 }
0x1233   :  { %2289 = vmatmul.msk.f32.vlgmr.msra.gmra.mxu1 %vm505_vm2, %v1773_v49 }
0x12b0   :  { %v1800_v50 = vpop.f32.mrf.mxu1 }
0x12b1   :  { %2292 = vmatmul.msk.f32.vlgmr.msrb.gmra.mxu2 %vm466_vm14, %v1800_v50 }
0x1334   :  { %v1826_v53 = vpop.f32.mrf.mxu2 }
0x1335   :  { %v1829_v54 = vadd.f32 %v1826_v53, %v1803_v52  ;;  %v2019_v53 = vld [vmem:[%s3231_s0 + $0x28] sm:$0xff] }
0x1336   :  { %2042 = vmatpush.msra.mxu0 %v2019_v53 }
0x1337   :  { %1830 = vst.msk [vmem:[#allocation2 + $0x5] sm:$0x1f] %vm560_vm3, %v1829_v54 }
0x133e   :  { %v1832_v55 = vld [vmem:[#allocation2 + $0x8] sm:$0x3]  ;;  %v3106_v56 = vld [vmem:[#allocation2] sm:$0xff] }
0x133f   :  { %v1838_v57 = vsel %vm298_vm4, %v1832_v55, 0.0  ;;  %v1835_v58 = vsel %vm294_vm5, %v3106_v56, 0.0 }
0x1340   :  { %1839 = vadd.xlane.f32.xlu0 %v1838_v57  ;;  %1836 = vadd.xlane.f32.xlu1 %v1835_v58  ;;  %v2018_v58 = vld [vmem:[%s3231_s0 + $0x20] sm:$0xff] }
0x1341   :  { %2043 = vmatpush.msra.mxu0 %v2018_v58 }
0x13b3   :  { %v1840_v59 = vpop.xlane.xlu0 %1839  ;;  %v1837_v60 = vpop.xlane.xlu1 %1836 }
0x13b4   :  { %v1842_v34 = vmul.f32 %v1840_v59, %v2814_v51  ;;  %v1841_v61 = vmul.f32 %v1837_v60, %v2814_v51 }
0x13b6   :  { %v1844_v62 = vsub.f32 %v1832_v55, %v1842_v34  ;;  %v1843_v63 = vsub.f32 %v3106_v56, %v1841_v61  ;;  %v2017_v61 = vld [vmem:[%s3231_s0 + $0x18] sm:$0xff] }
0x13b7   :  { %2044 = vmatpush.msra.mxu0 %v2017_v61 }
0x13b8   :  { %v1846_v29 = vmul.f32 %v1844_v62, %v1844_v62  ;;  %v1845_v0 = vmul.f32 %v1843_v63, %v1843_v63 }
0x13ba   :  { %v1850_v1 = vsel %vm298_vm4, %v1846_v29, 0.0  ;;  %v1847_v42 = vsel %vm294_vm5, %v1845_v0, 0.0  ;;  %v2016_v0 = vld [vmem:[%s3231_s0 + $0x10] sm:$0xff] }
0x13bb   :  { %1851 = vadd.xlane.f32.xlu1 %v1850_v1  ;;  %1848 = vadd.xlane.f32.xlu2 %v1847_v42 }
0x13bc   :  { %2045 = vmatpush.msra.mxu0 %v2016_v0 }
0x13be   :  { %2046 = vmatpush.msra.mxu0 %v2015_v35 }
0x142e   :  { %v1849_v4 = vpop.xlane.xlu2 %1848  ;;  %v1852_v33 = vpop.xlane.xlu1 %1851 }
0x142f   :  { %v1853_v37 = vmul.f32 %v1849_v4, %v2814_v51  ;;  %v1854_v21 = vmul.f32 %v1852_v33, %v2814_v51 }
0x1431   :  { %v1855_v5 = vadd.f32 1e-06, %v1853_v37  ;;  %v1856_v6 = vadd.f32 1e-06, %v1854_v21  ;;  %v2014_v37 = vld [vmem:[%s3231_s0] sm:$0xff] }
0x1432   :  { %2047 = vmatpush.msra.mxu0 %v2014_v37 }
0x1433   :  { %2425 = vrsqrt.f32 %v1855_v5  ;;  %vm1863_vm14 = vweird.f32 %v1855_v5  ;;  %vm1873_vm2 = vweird.f32 %v1856_v6 }
0x1434   :  { %2427 = vrsqrt.f32 %v1856_v6 }
0x1439   :  { %v2426_v7 = vpop.eup %2425 }
0x143a   :  { %v2428_v8 = vpop.eup %2427  ;;  %v1858_v9 = vmul.f32 %v2426_v7, %v1855_v5  ;;  %vm1864_vm13 = vweird.f32 %v2426_v7 }
0x143b   :  { %v1868_v10 = vmul.f32 %v2428_v8, %v1856_v6  ;;  %vm1874_vm15 = vweird.f32 %v2428_v8  ;;  %vm1865_vm1 = vmor %vm1863_vm14, %vm1864_vm13  ;;  %vm2058_vm14 = vcmask 1040384  }
0x143c   :  { %v1859_v11 = vmul.f32 %v2426_v7, %v1858_v9  ;;  %vm1875_vm3 = vmor %vm1873_vm2, %vm1874_vm15 }
0x143d   :  { %v1869_v12 = vmul.f32 %v2428_v8, %v1868_v10 }
0x143e   :  { %v1860_v13 = vmul.f32 0.5, %v1859_v11 }
0x143f   :  { %v1870_v14 = vmul.f32 0.5, %v1869_v12 }
0x1440   :  { %v1861_v15 = vsub.f32 1.5, %v1860_v13 }
0x1441   :  { %v1871_v16 = vsub.f32 1.5, %v1870_v14 }
0x1442   :  { %v1862_v17 = vmul.f32 %v2426_v7, %v1861_v15 }
0x1443   :  { %v1872_v19 = vmul.f32 %v2428_v8, %v1871_v16 }
0x1444   :  { %v1866_v20 = vsel %vm1865_vm1, %v2426_v7, %v1862_v17  ;;  %vm2123_vm1 = vcmask 74752  }
0x1445   :  { %v1877_v23 = vmul.f32 %v1866_v20, %v1843_v63  ;;  %v1876_v26 = vsel %vm1875_vm3, %v2428_v8, %v1872_v19 }
0x1446   :  { %v1878_v24 = vmul.f32 %v1876_v26, %v1844_v62 }
0x1447   :  { %v1882_v27 = vmul.f32 %v2368_v18, %v1877_v23 }
0x1448   :  { %v1883_v30 = vmul.f32 %v2368_v18, %v1878_v24 }
0x1449   :  { %v1887_v28 = vadd.f32 %v2369_v25, %v1882_v27 }
0x144a   :  { %v1888_v31 = vadd.f32 %v2369_v25, %v1883_v30 }
0x144b   :  { %2293 = vmatmul.msk.f32.vlgmr.msrb.gmra.mxu3 %vm294_vm5, %v1887_v28 }
0x1453   :  { %2294 = vmatmul.msk.f32.gmra.mxu3 %vm294_vm5, %v1888_v31 }
0x14ce   :  { %v1920_v36 = vpop.f32.mrf.mxu3 }
0x14cf   :  { %v3126_v38 = vadd.f32 %v2370_v32, %v1920_v36 }
0x14d1   :  { %v3129_v39 = vmul.f32 0.70710677, %v3126_v38 }
0x14d3   :  { %v1930_v40 = vmul.f32 %v3129_v39, %v3129_v39 }
0x14d5   :  { %v1931_v41 = vmin.f32 %v1930_v40, 16.0 }
0x14d6   :  { %v1923_v43 = vpop.f32.mrf.mxu3 }
0x14d7   :  { %v1932_v46 = vmul.f32 2.1237322e-06, %v1931_v41  ;;  %v1943_v47 = vmul.f32 3.8918573e-05, %v1931_v41  ;;  %v3134_v22 = vadd.f32 %v2370_v32, %v1923_v43 }
0x14d9   :  { %v1933_v49 = vadd.f32 0.00028619796, %v1932_v46  ;;  %v1944_v50 = vadd.f32 0.001143296, %v1943_v47  ;;  %v3138_v52 = vmul.f32 0.70710677, %v3134_v22 }
0x14db   :  { %v1934_v54 = vmul.f32 %v1933_v49, %v1931_v41  ;;  %v1945_v55 = vmul.f32 %v1944_v50, %v1931_v41  ;;  %v1970_v57 = vmul.f32 %v3138_v52, %v3138_v52 }
0x14dd   :  { %v1946_v59 = vadd.f32 0.014752088, %v1945_v55  ;;  %v1935_v60 = vadd.f32 0.0036580483, %v1934_v54  ;;  %v1971_v34 = vmin.f32 %v1970_v57, 16.0 }
0x14df   :  { %v1947_v62 = vmul.f32 %v1946_v59, %v1931_v41  ;;  %v1972_v63 = vmul.f32 2.1237322e-06, %v1971_v34  ;;  %v1983_v29 = vmul.f32 3.8918573e-05, %v1971_v34  ;;  %v1936_v42 = vmul.f32 %v1935_v60, %v1931_v41 }
0x14e0   :  { %v1926_v59 = vmul.f32 0.5, %v3126_v38  ;;  %v2371_v38 = vld [vmem:[#allocation6] ss:$0 sm:$0xff] }
0x14e1   :  { %v1948_v1 = vadd.f32 0.112945676, %v1947_v62  ;;  %v1973_v2 = vadd.f32 0.00028619796, %v1972_v63  ;;  %v1984_v3 = vadd.f32 0.001143296, %v1983_v29 }
0x14e2   :  { %v1937_v5 = vadd.f32 0.05243302, %v1936_v42  ;;  %v1927_v42 = vmul.f32 0.5, %v3134_v22 }
0x14e3   :  { %v1949_v45 = vmul.f32 %v1948_v1, %v1931_v41  ;;  %v1974_v4 = vmul.f32 %v1973_v2, %v1971_v34  ;;  %v1985_v33 = vmul.f32 %v1984_v3, %v1971_v34 }
0x14e4   :  { %v1938_v11 = vmul.f32 %v1937_v5, %v1931_v41 }
0x14e5   :  { %v1950_v21 = vadd.f32 0.4994258, %v1949_v45  ;;  %v1986_v6 = vadd.f32 0.014752088, %v1985_v33  ;;  %v1975_v8 = vadd.f32 0.0036580483, %v1974_v4 }
0x14e6   :  { %v1939_v15 = vadd.f32 0.18741608, %v1938_v11  ;;  %v2092_v11 = vld [vmem:[%s2761_s20] sm:$0xff] }
0x14e7   :  { %v1951_v7 = vmul.f32 %v1950_v21, %v1931_v41  ;;  %v1987_v9 = vmul.f32 %v1986_v6, %v1971_v34  ;;  %v1976_v13 = vmul.f32 %v1975_v8, %v1971_v34 }
0x14e8   :  { %v1940_v20 = vmul.f32 %v1939_v15, %v1931_v41 }
0x14e9   :  { %v1952_v10 = vadd.f32 1.0, %v1951_v7  ;;  %v1988_v12 = vadd.f32 0.112945676, %v1987_v9  ;;  %v1977_v17 = vadd.f32 0.05243302, %v1976_v13  ;;  %v2095_v9 = vld [vmem:[%s2761_s20 + $0x18] sm:$0xff] }
0x14ea   :  { %v1941_v24 = vadd.f32 1.1283791, %v1940_v20  ;;  %2115 = vmatpush.msrb.mxu1 %v2095_v9 }
0x14eb   :  { %2429 = vrcp.f32 %v1952_v10  ;;  %v1989_v14 = vmul.f32 %v1988_v12, %v1971_v34  ;;  %v1978_v26 = vmul.f32 %v1977_v17, %v1971_v34  ;;  %v1964_v28 = vand.u32 2147483648, %v1952_v10 }
0x14ec   :  { %v1962_v31 = vand.u32 2147483647, %v1952_v10  ;;  %vm1958_vm6 = vweird.f32 %v1952_v10  ;;  %v1942_v44 = vmul.f32 %v1941_v24, %v3129_v39 }
0x14ed   :  { %v1990_v16 = vadd.f32 0.4994258, %v1989_v14  ;;  %v1979_v32 = vadd.f32 0.18741608, %v1978_v26  ;;  %v1965_v40 = vor.u32 1.1754944e-38, %v1964_v28 }
0x14ee   :  { %vm1963_vm8 = vcmp.eq.f32.partialorder %v1962_v31, 8.507059e+37 }
0x14ef   :  { %v1991_v18 = vmul.f32 %v1990_v16, %v1971_v34  ;;  %v1980_v47 = vmul.f32 %v1979_v32, %v1971_v34 }
0x14f1   :  { %v2430_v19 = vpop.eup %2429  ;;  %v1992_v25 = vadd.f32 1.0, %v1991_v18  ;;  %v1981_v55 = vadd.f32 1.1283791, %v1980_v47 }
0x14f2   :  { %v1954_v23 = vmul.f32 %v2430_v19, %v1952_v10  ;;  %vm1959_vm12 = vweird.f32 %v2430_v19  ;;  %v2093_v10 = vld [vmem:[%s2761_s20 + $0x8] sm:$0xff] }
0x14f3   :  { %2431 = vrcp.f32 %v1992_v25  ;;  %vm1960_vm7 = vmor %vm1958_vm6, %vm1959_vm12  ;;  %v2004_v54 = vand.u32 2147483648, %v1992_v25  ;;  %v2002_v58 = vand.u32 2147483647, %v1992_v25  ;;  %vm1998_vm10 = vweird.f32 %v1992_v25 }
0x14f4   :  { %v1955_v27 = vsub.f32 1.0, %v1954_v23  ;;  %v1982_v63 = vmul.f32 %v1981_v55, %v3138_v52  ;;  %v2372_v23 = vld [vmem:[%s3232_s23] ss:$0 sm:$0xff] }
0x14f5   :  { %v2005_v39 = vor.u32 1.1754944e-38, %v2004_v54  ;;  %vm2003_vm13 = vcmp.eq.f32.partialorder %v2002_v58, 8.507059e+37 }
0x14f6   :  { %v1956_v30 = vmul.f32 %v2430_v19, %v1955_v27  ;;  %v2373_v27 = vld [vmem:[%s2756_s19] ss:$0 sm:$0xff]  ;;  %s2499_s19 = scalar_lea.hbm %s2771_s4, 2 }
0x14f7   :  { %p2501_p12 = scmp.lt.s32.totalorder %s2499_s19, %s2497_s5 }
0x14f8   :  { %v1957_v36 = vadd.f32 %v2430_v19, %v1956_v30 }
0x14f9   :  { %v2432_v43 = vpop.eup %2431  ;;  %p2502_p13 = por %p2501_p12, %p2500_p11 }
0x14fa   :  { %v1961_v46 = vsel %vm1960_vm7, %v2430_v19, %v1957_v36  ;;  %v1994_v48 = vmul.f32 %v2432_v43, %v1992_v25  ;;  %vm1999_vm9 = vweird.f32 %v2432_v43 }
0x14fb   :  { %v1966_v41 = vsel %vm1963_vm8, %v1965_v40, %v1961_v46  ;;  %vm2000_vm11 = vmor %vm1998_vm10, %vm1999_vm9  ;;  %p2503_p0 = pnand %p2502_p13, %p2498_p10 }
0x14fc   :  { %v1967_v49 = vmul.f32 %v1966_v41, %v1942_v44  ;;  %v1995_v50 = vsub.f32 1.0, %v1994_v48 }
0x14fe   :  { %v2295_v53 = vclamps-f32 %v1967_v49, 1.0  ;;  %v1996_v57 = vmul.f32 %v2432_v43, %v1995_v50 }
0x1500   :  { %v2010_v60 = vadd.f32 1.0, %v2295_v53  ;;  %v1997_v61 = vadd.f32 %v2432_v43, %v1996_v57 }
0x1502   :  { %v2012_v62 = vmul.f32 %v2010_v60, %v1926_v59  ;;  %v2001_v34 = vsel %vm2000_vm11, %v2432_v43, %v1997_v61 }
0x1503   :  { %v2006_v29 = vsel %vm2003_vm13, %v2005_v39, %v2001_v34 }
0x1504   :  { %2297 = vmatmul.msk.f32.vlgmr.msra.gmra.mxu0 %vm229_vm0, %v2012_v62  ;;  %v2007_v0 = vmul.f32 %v2006_v29, %v1982_v63 }
0x1506   :  { %v2296_v1 = vclamps-f32 %v2007_v0, 1.0 }
0x1508   :  { %v2011_v2 = vadd.f32 1.0, %v2296_v1 }
0x150a   :  { %v2013_v3 = vmul.f32 %v2011_v2, %v1927_v42 }
0x150c   :  { %2298 = vmatmul.msk.f32.gmra.mxu0 %vm229_vm0, %v2013_v3 }
0x1581   :  { %v2049_v35 = vpop.f32.mrf.mxu0 }
0x1582   :  { %v2050_v45 = vadd.f32 %v2371_v38, %v2049_v35 }
0x1584   :  { %v2054_v52 = vadd.f32 %v2050_v45, %v3106_v56  ;;  %v2094_v56 = vld [vmem:[%s2761_s20 + $0x10] sm:$0xff]  ;;  %s2557_s20 = smov [#allocation8]  }
0x1585   :  { %2116 = vmatpush.msrb.mxu1 %v2094_v56  ;;  %s2130_s26 = sshll.u32 %s2557_s20, 4  ;;  %s2131_s26 = int_to_ptr.vmem [resolvable:$true] %s2130_s26 }
0x1586   :  { %v2056_v4 = vrot.slane %v2054_v52, 4 }
0x1587   :  { %2117 = vmatpush.msrb.mxu1 %v2093_v10 }
0x1588   :  { %v2059_v33 = vsel %vm2058_vm14, %v2054_v52, %v2056_v4 }
0x1589   :  { %v2062_v37 = vsel %vm298_vm4, %v2059_v33, 0.0  ;;  %v2052_v21 = vpop.f32.mrf.mxu0  ;;  %2118 = vmatpush.msrb.mxu1 %v2092_v11 }
0x158a   :  { %2063 = vadd.xlane.f32.xlu2 %v2062_v37 }
0x15fd   :  { %v2064_v22 = vpop.xlane.xlu2 %2063 }
0x15fe   :  { %v2065_v5 = vmul.f32 %v2064_v22, %v2814_v51 }
0x1600   :  { %v2066_v6 = vsub.f32 %v2059_v33, %v2065_v5 }
0x1602   :  { %v2067_v7 = vmul.f32 %v2066_v6, %v2066_v6 }
0x1604   :  { %v2068_v8 = vsel %vm298_vm4, %v2067_v7, 0.0 }
0x1605   :  { %2069 = vadd.xlane.f32.xlu0 %v2068_v8 }
0x1678   :  { %v2070_v12 = vpop.xlane.xlu0 %2069 }
0x1679   :  { %v2071_v13 = vmul.f32 %v2070_v12, %v2814_v51  ;;  %v2374_v51 = vld [vmem:[%s2766_s8] ss:$0 sm:$0xff] }
0x167b   :  { %v2072_v14 = vadd.f32 1e-06, %v2071_v13 }
0x167d   :  { %2433 = vrsqrt.f32 %v2072_v14  ;;  %vm2079_vm4 = vweird.f32 %v2072_v14 }
0x1683   :  { %v2434_v15 = vpop.eup %2433 }
0x1684   :  { %v2074_v16 = vmul.f32 %v2434_v15, %v2072_v14  ;;  %vm2080_vm0 = vweird.f32 %v2434_v15 }
0x1685   :  { %vm2081_vm15 = vmor %vm2079_vm4, %vm2080_vm0 }
0x1686   :  { %v2075_v17 = vmul.f32 %v2434_v15, %v2074_v16 }
0x1688   :  { %v2076_v18 = vmul.f32 0.5, %v2075_v17 }
0x168a   :  { %v2077_v19 = vsub.f32 1.5, %v2076_v18 }
0x168c   :  { %v2078_v20 = vmul.f32 %v2434_v15, %v2077_v19 }
0x168e   :  { %v2082_v25 = vsel %vm2081_vm15, %v2434_v15, %v2078_v20 }
0x168f   :  { %v2083_v26 = vmul.f32 %v2082_v25, %v2066_v6 }
0x1691   :  { %v2087_v28 = vmul.f32 %v2372_v23, %v2083_v26 }
0x1693   :  { %v2091_v24 = vadd.f32 %v2373_v27, %v2087_v28 }
0x1695   :  { %2299 = vmatmul.msk.f32.vlgmr.msrb.gmra.mxu1 %vm294_vm5, %v2091_v24 }
0x1712   :  { %v2120_v30 = vpop.f32.mrf.mxu1 }
0x1713   :  { %v2121_v31 = vadd.f32 %v2374_v51, %v2120_v30 }
0x1715   :  { %2124 = vst.msk [vmem:[#allocation8] sm:$0x3] %vm2123_vm1, %v2121_v31 }
0x1716   :  { %2506 = shalt.err (!%p2503_p0)
}
0x1717   :  { %2135 = dma.vmem_to_hbm [thread:$0]  %s2131_s26, 32, %s2133_s28, [#allocation5]  }
0x1718   :  { %2511 = dma.done.wait [#allocation5], 32  }
0x1719   :  { %2512 = vsyncadd [#allocation5], 4294967264 }
0x171a   :  { %2140 = vsyncpa [#allocation4], 1 }
0x171b   :  { %2141 = vsyncpa [#allocation7], 1 }
0x171c   :  { %2142 = vsyncpa [#allocation5], 1 }

</bundles_post_ra>
